<compile_context>
chip_gen: v5e
topology: v5e:2x2
jax: 0.10.0
libtpu: 0.0.40
codegen_flags: <defaults>
</compile_context>

<pallas_src>
import functools

import numpy as np
import jax
import jax.numpy as jnp
from jax import lax
from jax.experimental import pallas as pl
from jax.experimental.pallas import tpu as pltpu

VMEM = pl.BlockSpec(memory_space=pltpu.MemorySpace.VMEM)


# ------------------------------ Pallas kernel ------------------------------ #

def _fused_forward_kernel(*refs, n_layers):
    """Entire StyleDisentangler forward, VMEM resident.

    Activations use the canonical layout [N, H(time), C*W(mel)] between conv
    stages (lane dim = c*W + w), which is exactly the GRU input layout after
    the last stride-2 stage (W -> 1), so no reshapes are needed anywhere.
    """
    i = 0
    x0_ref = refs[i]; i += 1
    rh_refs = refs[i:i + n_layers]; i += n_layers          # [3, H_out, H]
    g_refs = refs[i:i + n_layers]; i += n_layers           # [9, C_in*W, C_out*W_out]
    et_refs = refs[i:i + n_layers]; i += n_layers          # [C_out*W_out, C_out]
    e_refs = refs[i:i + n_layers]; i += n_layers           # [C_out, C_out*W_out]
    gb_refs = refs[i:i + n_layers]; i += n_layers          # [2, 1, C_out] (gamma, beta)
    wih_ref, whh_ref, gbias_ref = refs[i:i + 3]; i += 3    # [D,3H], [H,3H], [4,1,H]
    w1_ref, b1_ref, w2_ref, b2_ref, w3_ref, b3_ref = refs[i:i + 6]; i += 6
    emb_ref, cls_ref = refs[i], refs[i + 1]                # [N,1,H], [N,1,n_cls]

    f32 = jnp.float32
    N = x0_ref.shape[0]

    # ---- reference encoder: conv3x3 s2 p1 + BN(batch stats) + ReLU, x4 ----
    a = x0_ref[...]                                        # [N, H, C_in*W]
    for l in range(n_layers):
        H_out = rh_refs[l].shape[1]
        K_in, K_out = g_refs[l].shape[1], g_refs[l].shape[2]
        C_out = e_refs[l].shape[0]
        W_out = K_out // C_out
        H = rh_refs[l].shape[2]

        # time-axis tap selection: B_p[n, i, k] = A[n, 2i+p-1, k] (0-padded)
        b_taps = []
        for p in range(3):
            rhb = jnp.broadcast_to(rh_refs[l][p], (N, H_out, H))
            b_taps.append(jnp.einsum('nih,nhk->nik', rhb, a,
                                     preferred_element_type=f32))

        # mel-axis tap selection + channel mixing (weights baked into G), sum taps
        y = jnp.zeros((N, H_out, K_out), f32)
        for p in range(3):
            for q in range(3):
                gpq = jnp.broadcast_to(g_refs[l][3 * p + q], (N, K_in, K_out))
                y = y + jnp.einsum('nik,nko->nio', b_taps[p], gpq,
                                   preferred_element_type=f32)

        # BatchNorm2d, training mode (biased batch stats), one-pass mean/var.
        etb = jnp.broadcast_to(et_refs[l][...], (N, K_out, C_out))
        s1 = jnp.einsum('nik,nkc->nic', y, etb, preferred_element_type=f32)
        s2 = jnp.einsum('nik,nkc->nic', y * y, etb, preferred_element_type=f32)
        ssum = jnp.sum(jnp.sum(s1, axis=1, keepdims=True), axis=0, keepdims=True)
        sqsum = jnp.sum(jnp.sum(s2, axis=1, keepdims=True), axis=0, keepdims=True)
        inv_cnt = 1.0 / float(N * H_out * W_out)
        mean = ssum * inv_cnt                               # [1, 1, C_out]
        var = sqsum * inv_cnt - mean * mean
        gb = gb_refs[l][...]                                # [2, 1, C_out]
        scale_c = gb[0:1] * lax.rsqrt(var + 1e-5)
        shift_c = gb[1:2] - mean * scale_c
        eb = jnp.broadcast_to(e_refs[l][...], (1, C_out, K_out))
        scale_l = jnp.einsum('nmc,nck->nmk', scale_c, eb, preferred_element_type=f32)
        shift_l = jnp.einsum('nmc,nck->nmk', shift_c, eb, preferred_element_type=f32)
        a = jnp.maximum(y * scale_l + shift_l, 0.0)         # [N, H_out, K_out]

    # ---- GRU final hidden state (input projections hoisted over time) ----
    T, D = a.shape[1], a.shape[2]
    Hg = whh_ref.shape[0]
    wih_b = jnp.broadcast_to(wih_ref[...], (N,) + wih_ref.shape)   # [N, D, 3H]
    whh_b = jnp.broadcast_to(whh_ref[...], (N,) + whh_ref.shape)   # [N, H, 3H]
    xproj = jnp.einsum('ntd,ndk->ntk', a, wih_b, preferred_element_type=f32)
    gbias = gbias_ref[...]                                   # [4, 1, H]
    b_r, b_z, b_in, b_hn = gbias[0:1], gbias[1:2], gbias[2:3], gbias[3:4]

    h = jnp.zeros((N, 1, Hg), f32)
    for t in range(T):                                       # static unroll (T small)
        xg = xproj[:, t:t + 1, :]                            # [N, 1, 3H]
        hg = jnp.einsum('nmh,nhk->nmk', h, whh_b, preferred_element_type=f32)
        r = jax.nn.sigmoid(xg[:, :, 0:Hg] + hg[:, :, 0:Hg] + b_r)
        z = jax.nn.sigmoid(xg[:, :, Hg:2 * Hg] + hg[:, :, Hg:2 * Hg] + b_z)
        n = jnp.tanh(xg[:, :, 2 * Hg:3 * Hg] + b_in
                     + r * (hg[:, :, 2 * Hg:3 * Hg] + b_hn))
        h = (1.0 - z) * n + z * h

    # ---- disrupt (batch roll) + AdaIN ----
    emb_a = h                                                # encoder(inputs)
    if N > 1:                                                # encoder(disrupt(inputs))
        emb_b = jnp.concatenate([h[1:], h[0:1]], axis=0)
    else:
        emb_b = h

    def mean_std(f):                                         # torch.std: unbiased
        m = jnp.mean(f, axis=-1, keepdims=True)
        var = jnp.sum((f - m) ** 2, axis=-1, keepdims=True) / (Hg - 1)
        return m, jnp.sqrt(var) + 1e-6

    cm, cs = mean_std(emb_b)                                 # content stats
    sm, ss = mean_std(emb_a)                                 # style stats
    emb = ss * (emb_b - cm) / cs + sm                        # AdaIN (exact divide)
    emb_ref[...] = emb

    # ---- classifier: three Linear layers, no nonlinearity (as in reference) ----
    z1 = jnp.einsum('nmh,nhk->nmk', emb,
                    jnp.broadcast_to(w1_ref[...], (N,) + w1_ref.shape),
                    preferred_element_type=f32) + b1_ref[...]
    z2 = jnp.einsum('nmh,nhk->nmk', z1,
                    jnp.broadcast_to(w2_ref[...], (N,) + w2_ref.shape),
                    preferred_element_type=f32) + b2_ref[...]
    cls_ref[...] = jnp.einsum('nmh,nhk->nmk', z2,
                              jnp.broadcast_to(w3_ref[...], (N,) + w3_ref.shape),
                              preferred_element_type=f32) + b3_ref[...]


# --------------------------- one-time weight packing ------------------------ #

def _conv_out_size(L):
    return (L - 3 + 2) // 2 + 1


def prepare_params(params, n_mel_channels, mel_length):
    """Pre-pack all weight transforms (runs once, outside the forward graph)."""
    rh_list, g_list, et_list, e_list, gb_list = [], [], [], [], []
    H, W = mel_length, n_mel_channels
    for cp in params["convs"]:
        w = cp["w"]                                          # [C_out, C_in, 3, 3]
        C_out, C_in = int(w.shape[0]), int(w.shape[1])
        H_out, W_out = _conv_out_size(H), _conv_out_size(W)
        # time-tap row selection: rh[p, i, h] = 1 iff h == 2i + p - 1
        rh = np.zeros((3, H_out, H), np.float32)
        for p in range(3):
            for i in range(H_out):
                hh = 2 * i + p - 1
                if 0 <= hh < H:
                    rh[p, i, hh] = 1.0
        # mel-tap column selection: s[q, w, j] = 1 iff w == 2j + q - 1
        s = np.zeros((3, W, W_out), np.float32)
        for q in range(3):
            for j in range(W_out):
                wi = 2 * j + q - 1
                if 0 <= wi < W:
                    s[q, wi, j] = 1.0
        # fold conv weight + mel selection into one matrix per tap
        g6 = jnp.einsum('ocpq,qwj->pqcwoj', w, jnp.asarray(s))
        g = g6.reshape(9, C_in * W, C_out * W_out)
        # channel pool / expand matrices for lane-grouped BN statistics
        e = np.zeros((C_out, C_out * W_out), np.float32)
        for co in range(C_out):
            e[co, co * W_out:(co + 1) * W_out] = 1.0
        gb = jnp.stack([cp["gamma"], cp["beta"]]).reshape(2, 1, C_out)
        rh_list.append(jnp.asarray(rh))
        g_list.append(g)
        et_list.append(jnp.asarray(e.T))
        e_list.append(jnp.asarray(e))
        gb_list.append(gb)
        H, W = H_out, W_out

    gru = params["gru"]
    Hg = gru["w_hh"].shape[1]
    wih_cat = gru["w_ih"].T                                   # [D, 3H] (r, z, n)
    whh_cat = gru["w_hh"].T                                   # [H, 3H]
    b_ih, b_hh = gru["b_ih"], gru["b_hh"]
    gbias = jnp.stack([b_ih[0:Hg] + b_hh[0:Hg],               # b_ir + b_hr
                       b_ih[Hg:2 * Hg] + b_hh[Hg:2 * Hg],     # b_iz + b_hz
                       b_ih[2 * Hg:3 * Hg],                   # b_in
                       b_hh[2 * Hg:3 * Hg]]).reshape(4, 1, Hg)

    cls_args = []
    for layer in params["classifier"]:
        cls_args.append(layer["w"].T)                         # torch Linear: x @ W.T + b
        cls_args.append(layer["b"].reshape(1, 1, -1))

    return dict(conv=rh_list + g_list + et_list + e_list + gb_list,
                gru=[wih_cat, whh_cat, gbias],
                cls=cls_args)


# --------------------------- model-level plumbing --------------------------- #

def compute_deltas(x, win_length=5):
    """torchaudio.functional.compute_deltas (mode='replicate') along last axis."""
    n = (win_length - 1) // 2
    denom = n * (n + 1) * (2 * n + 1) / 3.0
    T = x.shape[-1]
    xp = jnp.pad(x, ((0, 0), (0, 0), (n, n)), mode="edge")
    out = jnp.zeros_like(x)
    for k in range(1, n + 1):
        out = out + k * (xp[..., n + k:n + k + T] - xp[..., n - k:n - k + T])
    return out / denom


def _make_x0(inputs):
    """[N, m_c, m_l] -> [N, m_l, 3*m_c] (mel, delta, delta2; lane = c*m_c + mel)."""
    d1 = compute_deltas(inputs)
    d2 = compute_deltas(d1)
    x = jnp.stack([inputs, d1, d2], axis=1)                   # [N, 3, m_c, m_l]
    x = jnp.transpose(x, (0, 3, 1, 2))                        # [N, m_l, 3, m_c]
    return x.reshape(inputs.shape[0], inputs.shape[2], -1)


def style_disentangler_forward(packed, inputs):
    """inputs: [N, m_c, m_l] -> (style_embedding [N, H], style_class [N, n_cls])."""
    N = inputs.shape[0]
    n_layers = len(packed["conv"]) // 5
    Hg = packed["gru"][1].shape[0]
    n_cls = packed["cls"][-1].shape[-1]

    x0 = _make_x0(inputs)
    args = [x0] + list(packed["conv"]) + list(packed["gru"]) + list(packed["cls"])
    kernel = functools.partial(_fused_forward_kernel, n_layers=n_layers)
    emb3, cls3 = pl.pallas_call(
        kernel,
        out_shape=(jax.ShapeDtypeStruct((N, 1, Hg), jnp.float32),
                   jax.ShapeDtypeStruct((N, 1, n_cls), jnp.float32)),
        in_specs=[VMEM] * len(args),
        out_specs=(VMEM, VMEM),
    )(*args)
    return emb3[:, 0, :], cls3[:, 0, :]


def init_params(key, hp, in_features, out_features):
    filters = [3] + list(hp["ref_enc_filters"])
    K = len(hp["ref_enc_filters"])
    keys = iter(jax.random.split(key, 4 * K + 4 + 6))
    convs = []
    for i in range(K):
        c_in, c_out = filters[i], filters[i + 1]
        convs.append(dict(
            w=0.1 * jax.random.normal(next(keys), (c_out, c_in, 3, 3), jnp.float32),
            b=0.1 * jax.random.normal(next(keys), (c_out,), jnp.float32),  # unused: cancels in BN
            gamma=1.0 + 0.1 * jax.random.normal(next(keys), (c_out,), jnp.float32),
            beta=0.1 * jax.random.normal(next(keys), (c_out,), jnp.float32),
        ))
    mel_out = hp["n_mel_channels"]
    for _ in range(K):
        mel_out = _conv_out_size(mel_out)
    gru_in = hp["ref_enc_filters"][-1] * mel_out
    H = hp["ref_enc_gru_size"]
    gru = dict(
        w_ih=0.2 * jax.random.normal(next(keys), (3 * H, gru_in), jnp.float32),
        w_hh=0.2 * jax.random.normal(next(keys), (3 * H, H), jnp.float32),
        b_ih=0.1 * jax.random.normal(next(keys), (3 * H,), jnp.float32),
        b_hh=0.1 * jax.random.normal(next(keys), (3 * H,), jnp.float32),
    )
    cls = []
    for din, dout in [(in_features, in_features),
                      (in_features, in_features),
                      (in_features, out_features)]:
        cls.append(dict(
            w=0.2 * jax.random.normal(next(keys), (dout, din), jnp.float32),
            b=0.1 * jax.random.normal(next(keys), (dout,), jnp.float32),
        ))
    return dict(convs=convs, gru=gru, classifier=cls)


if __name__ == "__main__":
    hp = dict(ref_enc_filters=[4, 4, 8, 8], n_mel_channels=16, ref_enc_gru_size=16)
    in_features, out_features = hp["ref_enc_gru_size"], 4

    key = jax.random.PRNGKey(0)
    k_in, k_par = jax.random.split(key)
    N, m_c, m_l = 2, hp["n_mel_channels"], 64
    inputs = jax.random.normal(k_in, (N, m_c, m_l), jnp.float32)
    params = init_params(k_par, hp, in_features, out_features)

    packed = prepare_params(params, m_c, m_l)     # one-time weight packing
    fwd = jax.jit(style_disentangler_forward)
    style_embedding, style_class = fwd(packed, inputs)
    jax.block_until_ready((style_embedding, style_class))

    assert style_embedding.shape == (N, in_features)
    assert style_class.shape == (N, out_features)
    assert jnp.all(jnp.isfinite(style_embedding)) and jnp.all(jnp.isfinite(style_class))
    print("KERNEL_OK")
</pallas_src>

<mosaic_0001>
module attributes {stable_mosaic.version = 11 : i64} {
  func.func @_fused_forward_kernel(%arg0: memref<2x64x48xf32, #tpu.memory_space<vmem>>, %arg1: memref<3x32x64xf32, #tpu.memory_space<vmem>>, %arg2: memref<3x16x32xf32, #tpu.memory_space<vmem>>, %arg3: memref<3x8x16xf32, #tpu.memory_space<vmem>>, %arg4: memref<3x4x8xf32, #tpu.memory_space<vmem>>, %arg5: memref<9x48x32xf32, #tpu.memory_space<vmem>>, %arg6: memref<9x32x16xf32, #tpu.memory_space<vmem>>, %arg7: memref<9x16x16xf32, #tpu.memory_space<vmem>>, %arg8: memref<9x16x8xf32, #tpu.memory_space<vmem>>, %arg9: memref<32x4xf32, #tpu.memory_space<vmem>>, %arg10: memref<16x4xf32, #tpu.memory_space<vmem>>, %arg11: memref<16x8xf32, #tpu.memory_space<vmem>>, %arg12: memref<8x8xf32, #tpu.memory_space<vmem>>, %arg13: memref<4x32xf32, #tpu.memory_space<vmem>>, %arg14: memref<4x16xf32, #tpu.memory_space<vmem>>, %arg15: memref<8x16xf32, #tpu.memory_space<vmem>>, %arg16: memref<8x8xf32, #tpu.memory_space<vmem>>, %arg17: memref<2x1x4xf32, #tpu.memory_space<vmem>>, %arg18: memref<2x1x4xf32, #tpu.memory_space<vmem>>, %arg19: memref<2x1x8xf32, #tpu.memory_space<vmem>>, %arg20: memref<2x1x8xf32, #tpu.memory_space<vmem>>, %arg21: memref<8x48xf32, #tpu.memory_space<vmem>>, %arg22: memref<16x48xf32, #tpu.memory_space<vmem>>, %arg23: memref<4x1x16xf32, #tpu.memory_space<vmem>>, %arg24: memref<16x16xf32, #tpu.memory_space<vmem>>, %arg25: memref<1x1x16xf32, #tpu.memory_space<vmem>>, %arg26: memref<16x16xf32, #tpu.memory_space<vmem>>, %arg27: memref<1x1x16xf32, #tpu.memory_space<vmem>>, %arg28: memref<16x4xf32, #tpu.memory_space<vmem>>, %arg29: memref<1x1x4xf32, #tpu.memory_space<vmem>>, %arg30: memref<2x1x16xf32, #tpu.memory_space<vmem>>, %arg31: memref<2x1x4xf32, #tpu.memory_space<vmem>>) attributes {dimension_semantics = [], scalar_prefetch = 0 : i64, scratch_operands = 0 : i64, tpu.core_type = #tpu.core_type<tc>} {
    %c0 = arith.constant 0 : index
    %c0_0 = arith.constant 0 : index
    %c0_1 = arith.constant 0 : index
    %0 = vector.load %arg0[%c0, %c0_0, %c0_1] : memref<2x64x48xf32, #tpu.memory_space<vmem>>, vector<2x64x48xf32>
    %c0_2 = arith.constant 0 : index
    %c0_3 = arith.constant 0 : index
    %c0_4 = arith.constant 0 : index
    %1 = vector.load %arg1[%c0_2, %c0_3, %c0_4] : memref<3x32x64xf32, #tpu.memory_space<vmem>>, vector<1x32x64xf32>
    %2 = vector.shape_cast %1 : vector<1x32x64xf32> to vector<32x64xf32>
    %3 = vector.shape_cast %2 : vector<32x64xf32> to vector<1x32x64xf32>
    %4 = vector.broadcast %3 : vector<1x32x64xf32> to vector<2x32x64xf32>
    "tpu.trace_start"() <{level = 10 : i32, message = "nih,nhk->nik"}> : () -> ()
    %cst = arith.constant dense<0.000000e+00> : vector<2x32x48xf32>
    %5 = tpu.matmul %4, %0, %cst {dimension_numbers = #tpu.dot_dimension_numbers<[2], [1], [1], [2], [0, 0, 0, 1, 1, 2], [0], [0]>} : vector<2x32x64xf32>, vector<2x64x48xf32>, vector<2x32x48xf32> -> vector<2x32x48xf32>
    "tpu.trace_stop"() : () -> ()
    %c1 = arith.constant 1 : index
    %c0_5 = arith.constant 0 : index
    %c0_6 = arith.constant 0 : index
    %6 = vector.load %arg1[%c1, %c0_5, %c0_6] : memref<3x32x64xf32, #tpu.memory_space<vmem>>, vector<1x32x64xf32>
    %7 = vector.shape_cast %6 : vector<1x32x64xf32> to vector<32x64xf32>
    %8 = vector.shape_cast %7 : vector<32x64xf32> to vector<1x32x64xf32>
    %9 = vector.broadcast %8 : vector<1x32x64xf32> to vector<2x32x64xf32>
    "tpu.trace_start"() <{level = 10 : i32, message = "nih,nhk->nik"}> : () -> ()
    %cst_7 = arith.constant dense<0.000000e+00> : vector<2x32x48xf32>
    %10 = tpu.matmul %9, %0, %cst_7 {dimension_numbers = #tpu.dot_dimension_numbers<[2], [1], [1], [2], [0, 0, 0, 1, 1, 2], [0], [0]>} : vector<2x32x64xf32>, vector<2x64x48xf32>, vector<2x32x48xf32> -> vector<2x32x48xf32>
    "tpu.trace_stop"() : () -> ()
    %c2 = arith.constant 2 : index
    %c0_8 = arith.constant 0 : index
    %c0_9 = arith.constant 0 : index
    %11 = vector.load %arg1[%c2, %c0_8, %c0_9] : memref<3x32x64xf32, #tpu.memory_space<vmem>>, vector<1x32x64xf32>
    %12 = vector.shape_cast %11 : vector<1x32x64xf32> to vector<32x64xf32>
    %13 = vector.shape_cast %12 : vector<32x64xf32> to vector<1x32x64xf32>
    %14 = vector.broadcast %13 : vector<1x32x64xf32> to vector<2x32x64xf32>
    "tpu.trace_start"() <{level = 10 : i32, message = "nih,nhk->nik"}> : () -> ()
    %cst_10 = arith.constant dense<0.000000e+00> : vector<2x32x48xf32>
    %15 = tpu.matmul %14, %0, %cst_10 {dimension_numbers = #tpu.dot_dimension_numbers<[2], [1], [1], [2], [0, 0, 0, 1, 1, 2], [0], [0]>} : vector<2x32x64xf32>, vector<2x64x48xf32>, vector<2x32x48xf32> -> vector<2x32x48xf32>
    %cst_11 = arith.constant 0.000000e+00 : f32
    "tpu.trace_stop"() : () -> ()
    %16 = vector.broadcast %cst_11 : f32 to vector<2x32x32xf32>
    %c0_12 = arith.constant 0 : index
    %c0_13 = arith.constant 0 : index
    %c0_14 = arith.constant 0 : index
    %17 = vector.load %arg5[%c0_12, %c0_13, %c0_14] : memref<9x48x32xf32, #tpu.memory_space<vmem>>, vector<1x48x32xf32>
    %18 = vector.shape_cast %17 : vector<1x48x32xf32> to vector<48x32xf32>
    %19 = vector.shape_cast %18 : vector<48x32xf32> to vector<1x48x32xf32>
    %20 = vector.broadcast %19 : vector<1x48x32xf32> to vector<2x48x32xf32>
    "tpu.trace_start"() <{level = 10 : i32, message = "nik,nko->nio"}> : () -> ()
    %cst_15 = arith.constant dense<0.000000e+00> : vector<2x32x32xf32>
    %21 = tpu.matmul %5, %20, %cst_15 {dimension_numbers = #tpu.dot_dimension_numbers<[2], [1], [1], [2], [0, 0, 0, 1, 1, 2], [0], [0]>} : vector<2x32x48xf32>, vector<2x48x32xf32>, vector<2x32x32xf32> -> vector<2x32x32xf32>
    "tpu.trace_stop"() : () -> ()
    %22 = arith.addf %16, %21 : vector<2x32x32xf32>
    %c1_16 = arith.constant 1 : index
    %c0_17 = arith.constant 0 : index
    %c0_18 = arith.constant 0 : index
    %23 = vector.load %arg5[%c1_16, %c0_17, %c0_18] : memref<9x48x32xf32, #tpu.memory_space<vmem>>, vector<1x48x32xf32>
    %24 = vector.shape_cast %23 : vector<1x48x32xf32> to vector<48x32xf32>
    %25 = vector.shape_cast %24 : vector<48x32xf32> to vector<1x48x32xf32>
    %26 = vector.broadcast %25 : vector<1x48x32xf32> to vector<2x48x32xf32>
    "tpu.trace_start"() <{level = 10 : i32, message = "nik,nko->nio"}> : () -> ()
    %cst_19 = arith.constant dense<0.000000e+00> : vector<2x32x32xf32>
    %27 = tpu.matmul %5, %26, %cst_19 {dimension_numbers = #tpu.dot_dimension_numbers<[2], [1], [1], [2], [0, 0, 0, 1, 1, 2], [0], [0]>} : vector<2x32x48xf32>, vector<2x48x32xf32>, vector<2x32x32xf32> -> vector<2x32x32xf32>
    "tpu.trace_stop"() : () -> ()
    %28 = arith.addf %22, %27 : vector<2x32x32xf32>
    %c2_20 = arith.constant 2 : index
    %c0_21 = arith.constant 0 : index
    %c0_22 = arith.constant 0 : index
    %29 = vector.load %arg5[%c2_20, %c0_21, %c0_22] : memref<9x48x32xf32, #tpu.memory_space<vmem>>, vector<1x48x32xf32>
    %30 = vector.shape_cast %29 : vector<1x48x32xf32> to vector<48x32xf32>
    %31 = vector.shape_cast %30 : vector<48x32xf32> to vector<1x48x32xf32>
    %32 = vector.broadcast %31 : vector<1x48x32xf32> to vector<2x48x32xf32>
    "tpu.trace_start"() <{level = 10 : i32, message = "nik,nko->nio"}> : () -> ()
    %cst_23 = arith.constant dense<0.000000e+00> : vector<2x32x32xf32>
    %33 = tpu.matmul %5, %32, %cst_23 {dimension_numbers = #tpu.dot_dimension_numbers<[2], [1], [1], [2], [0, 0, 0, 1, 1, 2], [0], [0]>} : vector<2x32x48xf32>, vector<2x48x32xf32>, vector<2x32x32xf32> -> vector<2x32x32xf32>
    "tpu.trace_stop"() : () -> ()
    %34 = arith.addf %28, %33 : vector<2x32x32xf32>
    %c3 = arith.constant 3 : index
    %c0_24 = arith.constant 0 : index
    %c0_25 = arith.constant 0 : index
    %35 = vector.load %arg5[%c3, %c0_24, %c0_25] : memref<9x48x32xf32, #tpu.memory_space<vmem>>, vector<1x48x32xf32>
    %36 = vector.shape_cast %35 : vector<1x48x32xf32> to vector<48x32xf32>
    %37 = vector.shape_cast %36 : vector<48x32xf32> to vector<1x48x32xf32>
    %38 = vector.broadcast %37 : vector<1x48x32xf32> to vector<2x48x32xf32>
    "tpu.trace_start"() <{level = 10 : i32, message = "nik,nko->nio"}> : () -> ()
    %cst_26 = arith.constant dense<0.000000e+00> : vector<2x32x32xf32>
    %39 = tpu.matmul %10, %38, %cst_26 {dimension_numbers = #tpu.dot_dimension_numbers<[2], [1], [1], [2], [0, 0, 0, 1, 1, 2], [0], [0]>} : vector<2x32x48xf32>, vector<2x48x32xf32>, vector<2x32x32xf32> -> vector<2x32x32xf32>
    "tpu.trace_stop"() : () -> ()
    %40 = arith.addf %34, %39 : vector<2x32x32xf32>
    %c4 = arith.constant 4 : index
    %c0_27 = arith.constant 0 : index
    %c0_28 = arith.constant 0 : index
    %41 = vector.load %arg5[%c4, %c0_27, %c0_28] : memref<9x48x32xf32, #tpu.memory_space<vmem>>, vector<1x48x32xf32>
    %42 = vector.shape_cast %41 : vector<1x48x32xf32> to vector<48x32xf32>
    %43 = vector.shape_cast %42 : vector<48x32xf32> to vector<1x48x32xf32>
    %44 = vector.broadcast %43 : vector<1x48x32xf32> to vector<2x48x32xf32>
    "tpu.trace_start"() <{level = 10 : i32, message = "nik,nko->nio"}> : () -> ()
    %cst_29 = arith.constant dense<0.000000e+00> : vector<2x32x32xf32>
    %45 = tpu.matmul %10, %44, %cst_29 {dimension_numbers = #tpu.dot_dimension_numbers<[2], [1], [1], [2], [0, 0, 0, 1, 1, 2], [0], [0]>} : vector<2x32x48xf32>, vector<2x48x32xf32>, vector<2x32x32xf32> -> vector<2x32x32xf32>
    "tpu.trace_stop"() : () -> ()
    %46 = arith.addf %40, %45 : vector<2x32x32xf32>
    %c5 = arith.constant 5 : index
    %c0_30 = arith.constant 0 : index
    %c0_31 = arith.constant 0 : index
    %47 = vector.load %arg5[%c5, %c0_30, %c0_31] : memref<9x48x32xf32, #tpu.memory_space<vmem>>, vector<1x48x32xf32>
    %48 = vector.shape_cast %47 : vector<1x48x32xf32> to vector<48x32xf32>
    %49 = vector.shape_cast %48 : vector<48x32xf32> to vector<1x48x32xf32>
    %50 = vector.broadcast %49 : vector<1x48x32xf32> to vector<2x48x32xf32>
    "tpu.trace_start"() <{level = 10 : i32, message = "nik,nko->nio"}> : () -> ()
    %cst_32 = arith.constant dense<0.000000e+00> : vector<2x32x32xf32>
    %51 = tpu.matmul %10, %50, %cst_32 {dimension_numbers = #tpu.dot_dimension_numbers<[2], [1], [1], [2], [0, 0, 0, 1, 1, 2], [0], [0]>} : vector<2x32x48xf32>, vector<2x48x32xf32>, vector<2x32x32xf32> -> vector<2x32x32xf32>
    "tpu.trace_stop"() : () -> ()
    %52 = arith.addf %46, %51 : vector<2x32x32xf32>
    %c6 = arith.constant 6 : index
    %c0_33 = arith.constant 0 : index
    %c0_34 = arith.constant 0 : index
    %53 = vector.load %arg5[%c6, %c0_33, %c0_34] : memref<9x48x32xf32, #tpu.memory_space<vmem>>, vector<1x48x32xf32>
    %54 = vector.shape_cast %53 : vector<1x48x32xf32> to vector<48x32xf32>
    %55 = vector.shape_cast %54 : vector<48x32xf32> to vector<1x48x32xf32>
    %56 = vector.broadcast %55 : vector<1x48x32xf32> to vector<2x48x32xf32>
    "tpu.trace_start"() <{level = 10 : i32, message = "nik,nko->nio"}> : () -> ()
    %cst_35 = arith.constant dense<0.000000e+00> : vector<2x32x32xf32>
    %57 = tpu.matmul %15, %56, %cst_35 {dimension_numbers = #tpu.dot_dimension_numbers<[2], [1], [1], [2], [0, 0, 0, 1, 1, 2], [0], [0]>} : vector<2x32x48xf32>, vector<2x48x32xf32>, vector<2x32x32xf32> -> vector<2x32x32xf32>
    "tpu.trace_stop"() : () -> ()
    %58 = arith.addf %52, %57 : vector<2x32x32xf32>
    %c7 = arith.constant 7 : index
    %c0_36 = arith.constant 0 : index
    %c0_37 = arith.constant 0 : index
    %59 = vector.load %arg5[%c7, %c0_36, %c0_37] : memref<9x48x32xf32, #tpu.memory_space<vmem>>, vector<1x48x32xf32>
    %60 = vector.shape_cast %59 : vector<1x48x32xf32> to vector<48x32xf32>
    %61 = vector.shape_cast %60 : vector<48x32xf32> to vector<1x48x32xf32>
    %62 = vector.broadcast %61 : vector<1x48x32xf32> to vector<2x48x32xf32>
    "tpu.trace_start"() <{level = 10 : i32, message = "nik,nko->nio"}> : () -> ()
    %cst_38 = arith.constant dense<0.000000e+00> : vector<2x32x32xf32>
    %63 = tpu.matmul %15, %62, %cst_38 {dimension_numbers = #tpu.dot_dimension_numbers<[2], [1], [1], [2], [0, 0, 0, 1, 1, 2], [0], [0]>} : vector<2x32x48xf32>, vector<2x48x32xf32>, vector<2x32x32xf32> -> vector<2x32x32xf32>
    "tpu.trace_stop"() : () -> ()
    %64 = arith.addf %58, %63 : vector<2x32x32xf32>
    %c8 = arith.constant 8 : index
    %c0_39 = arith.constant 0 : index
    %c0_40 = arith.constant 0 : index
    %65 = vector.load %arg5[%c8, %c0_39, %c0_40] : memref<9x48x32xf32, #tpu.memory_space<vmem>>, vector<1x48x32xf32>
    %66 = vector.shape_cast %65 : vector<1x48x32xf32> to vector<48x32xf32>
    %67 = vector.shape_cast %66 : vector<48x32xf32> to vector<1x48x32xf32>
    %68 = vector.broadcast %67 : vector<1x48x32xf32> to vector<2x48x32xf32>
    "tpu.trace_start"() <{level = 10 : i32, message = "nik,nko->nio"}> : () -> ()
    %cst_41 = arith.constant dense<0.000000e+00> : vector<2x32x32xf32>
    %69 = tpu.matmul %15, %68, %cst_41 {dimension_numbers = #tpu.dot_dimension_numbers<[2], [1], [1], [2], [0, 0, 0, 1, 1, 2], [0], [0]>} : vector<2x32x48xf32>, vector<2x48x32xf32>, vector<2x32x32xf32> -> vector<2x32x32xf32>
    "tpu.trace_stop"() : () -> ()
    %70 = arith.addf %64, %69 : vector<2x32x32xf32>
    %c0_42 = arith.constant 0 : index
    %c0_43 = arith.constant 0 : index
    %71 = vector.load %arg9[%c0_42, %c0_43] : memref<32x4xf32, #tpu.memory_space<vmem>>, vector<32x4xf32>
    %72 = vector.shape_cast %71 : vector<32x4xf32> to vector<1x32x4xf32>
    %73 = vector.broadcast %72 : vector<1x32x4xf32> to vector<2x32x4xf32>
    "tpu.trace_start"() <{level = 10 : i32, message = "nik,nkc->nic"}> : () -> ()
    %cst_44 = arith.constant dense<0.000000e+00> : vector<2x32x4xf32>
    %74 = tpu.matmul %70, %73, %cst_44 {dimension_numbers = #tpu.dot_dimension_numbers<[2], [1], [1], [2], [0, 0, 0, 1, 1, 2], [0], [0]>} : vector<2x32x32xf32>, vector<2x32x4xf32>, vector<2x32x4xf32> -> vector<2x32x4xf32>
    "tpu.trace_stop"() : () -> ()
    %75 = arith.mulf %70, %70 : vector<2x32x32xf32>
    "tpu.trace_start"() <{level = 10 : i32, message = "nik,nkc->nic"}> : () -> ()
    %cst_45 = arith.constant dense<0.000000e+00> : vector<2x32x4xf32>
    %76 = tpu.matmul %75, %73, %cst_45 {dimension_numbers = #tpu.dot_dimension_numbers<[2], [1], [1], [2], [0, 0, 0, 1, 1, 2], [0], [0]>} : vector<2x32x32xf32>, vector<2x32x4xf32>, vector<2x32x4xf32> -> vector<2x32x4xf32>
    "tpu.trace_stop"() : () -> ()
    %cst_46 = arith.constant dense<0.000000e+00> : vector<2x4xf32>
    %77 = vector.multi_reduction <add>, %74, %cst_46 [1] : vector<2x32x4xf32> to vector<2x4xf32>
    %78 = vector.shape_cast %77 : vector<2x4xf32> to vector<2x1x4xf32>
    %cst_47 = arith.constant dense<0.000000e+00> : vector<1x4xf32>
    %79 = vector.multi_reduction <add>, %78, %cst_47 [0] : vector<2x1x4xf32> to vector<1x4xf32>
    %80 = vector.shape_cast %79 : vector<1x4xf32> to vector<1x1x4xf32>
    %cst_48 = arith.constant dense<0.000000e+00> : vector<2x4xf32>
    %81 = vector.multi_reduction <add>, %76, %cst_48 [1] : vector<2x32x4xf32> to vector<2x4xf32>
    %82 = vector.shape_cast %81 : vector<2x4xf32> to vector<2x1x4xf32>
    %cst_49 = arith.constant dense<0.000000e+00> : vector<1x4xf32>
    %83 = vector.multi_reduction <add>, %82, %cst_49 [0] : vector<2x1x4xf32> to vector<1x4xf32>
    %84 = vector.shape_cast %83 : vector<1x4xf32> to vector<1x1x4xf32>
    %cst_50 = arith.constant 0.001953125 : f32
    %85 = vector.broadcast %cst_50 : f32 to vector<1x1x4xf32>
    %86 = arith.mulf %80, %85 : vector<1x1x4xf32>
    %cst_51 = arith.constant 0.001953125 : f32
    %87 = vector.broadcast %cst_51 : f32 to vector<1x1x4xf32>
    %88 = arith.mulf %84, %87 : vector<1x1x4xf32>
    %89 = arith.mulf %86, %86 : vector<1x1x4xf32>
    %90 = arith.subf %88, %89 : vector<1x1x4xf32>
    %c0_52 = arith.constant 0 : index
    %c0_53 = arith.constant 0 : index
    %c0_54 = arith.constant 0 : index
    %91 = vector.load %arg17[%c0_52, %c0_53, %c0_54] : memref<2x1x4xf32, #tpu.memory_space<vmem>>, vector<2x1x4xf32>
    %92 = vector.extract_strided_slice %91 {offsets = [0, 0, 0], sizes = [1, 1, 4], strides = [1, 1, 1]} : vector<2x1x4xf32> to vector<1x1x4xf32>
    %cst_55 = arith.constant 9.99999974E-6 : f32
    %93 = vector.broadcast %cst_55 : f32 to vector<1x1x4xf32>
    %94 = arith.addf %90, %93 : vector<1x1x4xf32>
    %95 = math.rsqrt %94 : vector<1x1x4xf32>
    %96 = arith.mulf %92, %95 : vector<1x1x4xf32>
    %97 = vector.extract_strided_slice %91 {offsets = [1, 0, 0], sizes = [1, 1, 4], strides = [1, 1, 1]} : vector<2x1x4xf32> to vector<1x1x4xf32>
    %98 = arith.mulf %86, %96 : vector<1x1x4xf32>
    %99 = arith.subf %97, %98 : vector<1x1x4xf32>
    %c0_56 = arith.constant 0 : index
    %c0_57 = arith.constant 0 : index
    %100 = vector.load %arg13[%c0_56, %c0_57] : memref<4x32xf32, #tpu.memory_space<vmem>>, vector<4x32xf32>
    %101 = vector.shape_cast %100 : vector<4x32xf32> to vector<1x4x32xf32>
    "tpu.trace_start"() <{level = 10 : i32, message = "nmc,nck->nmk"}> : () -> ()
    %cst_58 = arith.constant dense<0.000000e+00> : vector<1x1x32xf32>
    %102 = tpu.matmul %96, %101, %cst_58 {dimension_numbers = #tpu.dot_dimension_numbers<[2], [1], [1], [2], [0, 0, 0, 1, 1, 2], [0], [0]>} : vector<1x1x4xf32>, vector<1x4x32xf32>, vector<1x1x32xf32> -> vector<1x1x32xf32>
    %cst_59 = arith.constant dense<0.000000e+00> : vector<1x1x32xf32>
    %103 = tpu.matmul %99, %101, %cst_59 {dimension_numbers = #tpu.dot_dimension_numbers<[2], [1], [1], [2], [0, 0, 0, 1, 1, 2], [0], [0]>} : vector<1x1x4xf32>, vector<1x4x32xf32>, vector<1x1x32xf32> -> vector<1x1x32xf32>
    "tpu.trace_stop"() : () -> ()
    %104 = vector.broadcast %102 : vector<1x1x32xf32> to vector<2x32x32xf32>
    %105 = arith.mulf %70, %104 : vector<2x32x32xf32>
    %106 = vector.broadcast %103 : vector<1x1x32xf32> to vector<2x32x32xf32>
    %107 = arith.addf %105, %106 : vector<2x32x32xf32>
    %cst_60 = arith.constant 0.000000e+00 : f32
    %108 = vector.broadcast %cst_60 : f32 to vector<2x32x32xf32>
    %109 = arith.maximumf %107, %108 : vector<2x32x32xf32>
    %c0_61 = arith.constant 0 : index
    %c0_62 = arith.constant 0 : index
    %c0_63 = arith.constant 0 : index
    %110 = vector.load %arg2[%c0_61, %c0_62, %c0_63] : memref<3x16x32xf32, #tpu.memory_space<vmem>>, vector<1x16x32xf32>
    %111 = vector.shape_cast %110 : vector<1x16x32xf32> to vector<16x32xf32>
    %112 = vector.shape_cast %111 : vector<16x32xf32> to vector<1x16x32xf32>
    %113 = vector.broadcast %112 : vector<1x16x32xf32> to vector<2x16x32xf32>
    "tpu.trace_start"() <{level = 10 : i32, message = "nih,nhk->nik"}> : () -> ()
    %cst_64 = arith.constant dense<0.000000e+00> : vector<2x16x32xf32>
    %114 = tpu.matmul %113, %109, %cst_64 {dimension_numbers = #tpu.dot_dimension_numbers<[2], [1], [1], [2], [0, 0, 0, 1, 1, 2], [0], [0]>} : vector<2x16x32xf32>, vector<2x32x32xf32>, vector<2x16x32xf32> -> vector<2x16x32xf32>
    "tpu.trace_stop"() : () -> ()
    %c1_65 = arith.constant 1 : index
    %c0_66 = arith.constant 0 : index
    %c0_67 = arith.constant 0 : index
    %115 = vector.load %arg2[%c1_65, %c0_66, %c0_67] : memref<3x16x32xf32, #tpu.memory_space<vmem>>, vector<1x16x32xf32>
    %116 = vector.shape_cast %115 : vector<1x16x32xf32> to vector<16x32xf32>
    %117 = vector.shape_cast %116 : vector<16x32xf32> to vector<1x16x32xf32>
    %118 = vector.broadcast %117 : vector<1x16x32xf32> to vector<2x16x32xf32>
    "tpu.trace_start"() <{level = 10 : i32, message = "nih,nhk->nik"}> : () -> ()
    %cst_68 = arith.constant dense<0.000000e+00> : vector<2x16x32xf32>
    %119 = tpu.matmul %118, %109, %cst_68 {dimension_numbers = #tpu.dot_dimension_numbers<[2], [1], [1], [2], [0, 0, 0, 1, 1, 2], [0], [0]>} : vector<2x16x32xf32>, vector<2x32x32xf32>, vector<2x16x32xf32> -> vector<2x16x32xf32>
    "tpu.trace_stop"() : () -> ()
    %c2_69 = arith.constant 2 : index
    %c0_70 = arith.constant 0 : index
    %c0_71 = arith.constant 0 : index
    %120 = vector.load %arg2[%c2_69, %c0_70, %c0_71] : memref<3x16x32xf32, #tpu.memory_space<vmem>>, vector<1x16x32xf32>
    %121 = vector.shape_cast %120 : vector<1x16x32xf32> to vector<16x32xf32>
    %122 = vector.shape_cast %121 : vector<16x32xf32> to vector<1x16x32xf32>
    %123 = vector.broadcast %122 : vector<1x16x32xf32> to vector<2x16x32xf32>
    "tpu.trace_start"() <{level = 10 : i32, message = "nih,nhk->nik"}> : () -> ()
    %cst_72 = arith.constant dense<0.000000e+00> : vector<2x16x32xf32>
    %124 = tpu.matmul %123, %109, %cst_72 {dimension_numbers = #tpu.dot_dimension_numbers<[2], [1], [1], [2], [0, 0, 0, 1, 1, 2], [0], [0]>} : vector<2x16x32xf32>, vector<2x32x32xf32>, vector<2x16x32xf32> -> vector<2x16x32xf32>
    %cst_73 = arith.constant 0.000000e+00 : f32
    "tpu.trace_stop"() : () -> ()
    %125 = vector.broadcast %cst_73 : f32 to vector<2x16x16xf32>
    %c0_74 = arith.constant 0 : index
    %c0_75 = arith.constant 0 : index
    %c0_76 = arith.constant 0 : index
    %126 = vector.load %arg6[%c0_74, %c0_75, %c0_76] : memref<9x32x16xf32, #tpu.memory_space<vmem>>, vector<1x32x16xf32>
    %127 = vector.shape_cast %126 : vector<1x32x16xf32> to vector<32x16xf32>
    %128 = vector.shape_cast %127 : vector<32x16xf32> to vector<1x32x16xf32>
    %129 = vector.broadcast %128 : vector<1x32x16xf32> to vector<2x32x16xf32>
    "tpu.trace_start"() <{level = 10 : i32, message = "nik,nko->nio"}> : () -> ()
    %cst_77 = arith.constant dense<0.000000e+00> : vector<2x16x16xf32>
    %130 = tpu.matmul %114, %129, %cst_77 {dimension_numbers = #tpu.dot_dimension_numbers<[2], [1], [1], [2], [0, 0, 0, 1, 1, 2], [0], [0]>} : vector<2x16x32xf32>, vector<2x32x16xf32>, vector<2x16x16xf32> -> vector<2x16x16xf32>
    "tpu.trace_stop"() : () -> ()
    %131 = arith.addf %125, %130 : vector<2x16x16xf32>
    %c1_78 = arith.constant 1 : index
    %c0_79 = arith.constant 0 : index
    %c0_80 = arith.constant 0 : index
    %132 = vector.load %arg6[%c1_78, %c0_79, %c0_80] : memref<9x32x16xf32, #tpu.memory_space<vmem>>, vector<1x32x16xf32>
    %133 = vector.shape_cast %132 : vector<1x32x16xf32> to vector<32x16xf32>
    %134 = vector.shape_cast %133 : vector<32x16xf32> to vector<1x32x16xf32>
    %135 = vector.broadcast %134 : vector<1x32x16xf32> to vector<2x32x16xf32>
    "tpu.trace_start"() <{level = 10 : i32, message = "nik,nko->nio"}> : () -> ()
    %cst_81 = arith.constant dense<0.000000e+00> : vector<2x16x16xf32>
    %136 = tpu.matmul %114, %135, %cst_81 {dimension_numbers = #tpu.dot_dimension_numbers<[2], [1], [1], [2], [0, 0, 0, 1, 1, 2], [0], [0]>} : vector<2x16x32xf32>, vector<2x32x16xf32>, vector<2x16x16xf32> -> vector<2x16x16xf32>
    "tpu.trace_stop"() : () -> ()
    %137 = arith.addf %131, %136 : vector<2x16x16xf32>
    %c2_82 = arith.constant 2 : index
    %c0_83 = arith.constant 0 : index
    %c0_84 = arith.constant 0 : index
    %138 = vector.load %arg6[%c2_82, %c0_83, %c0_84] : memref<9x32x16xf32, #tpu.memory_space<vmem>>, vector<1x32x16xf32>
    %139 = vector.shape_cast %138 : vector<1x32x16xf32> to vector<32x16xf32>
    %140 = vector.shape_cast %139 : vector<32x16xf32> to vector<1x32x16xf32>
    %141 = vector.broadcast %140 : vector<1x32x16xf32> to vector<2x32x16xf32>
    "tpu.trace_start"() <{level = 10 : i32, message = "nik,nko->nio"}> : () -> ()
    %cst_85 = arith.constant dense<0.000000e+00> : vector<2x16x16xf32>
    %142 = tpu.matmul %114, %141, %cst_85 {dimension_numbers = #tpu.dot_dimension_numbers<[2], [1], [1], [2], [0, 0, 0, 1, 1, 2], [0], [0]>} : vector<2x16x32xf32>, vector<2x32x16xf32>, vector<2x16x16xf32> -> vector<2x16x16xf32>
    "tpu.trace_stop"() : () -> ()
    %143 = arith.addf %137, %142 : vector<2x16x16xf32>
    %c3_86 = arith.constant 3 : index
    %c0_87 = arith.constant 0 : index
    %c0_88 = arith.constant 0 : index
    %144 = vector.load %arg6[%c3_86, %c0_87, %c0_88] : memref<9x32x16xf32, #tpu.memory_space<vmem>>, vector<1x32x16xf32>
    %145 = vector.shape_cast %144 : vector<1x32x16xf32> to vector<32x16xf32>
    %146 = vector.shape_cast %145 : vector<32x16xf32> to vector<1x32x16xf32>
    %147 = vector.broadcast %146 : vector<1x32x16xf32> to vector<2x32x16xf32>
    "tpu.trace_start"() <{level = 10 : i32, message = "nik,nko->nio"}> : () -> ()
    %cst_89 = arith.constant dense<0.000000e+00> : vector<2x16x16xf32>
    %148 = tpu.matmul %119, %147, %cst_89 {dimension_numbers = #tpu.dot_dimension_numbers<[2], [1], [1], [2], [0, 0, 0, 1, 1, 2], [0], [0]>} : vector<2x16x32xf32>, vector<2x32x16xf32>, vector<2x16x16xf32> -> vector<2x16x16xf32>
    "tpu.trace_stop"() : () -> ()
    %149 = arith.addf %143, %148 : vector<2x16x16xf32>
    %c4_90 = arith.constant 4 : index
    %c0_91 = arith.constant 0 : index
    %c0_92 = arith.constant 0 : index
    %150 = vector.load %arg6[%c4_90, %c0_91, %c0_92] : memref<9x32x16xf32, #tpu.memory_space<vmem>>, vector<1x32x16xf32>
    %151 = vector.shape_cast %150 : vector<1x32x16xf32> to vector<32x16xf32>
    %152 = vector.shape_cast %151 : vector<32x16xf32> to vector<1x32x16xf32>
    %153 = vector.broadcast %152 : vector<1x32x16xf32> to vector<2x32x16xf32>
    "tpu.trace_start"() <{level = 10 : i32, message = "nik,nko->nio"}> : () -> ()
    %cst_93 = arith.constant dense<0.000000e+00> : vector<2x16x16xf32>
    %154 = tpu.matmul %119, %153, %cst_93 {dimension_numbers = #tpu.dot_dimension_numbers<[2], [1], [1], [2], [0, 0, 0, 1, 1, 2], [0], [0]>} : vector<2x16x32xf32>, vector<2x32x16xf32>, vector<2x16x16xf32> -> vector<2x16x16xf32>
    "tpu.trace_stop"() : () -> ()
    %155 = arith.addf %149, %154 : vector<2x16x16xf32>
    %c5_94 = arith.constant 5 : index
    %c0_95 = arith.constant 0 : index
    %c0_96 = arith.constant 0 : index
    %156 = vector.load %arg6[%c5_94, %c0_95, %c0_96] : memref<9x32x16xf32, #tpu.memory_space<vmem>>, vector<1x32x16xf32>
    %157 = vector.shape_cast %156 : vector<1x32x16xf32> to vector<32x16xf32>
    %158 = vector.shape_cast %157 : vector<32x16xf32> to vector<1x32x16xf32>
    %159 = vector.broadcast %158 : vector<1x32x16xf32> to vector<2x32x16xf32>
    "tpu.trace_start"() <{level = 10 : i32, message = "nik,nko->nio"}> : () -> ()
    %cst_97 = arith.constant dense<0.000000e+00> : vector<2x16x16xf32>
    %160 = tpu.matmul %119, %159, %cst_97 {dimension_numbers = #tpu.dot_dimension_numbers<[2], [1], [1], [2], [0, 0, 0, 1, 1, 2], [0], [0]>} : vector<2x16x32xf32>, vector<2x32x16xf32>, vector<2x16x16xf32> -> vector<2x16x16xf32>
    "tpu.trace_stop"() : () -> ()
    %161 = arith.addf %155, %160 : vector<2x16x16xf32>
    %c6_98 = arith.constant 6 : index
    %c0_99 = arith.constant 0 : index
    %c0_100 = arith.constant 0 : index
    %162 = vector.load %arg6[%c6_98, %c0_99, %c0_100] : memref<9x32x16xf32, #tpu.memory_space<vmem>>, vector<1x32x16xf32>
    %163 = vector.shape_cast %162 : vector<1x32x16xf32> to vector<32x16xf32>
    %164 = vector.shape_cast %163 : vector<32x16xf32> to vector<1x32x16xf32>
    %165 = vector.broadcast %164 : vector<1x32x16xf32> to vector<2x32x16xf32>
    "tpu.trace_start"() <{level = 10 : i32, message = "nik,nko->nio"}> : () -> ()
    %cst_101 = arith.constant dense<0.000000e+00> : vector<2x16x16xf32>
    %166 = tpu.matmul %124, %165, %cst_101 {dimension_numbers = #tpu.dot_dimension_numbers<[2], [1], [1], [2], [0, 0, 0, 1, 1, 2], [0], [0]>} : vector<2x16x32xf32>, vector<2x32x16xf32>, vector<2x16x16xf32> -> vector<2x16x16xf32>
    "tpu.trace_stop"() : () -> ()
    %167 = arith.addf %161, %166 : vector<2x16x16xf32>
    %c7_102 = arith.constant 7 : index
    %c0_103 = arith.constant 0 : index
    %c0_104 = arith.constant 0 : index
    %168 = vector.load %arg6[%c7_102, %c0_103, %c0_104] : memref<9x32x16xf32, #tpu.memory_space<vmem>>, vector<1x32x16xf32>
    %169 = vector.shape_cast %168 : vector<1x32x16xf32> to vector<32x16xf32>
    %170 = vector.shape_cast %169 : vector<32x16xf32> to vector<1x32x16xf32>
    %171 = vector.broadcast %170 : vector<1x32x16xf32> to vector<2x32x16xf32>
    "tpu.trace_start"() <{level = 10 : i32, message = "nik,nko->nio"}> : () -> ()
    %cst_105 = arith.constant dense<0.000000e+00> : vector<2x16x16xf32>
    %172 = tpu.matmul %124, %171, %cst_105 {dimension_numbers = #tpu.dot_dimension_numbers<[2], [1], [1], [2], [0, 0, 0, 1, 1, 2], [0], [0]>} : vector<2x16x32xf32>, vector<2x32x16xf32>, vector<2x16x16xf32> -> vector<2x16x16xf32>
    "tpu.trace_stop"() : () -> ()
    %173 = arith.addf %167, %172 : vector<2x16x16xf32>
    %c8_106 = arith.constant 8 : index
    %c0_107 = arith.constant 0 : index
    %c0_108 = arith.constant 0 : index
    %174 = vector.load %arg6[%c8_106, %c0_107, %c0_108] : memref<9x32x16xf32, #tpu.memory_space<vmem>>, vector<1x32x16xf32>
    %175 = vector.shape_cast %174 : vector<1x32x16xf32> to vector<32x16xf32>
    %176 = vector.shape_cast %175 : vector<32x16xf32> to vector<1x32x16xf32>
    %177 = vector.broadcast %176 : vector<1x32x16xf32> to vector<2x32x16xf32>
    "tpu.trace_start"() <{level = 10 : i32, message = "nik,nko->nio"}> : () -> ()
    %cst_109 = arith.constant dense<0.000000e+00> : vector<2x16x16xf32>
    %178 = tpu.matmul %124, %177, %cst_109 {dimension_numbers = #tpu.dot_dimension_numbers<[2], [1], [1], [2], [0, 0, 0, 1, 1, 2], [0], [0]>} : vector<2x16x32xf32>, vector<2x32x16xf32>, vector<2x16x16xf32> -> vector<2x16x16xf32>
    "tpu.trace_stop"() : () -> ()
    %179 = arith.addf %173, %178 : vector<2x16x16xf32>
    %c0_110 = arith.constant 0 : index
    %c0_111 = arith.constant 0 : index
    %180 = vector.load %arg10[%c0_110, %c0_111] : memref<16x4xf32, #tpu.memory_space<vmem>>, vector<16x4xf32>
    %181 = vector.shape_cast %180 : vector<16x4xf32> to vector<1x16x4xf32>
    %182 = vector.broadcast %181 : vector<1x16x4xf32> to vector<2x16x4xf32>
    "tpu.trace_start"() <{level = 10 : i32, message = "nik,nkc->nic"}> : () -> ()
    %cst_112 = arith.constant dense<0.000000e+00> : vector<2x16x4xf32>
    %183 = tpu.matmul %179, %182, %cst_112 {dimension_numbers = #tpu.dot_dimension_numbers<[2], [1], [1], [2], [0, 0, 0, 1, 1, 2], [0], [0]>} : vector<2x16x16xf32>, vector<2x16x4xf32>, vector<2x16x4xf32> -> vector<2x16x4xf32>
    "tpu.trace_stop"() : () -> ()
    %184 = arith.mulf %179, %179 : vector<2x16x16xf32>
    "tpu.trace_start"() <{level = 10 : i32, message = "nik,nkc->nic"}> : () -> ()
    %cst_113 = arith.constant dense<0.000000e+00> : vector<2x16x4xf32>
    %185 = tpu.matmul %184, %182, %cst_113 {dimension_numbers = #tpu.dot_dimension_numbers<[2], [1], [1], [2], [0, 0, 0, 1, 1, 2], [0], [0]>} : vector<2x16x16xf32>, vector<2x16x4xf32>, vector<2x16x4xf32> -> vector<2x16x4xf32>
    "tpu.trace_stop"() : () -> ()
    %cst_114 = arith.constant dense<0.000000e+00> : vector<2x4xf32>
    %186 = vector.multi_reduction <add>, %183, %cst_114 [1] : vector<2x16x4xf32> to vector<2x4xf32>
    %187 = vector.shape_cast %186 : vector<2x4xf32> to vector<2x1x4xf32>
    %cst_115 = arith.constant dense<0.000000e+00> : vector<1x4xf32>
    %188 = vector.multi_reduction <add>, %187, %cst_115 [0] : vector<2x1x4xf32> to vector<1x4xf32>
    %189 = vector.shape_cast %188 : vector<1x4xf32> to vector<1x1x4xf32>
    %cst_116 = arith.constant dense<0.000000e+00> : vector<2x4xf32>
    %190 = vector.multi_reduction <add>, %185, %cst_116 [1] : vector<2x16x4xf32> to vector<2x4xf32>
    %191 = vector.shape_cast %190 : vector<2x4xf32> to vector<2x1x4xf32>
    %cst_117 = arith.constant dense<0.000000e+00> : vector<1x4xf32>
    %192 = vector.multi_reduction <add>, %191, %cst_117 [0] : vector<2x1x4xf32> to vector<1x4xf32>
    %193 = vector.shape_cast %192 : vector<1x4xf32> to vector<1x1x4xf32>
    %cst_118 = arith.constant 7.812500e-03 : f32
    %194 = vector.broadcast %cst_118 : f32 to vector<1x1x4xf32>
    %195 = arith.mulf %189, %194 : vector<1x1x4xf32>
    %cst_119 = arith.constant 7.812500e-03 : f32
    %196 = vector.broadcast %cst_119 : f32 to vector<1x1x4xf32>
    %197 = arith.mulf %193, %196 : vector<1x1x4xf32>
    %198 = arith.mulf %195, %195 : vector<1x1x4xf32>
    %199 = arith.subf %197, %198 : vector<1x1x4xf32>
    %c0_120 = arith.constant 0 : index
    %c0_121 = arith.constant 0 : index
    %c0_122 = arith.constant 0 : index
    %200 = vector.load %arg18[%c0_120, %c0_121, %c0_122] : memref<2x1x4xf32, #tpu.memory_space<vmem>>, vector<2x1x4xf32>
    %201 = vector.extract_strided_slice %200 {offsets = [0, 0, 0], sizes = [1, 1, 4], strides = [1, 1, 1]} : vector<2x1x4xf32> to vector<1x1x4xf32>
    %cst_123 = arith.constant 9.99999974E-6 : f32
    %202 = vector.broadcast %cst_123 : f32 to vector<1x1x4xf32>
    %203 = arith.addf %199, %202 : vector<1x1x4xf32>
    %204 = math.rsqrt %203 : vector<1x1x4xf32>
    %205 = arith.mulf %201, %204 : vector<1x1x4xf32>
    %206 = vector.extract_strided_slice %200 {offsets = [1, 0, 0], sizes = [1, 1, 4], strides = [1, 1, 1]} : vector<2x1x4xf32> to vector<1x1x4xf32>
    %207 = arith.mulf %195, %205 : vector<1x1x4xf32>
    %208 = arith.subf %206, %207 : vector<1x1x4xf32>
    %c0_124 = arith.constant 0 : index
    %c0_125 = arith.constant 0 : index
    %209 = vector.load %arg14[%c0_124, %c0_125] : memref<4x16xf32, #tpu.memory_space<vmem>>, vector<4x16xf32>
    %210 = vector.shape_cast %209 : vector<4x16xf32> to vector<1x4x16xf32>
    "tpu.trace_start"() <{level = 10 : i32, message = "nmc,nck->nmk"}> : () -> ()
    %cst_126 = arith.constant dense<0.000000e+00> : vector<1x1x16xf32>
    %211 = tpu.matmul %205, %210, %cst_126 {dimension_numbers = #tpu.dot_dimension_numbers<[2], [1], [1], [2], [0, 0, 0, 1, 1, 2], [0], [0]>} : vector<1x1x4xf32>, vector<1x4x16xf32>, vector<1x1x16xf32> -> vector<1x1x16xf32>
    %cst_127 = arith.constant dense<0.000000e+00> : vector<1x1x16xf32>
    %212 = tpu.matmul %208, %210, %cst_127 {dimension_numbers = #tpu.dot_dimension_numbers<[2], [1], [1], [2], [0, 0, 0, 1, 1, 2], [0], [0]>} : vector<1x1x4xf32>, vector<1x4x16xf32>, vector<1x1x16xf32> -> vector<1x1x16xf32>
    "tpu.trace_stop"() : () -> ()
    %213 = vector.broadcast %211 : vector<1x1x16xf32> to vector<2x16x16xf32>
    %214 = arith.mulf %179, %213 : vector<2x16x16xf32>
    %215 = vector.broadcast %212 : vector<1x1x16xf32> to vector<2x16x16xf32>
    %216 = arith.addf %214, %215 : vector<2x16x16xf32>
    %cst_128 = arith.constant 0.000000e+00 : f32
    %217 = vector.broadcast %cst_128 : f32 to vector<2x16x16xf32>
    %218 = arith.maximumf %216, %217 : vector<2x16x16xf32>
    %c0_129 = arith.constant 0 : index
    %c0_130 = arith.constant 0 : index
    %c0_131 = arith.constant 0 : index
    %219 = vector.load %arg3[%c0_129, %c0_130, %c0_131] : memref<3x8x16xf32, #tpu.memory_space<vmem>>, vector<1x8x16xf32>
    %220 = vector.shape_cast %219 : vector<1x8x16xf32> to vector<8x16xf32>
    %221 = vector.shape_cast %220 : vector<8x16xf32> to vector<1x8x16xf32>
    %222 = vector.broadcast %221 : vector<1x8x16xf32> to vector<2x8x16xf32>
    "tpu.trace_start"() <{level = 10 : i32, message = "nih,nhk->nik"}> : () -> ()
    %cst_132 = arith.constant dense<0.000000e+00> : vector<2x8x16xf32>
    %223 = tpu.matmul %222, %218, %cst_132 {dimension_numbers = #tpu.dot_dimension_numbers<[2], [1], [1], [2], [0, 0, 0, 1, 1, 2], [0], [0]>} : vector<2x8x16xf32>, vector<2x16x16xf32>, vector<2x8x16xf32> -> vector<2x8x16xf32>
    "tpu.trace_stop"() : () -> ()
    %c1_133 = arith.constant 1 : index
    %c0_134 = arith.constant 0 : index
    %c0_135 = arith.constant 0 : index
    %224 = vector.load %arg3[%c1_133, %c0_134, %c0_135] : memref<3x8x16xf32, #tpu.memory_space<vmem>>, vector<1x8x16xf32>
    %225 = vector.shape_cast %224 : vector<1x8x16xf32> to vector<8x16xf32>
    %226 = vector.shape_cast %225 : vector<8x16xf32> to vector<1x8x16xf32>
    %227 = vector.broadcast %226 : vector<1x8x16xf32> to vector<2x8x16xf32>
    "tpu.trace_start"() <{level = 10 : i32, message = "nih,nhk->nik"}> : () -> ()
    %cst_136 = arith.constant dense<0.000000e+00> : vector<2x8x16xf32>
    %228 = tpu.matmul %227, %218, %cst_136 {dimension_numbers = #tpu.dot_dimension_numbers<[2], [1], [1], [2], [0, 0, 0, 1, 1, 2], [0], [0]>} : vector<2x8x16xf32>, vector<2x16x16xf32>, vector<2x8x16xf32> -> vector<2x8x16xf32>
    "tpu.trace_stop"() : () -> ()
    %c2_137 = arith.constant 2 : index
    %c0_138 = arith.constant 0 : index
    %c0_139 = arith.constant 0 : index
    %229 = vector.load %arg3[%c2_137, %c0_138, %c0_139] : memref<3x8x16xf32, #tpu.memory_space<vmem>>, vector<1x8x16xf32>
    %230 = vector.shape_cast %229 : vector<1x8x16xf32> to vector<8x16xf32>
    %231 = vector.shape_cast %230 : vector<8x16xf32> to vector<1x8x16xf32>
    %232 = vector.broadcast %231 : vector<1x8x16xf32> to vector<2x8x16xf32>
    "tpu.trace_start"() <{level = 10 : i32, message = "nih,nhk->nik"}> : () -> ()
    %cst_140 = arith.constant dense<0.000000e+00> : vector<2x8x16xf32>
    %233 = tpu.matmul %232, %218, %cst_140 {dimension_numbers = #tpu.dot_dimension_numbers<[2], [1], [1], [2], [0, 0, 0, 1, 1, 2], [0], [0]>} : vector<2x8x16xf32>, vector<2x16x16xf32>, vector<2x8x16xf32> -> vector<2x8x16xf32>
    %cst_141 = arith.constant 0.000000e+00 : f32
    "tpu.trace_stop"() : () -> ()
    %234 = vector.broadcast %cst_141 : f32 to vector<2x8x16xf32>
    %c0_142 = arith.constant 0 : index
    %c0_143 = arith.constant 0 : index
    %c0_144 = arith.constant 0 : index
    %235 = vector.load %arg7[%c0_142, %c0_143, %c0_144] : memref<9x16x16xf32, #tpu.memory_space<vmem>>, vector<1x16x16xf32>
    %236 = vector.shape_cast %235 : vector<1x16x16xf32> to vector<16x16xf32>
    %237 = vector.shape_cast %236 : vector<16x16xf32> to vector<1x16x16xf32>
    %238 = vector.broadcast %237 : vector<1x16x16xf32> to vector<2x16x16xf32>
    "tpu.trace_start"() <{level = 10 : i32, message = "nik,nko->nio"}> : () -> ()
    %cst_145 = arith.constant dense<0.000000e+00> : vector<2x8x16xf32>
    %239 = tpu.matmul %223, %238, %cst_145 {dimension_numbers = #tpu.dot_dimension_numbers<[2], [1], [1], [2], [0, 0, 0, 1, 1, 2], [0], [0]>} : vector<2x8x16xf32>, vector<2x16x16xf32>, vector<2x8x16xf32> -> vector<2x8x16xf32>
    "tpu.trace_stop"() : () -> ()
    %240 = arith.addf %234, %239 : vector<2x8x16xf32>
    %c1_146 = arith.constant 1 : index
    %c0_147 = arith.constant 0 : index
    %c0_148 = arith.constant 0 : index
    %241 = vector.load %arg7[%c1_146, %c0_147, %c0_148] : memref<9x16x16xf32, #tpu.memory_space<vmem>>, vector<1x16x16xf32>
    %242 = vector.shape_cast %241 : vector<1x16x16xf32> to vector<16x16xf32>
    %243 = vector.shape_cast %242 : vector<16x16xf32> to vector<1x16x16xf32>
    %244 = vector.broadcast %243 : vector<1x16x16xf32> to vector<2x16x16xf32>
    "tpu.trace_start"() <{level = 10 : i32, message = "nik,nko->nio"}> : () -> ()
    %cst_149 = arith.constant dense<0.000000e+00> : vector<2x8x16xf32>
    %245 = tpu.matmul %223, %244, %cst_149 {dimension_numbers = #tpu.dot_dimension_numbers<[2], [1], [1], [2], [0, 0, 0, 1, 1, 2], [0], [0]>} : vector<2x8x16xf32>, vector<2x16x16xf32>, vector<2x8x16xf32> -> vector<2x8x16xf32>
    "tpu.trace_stop"() : () -> ()
    %246 = arith.addf %240, %245 : vector<2x8x16xf32>
    %c2_150 = arith.constant 2 : index
    %c0_151 = arith.constant 0 : index
    %c0_152 = arith.constant 0 : index
    %247 = vector.load %arg7[%c2_150, %c0_151, %c0_152] : memref<9x16x16xf32, #tpu.memory_space<vmem>>, vector<1x16x16xf32>
    %248 = vector.shape_cast %247 : vector<1x16x16xf32> to vector<16x16xf32>
    %249 = vector.shape_cast %248 : vector<16x16xf32> to vector<1x16x16xf32>
    %250 = vector.broadcast %249 : vector<1x16x16xf32> to vector<2x16x16xf32>
    "tpu.trace_start"() <{level = 10 : i32, message = "nik,nko->nio"}> : () -> ()
    %cst_153 = arith.constant dense<0.000000e+00> : vector<2x8x16xf32>
    %251 = tpu.matmul %223, %250, %cst_153 {dimension_numbers = #tpu.dot_dimension_numbers<[2], [1], [1], [2], [0, 0, 0, 1, 1, 2], [0], [0]>} : vector<2x8x16xf32>, vector<2x16x16xf32>, vector<2x8x16xf32> -> vector<2x8x16xf32>
    "tpu.trace_stop"() : () -> ()
    %252 = arith.addf %246, %251 : vector<2x8x16xf32>
    %c3_154 = arith.constant 3 : index
    %c0_155 = arith.constant 0 : index
    %c0_156 = arith.constant 0 : index
    %253 = vector.load %arg7[%c3_154, %c0_155, %c0_156] : memref<9x16x16xf32, #tpu.memory_space<vmem>>, vector<1x16x16xf32>
    %254 = vector.shape_cast %253 : vector<1x16x16xf32> to vector<16x16xf32>
    %255 = vector.shape_cast %254 : vector<16x16xf32> to vector<1x16x16xf32>
    %256 = vector.broadcast %255 : vector<1x16x16xf32> to vector<2x16x16xf32>
    "tpu.trace_start"() <{level = 10 : i32, message = "nik,nko->nio"}> : () -> ()
    %cst_157 = arith.constant dense<0.000000e+00> : vector<2x8x16xf32>
    %257 = tpu.matmul %228, %256, %cst_157 {dimension_numbers = #tpu.dot_dimension_numbers<[2], [1], [1], [2], [0, 0, 0, 1, 1, 2], [0], [0]>} : vector<2x8x16xf32>, vector<2x16x16xf32>, vector<2x8x16xf32> -> vector<2x8x16xf32>
    "tpu.trace_stop"() : () -> ()
    %258 = arith.addf %252, %257 : vector<2x8x16xf32>
    %c4_158 = arith.constant 4 : index
    %c0_159 = arith.constant 0 : index
    %c0_160 = arith.constant 0 : index
    %259 = vector.load %arg7[%c4_158, %c0_159, %c0_160] : memref<9x16x16xf32, #tpu.memory_space<vmem>>, vector<1x16x16xf32>
    %260 = vector.shape_cast %259 : vector<1x16x16xf32> to vector<16x16xf32>
    %261 = vector.shape_cast %260 : vector<16x16xf32> to vector<1x16x16xf32>
    %262 = vector.broadcast %261 : vector<1x16x16xf32> to vector<2x16x16xf32>
    "tpu.trace_start"() <{level = 10 : i32, message = "nik,nko->nio"}> : () -> ()
    %cst_161 = arith.constant dense<0.000000e+00> : vector<2x8x16xf32>
    %263 = tpu.matmul %228, %262, %cst_161 {dimension_numbers = #tpu.dot_dimension_numbers<[2], [1], [1], [2], [0, 0, 0, 1, 1, 2], [0], [0]>} : vector<2x8x16xf32>, vector<2x16x16xf32>, vector<2x8x16xf32> -> vector<2x8x16xf32>
    "tpu.trace_stop"() : () -> ()
    %264 = arith.addf %258, %263 : vector<2x8x16xf32>
    %c5_162 = arith.constant 5 : index
    %c0_163 = arith.constant 0 : index
    %c0_164 = arith.constant 0 : index
    %265 = vector.load %arg7[%c5_162, %c0_163, %c0_164] : memref<9x16x16xf32, #tpu.memory_space<vmem>>, vector<1x16x16xf32>
    %266 = vector.shape_cast %265 : vector<1x16x16xf32> to vector<16x16xf32>
    %267 = vector.shape_cast %266 : vector<16x16xf32> to vector<1x16x16xf32>
    %268 = vector.broadcast %267 : vector<1x16x16xf32> to vector<2x16x16xf32>
    "tpu.trace_start"() <{level = 10 : i32, message = "nik,nko->nio"}> : () -> ()
    %cst_165 = arith.constant dense<0.000000e+00> : vector<2x8x16xf32>
    %269 = tpu.matmul %228, %268, %cst_165 {dimension_numbers = #tpu.dot_dimension_numbers<[2], [1], [1], [2], [0, 0, 0, 1, 1, 2], [0], [0]>} : vector<2x8x16xf32>, vector<2x16x16xf32>, vector<2x8x16xf32> -> vector<2x8x16xf32>
    "tpu.trace_stop"() : () -> ()
    %270 = arith.addf %264, %269 : vector<2x8x16xf32>
    %c6_166 = arith.constant 6 : index
    %c0_167 = arith.constant 0 : index
    %c0_168 = arith.constant 0 : index
    %271 = vector.load %arg7[%c6_166, %c0_167, %c0_168] : memref<9x16x16xf32, #tpu.memory_space<vmem>>, vector<1x16x16xf32>
    %272 = vector.shape_cast %271 : vector<1x16x16xf32> to vector<16x16xf32>
    %273 = vector.shape_cast %272 : vector<16x16xf32> to vector<1x16x16xf32>
    %274 = vector.broadcast %273 : vector<1x16x16xf32> to vector<2x16x16xf32>
    "tpu.trace_start"() <{level = 10 : i32, message = "nik,nko->nio"}> : () -> ()
    %cst_169 = arith.constant dense<0.000000e+00> : vector<2x8x16xf32>
    %275 = tpu.matmul %233, %274, %cst_169 {dimension_numbers = #tpu.dot_dimension_numbers<[2], [1], [1], [2], [0, 0, 0, 1, 1, 2], [0], [0]>} : vector<2x8x16xf32>, vector<2x16x16xf32>, vector<2x8x16xf32> -> vector<2x8x16xf32>
    "tpu.trace_stop"() : () -> ()
    %276 = arith.addf %270, %275 : vector<2x8x16xf32>
    %c7_170 = arith.constant 7 : index
    %c0_171 = arith.constant 0 : index
    %c0_172 = arith.constant 0 : index
    %277 = vector.load %arg7[%c7_170, %c0_171, %c0_172] : memref<9x16x16xf32, #tpu.memory_space<vmem>>, vector<1x16x16xf32>
    %278 = vector.shape_cast %277 : vector<1x16x16xf32> to vector<16x16xf32>
    %279 = vector.shape_cast %278 : vector<16x16xf32> to vector<1x16x16xf32>
    %280 = vector.broadcast %279 : vector<1x16x16xf32> to vector<2x16x16xf32>
    "tpu.trace_start"() <{level = 10 : i32, message = "nik,nko->nio"}> : () -> ()
    %cst_173 = arith.constant dense<0.000000e+00> : vector<2x8x16xf32>
    %281 = tpu.matmul %233, %280, %cst_173 {dimension_numbers = #tpu.dot_dimension_numbers<[2], [1], [1], [2], [0, 0, 0, 1, 1, 2], [0], [0]>} : vector<2x8x16xf32>, vector<2x16x16xf32>, vector<2x8x16xf32> -> vector<2x8x16xf32>
    "tpu.trace_stop"() : () -> ()
    %282 = arith.addf %276, %281 : vector<2x8x16xf32>
    %c8_174 = arith.constant 8 : index
    %c0_175 = arith.constant 0 : index
    %c0_176 = arith.constant 0 : index
    %283 = vector.load %arg7[%c8_174, %c0_175, %c0_176] : memref<9x16x16xf32, #tpu.memory_space<vmem>>, vector<1x16x16xf32>
    %284 = vector.shape_cast %283 : vector<1x16x16xf32> to vector<16x16xf32>
    %285 = vector.shape_cast %284 : vector<16x16xf32> to vector<1x16x16xf32>
    %286 = vector.broadcast %285 : vector<1x16x16xf32> to vector<2x16x16xf32>
    "tpu.trace_start"() <{level = 10 : i32, message = "nik,nko->nio"}> : () -> ()
    %cst_177 = arith.constant dense<0.000000e+00> : vector<2x8x16xf32>
    %287 = tpu.matmul %233, %286, %cst_177 {dimension_numbers = #tpu.dot_dimension_numbers<[2], [1], [1], [2], [0, 0, 0, 1, 1, 2], [0], [0]>} : vector<2x8x16xf32>, vector<2x16x16xf32>, vector<2x8x16xf32> -> vector<2x8x16xf32>
    "tpu.trace_stop"() : () -> ()
    %288 = arith.addf %282, %287 : vector<2x8x16xf32>
    %c0_178 = arith.constant 0 : index
    %c0_179 = arith.constant 0 : index
    %289 = vector.load %arg11[%c0_178, %c0_179] : memref<16x8xf32, #tpu.memory_space<vmem>>, vector<16x8xf32>
    %290 = vector.shape_cast %289 : vector<16x8xf32> to vector<1x16x8xf32>
    %291 = vector.broadcast %290 : vector<1x16x8xf32> to vector<2x16x8xf32>
    "tpu.trace_start"() <{level = 10 : i32, message = "nik,nkc->nic"}> : () -> ()
    %cst_180 = arith.constant dense<0.000000e+00> : vector<2x8x8xf32>
    %292 = tpu.matmul %288, %291, %cst_180 {dimension_numbers = #tpu.dot_dimension_numbers<[2], [1], [1], [2], [0, 0, 0, 1, 1, 2], [0], [0]>} : vector<2x8x16xf32>, vector<2x16x8xf32>, vector<2x8x8xf32> -> vector<2x8x8xf32>
    "tpu.trace_stop"() : () -> ()
    %293 = arith.mulf %288, %288 : vector<2x8x16xf32>
    "tpu.trace_start"() <{level = 10 : i32, message = "nik,nkc->nic"}> : () -> ()
    %cst_181 = arith.constant dense<0.000000e+00> : vector<2x8x8xf32>
    %294 = tpu.matmul %293, %291, %cst_181 {dimension_numbers = #tpu.dot_dimension_numbers<[2], [1], [1], [2], [0, 0, 0, 1, 1, 2], [0], [0]>} : vector<2x8x16xf32>, vector<2x16x8xf32>, vector<2x8x8xf32> -> vector<2x8x8xf32>
    "tpu.trace_stop"() : () -> ()
    %cst_182 = arith.constant dense<0.000000e+00> : vector<2x8xf32>
    %295 = vector.multi_reduction <add>, %292, %cst_182 [1] : vector<2x8x8xf32> to vector<2x8xf32>
    %296 = vector.shape_cast %295 : vector<2x8xf32> to vector<2x1x8xf32>
    %cst_183 = arith.constant dense<0.000000e+00> : vector<1x8xf32>
    %297 = vector.multi_reduction <add>, %296, %cst_183 [0] : vector<2x1x8xf32> to vector<1x8xf32>
    %298 = vector.shape_cast %297 : vector<1x8xf32> to vector<1x1x8xf32>
    %cst_184 = arith.constant dense<0.000000e+00> : vector<2x8xf32>
    %299 = vector.multi_reduction <add>, %294, %cst_184 [1] : vector<2x8x8xf32> to vector<2x8xf32>
    %300 = vector.shape_cast %299 : vector<2x8xf32> to vector<2x1x8xf32>
    %cst_185 = arith.constant dense<0.000000e+00> : vector<1x8xf32>
    %301 = vector.multi_reduction <add>, %300, %cst_185 [0] : vector<2x1x8xf32> to vector<1x8xf32>
    %302 = vector.shape_cast %301 : vector<1x8xf32> to vector<1x1x8xf32>
    %cst_186 = arith.constant 3.125000e-02 : f32
    %303 = vector.broadcast %cst_186 : f32 to vector<1x1x8xf32>
    %304 = arith.mulf %298, %303 : vector<1x1x8xf32>
    %cst_187 = arith.constant 3.125000e-02 : f32
    %305 = vector.broadcast %cst_187 : f32 to vector<1x1x8xf32>
    %306 = arith.mulf %302, %305 : vector<1x1x8xf32>
    %307 = arith.mulf %304, %304 : vector<1x1x8xf32>
    %308 = arith.subf %306, %307 : vector<1x1x8xf32>
    %c0_188 = arith.constant 0 : index
    %c0_189 = arith.constant 0 : index
    %c0_190 = arith.constant 0 : index
    %309 = vector.load %arg19[%c0_188, %c0_189, %c0_190] : memref<2x1x8xf32, #tpu.memory_space<vmem>>, vector<2x1x8xf32>
    %310 = vector.extract_strided_slice %309 {offsets = [0, 0, 0], sizes = [1, 1, 8], strides = [1, 1, 1]} : vector<2x1x8xf32> to vector<1x1x8xf32>
    %cst_191 = arith.constant 9.99999974E-6 : f32
    %311 = vector.broadcast %cst_191 : f32 to vector<1x1x8xf32>
    %312 = arith.addf %308, %311 : vector<1x1x8xf32>
    %313 = math.rsqrt %312 : vector<1x1x8xf32>
    %314 = arith.mulf %310, %313 : vector<1x1x8xf32>
    %315 = vector.extract_strided_slice %309 {offsets = [1, 0, 0], sizes = [1, 1, 8], strides = [1, 1, 1]} : vector<2x1x8xf32> to vector<1x1x8xf32>
    %316 = arith.mulf %304, %314 : vector<1x1x8xf32>
    %317 = arith.subf %315, %316 : vector<1x1x8xf32>
    %c0_192 = arith.constant 0 : index
    %c0_193 = arith.constant 0 : index
    %318 = vector.load %arg15[%c0_192, %c0_193] : memref<8x16xf32, #tpu.memory_space<vmem>>, vector<8x16xf32>
    %319 = vector.shape_cast %318 : vector<8x16xf32> to vector<1x8x16xf32>
    "tpu.trace_start"() <{level = 10 : i32, message = "nmc,nck->nmk"}> : () -> ()
    %cst_194 = arith.constant dense<0.000000e+00> : vector<1x1x16xf32>
    %320 = tpu.matmul %314, %319, %cst_194 {dimension_numbers = #tpu.dot_dimension_numbers<[2], [1], [1], [2], [0, 0, 0, 1, 1, 2], [0], [0]>} : vector<1x1x8xf32>, vector<1x8x16xf32>, vector<1x1x16xf32> -> vector<1x1x16xf32>
    %cst_195 = arith.constant dense<0.000000e+00> : vector<1x1x16xf32>
    %321 = tpu.matmul %317, %319, %cst_195 {dimension_numbers = #tpu.dot_dimension_numbers<[2], [1], [1], [2], [0, 0, 0, 1, 1, 2], [0], [0]>} : vector<1x1x8xf32>, vector<1x8x16xf32>, vector<1x1x16xf32> -> vector<1x1x16xf32>
    "tpu.trace_stop"() : () -> ()
    %322 = vector.broadcast %320 : vector<1x1x16xf32> to vector<2x8x16xf32>
    %323 = arith.mulf %288, %322 : vector<2x8x16xf32>
    %324 = vector.broadcast %321 : vector<1x1x16xf32> to vector<2x8x16xf32>
    %325 = arith.addf %323, %324 : vector<2x8x16xf32>
    %cst_196 = arith.constant 0.000000e+00 : f32
    %326 = vector.broadcast %cst_196 : f32 to vector<2x8x16xf32>
    %327 = arith.maximumf %325, %326 : vector<2x8x16xf32>
    %c0_197 = arith.constant 0 : index
    %c0_198 = arith.constant 0 : index
    %c0_199 = arith.constant 0 : index
    %328 = vector.load %arg4[%c0_197, %c0_198, %c0_199] : memref<3x4x8xf32, #tpu.memory_space<vmem>>, vector<1x4x8xf32>
    %329 = vector.shape_cast %328 : vector<1x4x8xf32> to vector<4x8xf32>
    %330 = vector.shape_cast %329 : vector<4x8xf32> to vector<1x4x8xf32>
    %331 = vector.broadcast %330 : vector<1x4x8xf32> to vector<2x4x8xf32>
    "tpu.trace_start"() <{level = 10 : i32, message = "nih,nhk->nik"}> : () -> ()
    %cst_200 = arith.constant dense<0.000000e+00> : vector<2x4x16xf32>
    %332 = tpu.matmul %331, %327, %cst_200 {dimension_numbers = #tpu.dot_dimension_numbers<[2], [1], [1], [2], [0, 0, 0, 1, 1, 2], [0], [0]>} : vector<2x4x8xf32>, vector<2x8x16xf32>, vector<2x4x16xf32> -> vector<2x4x16xf32>
    "tpu.trace_stop"() : () -> ()
    %c1_201 = arith.constant 1 : index
    %c0_202 = arith.constant 0 : index
    %c0_203 = arith.constant 0 : index
    %333 = vector.load %arg4[%c1_201, %c0_202, %c0_203] : memref<3x4x8xf32, #tpu.memory_space<vmem>>, vector<1x4x8xf32>
    %334 = vector.shape_cast %333 : vector<1x4x8xf32> to vector<4x8xf32>
    %335 = vector.shape_cast %334 : vector<4x8xf32> to vector<1x4x8xf32>
    %336 = vector.broadcast %335 : vector<1x4x8xf32> to vector<2x4x8xf32>
    "tpu.trace_start"() <{level = 10 : i32, message = "nih,nhk->nik"}> : () -> ()
    %cst_204 = arith.constant dense<0.000000e+00> : vector<2x4x16xf32>
    %337 = tpu.matmul %336, %327, %cst_204 {dimension_numbers = #tpu.dot_dimension_numbers<[2], [1], [1], [2], [0, 0, 0, 1, 1, 2], [0], [0]>} : vector<2x4x8xf32>, vector<2x8x16xf32>, vector<2x4x16xf32> -> vector<2x4x16xf32>
    "tpu.trace_stop"() : () -> ()
    %c2_205 = arith.constant 2 : index
    %c0_206 = arith.constant 0 : index
    %c0_207 = arith.constant 0 : index
    %338 = vector.load %arg4[%c2_205, %c0_206, %c0_207] : memref<3x4x8xf32, #tpu.memory_space<vmem>>, vector<1x4x8xf32>
    %339 = vector.shape_cast %338 : vector<1x4x8xf32> to vector<4x8xf32>
    %340 = vector.shape_cast %339 : vector<4x8xf32> to vector<1x4x8xf32>
    %341 = vector.broadcast %340 : vector<1x4x8xf32> to vector<2x4x8xf32>
    "tpu.trace_start"() <{level = 10 : i32, message = "nih,nhk->nik"}> : () -> ()
    %cst_208 = arith.constant dense<0.000000e+00> : vector<2x4x16xf32>
    %342 = tpu.matmul %341, %327, %cst_208 {dimension_numbers = #tpu.dot_dimension_numbers<[2], [1], [1], [2], [0, 0, 0, 1, 1, 2], [0], [0]>} : vector<2x4x8xf32>, vector<2x8x16xf32>, vector<2x4x16xf32> -> vector<2x4x16xf32>
    %cst_209 = arith.constant 0.000000e+00 : f32
    "tpu.trace_stop"() : () -> ()
    %343 = vector.broadcast %cst_209 : f32 to vector<2x4x8xf32>
    %c0_210 = arith.constant 0 : index
    %c0_211 = arith.constant 0 : index
    %c0_212 = arith.constant 0 : index
    %344 = vector.load %arg8[%c0_210, %c0_211, %c0_212] : memref<9x16x8xf32, #tpu.memory_space<vmem>>, vector<1x16x8xf32>
    %345 = vector.shape_cast %344 : vector<1x16x8xf32> to vector<16x8xf32>
    %346 = vector.shape_cast %345 : vector<16x8xf32> to vector<1x16x8xf32>
    %347 = vector.broadcast %346 : vector<1x16x8xf32> to vector<2x16x8xf32>
    "tpu.trace_start"() <{level = 10 : i32, message = "nik,nko->nio"}> : () -> ()
    %cst_213 = arith.constant dense<0.000000e+00> : vector<2x4x8xf32>
    %348 = tpu.matmul %332, %347, %cst_213 {dimension_numbers = #tpu.dot_dimension_numbers<[2], [1], [1], [2], [0, 0, 0, 1, 1, 2], [0], [0]>} : vector<2x4x16xf32>, vector<2x16x8xf32>, vector<2x4x8xf32> -> vector<2x4x8xf32>
    "tpu.trace_stop"() : () -> ()
    %349 = arith.addf %343, %348 : vector<2x4x8xf32>
    %c1_214 = arith.constant 1 : index
    %c0_215 = arith.constant 0 : index
    %c0_216 = arith.constant 0 : index
    %350 = vector.load %arg8[%c1_214, %c0_215, %c0_216] : memref<9x16x8xf32, #tpu.memory_space<vmem>>, vector<1x16x8xf32>
    %351 = vector.shape_cast %350 : vector<1x16x8xf32> to vector<16x8xf32>
    %352 = vector.shape_cast %351 : vector<16x8xf32> to vector<1x16x8xf32>
    %353 = vector.broadcast %352 : vector<1x16x8xf32> to vector<2x16x8xf32>
    "tpu.trace_start"() <{level = 10 : i32, message = "nik,nko->nio"}> : () -> ()
    %cst_217 = arith.constant dense<0.000000e+00> : vector<2x4x8xf32>
    %354 = tpu.matmul %332, %353, %cst_217 {dimension_numbers = #tpu.dot_dimension_numbers<[2], [1], [1], [2], [0, 0, 0, 1, 1, 2], [0], [0]>} : vector<2x4x16xf32>, vector<2x16x8xf32>, vector<2x4x8xf32> -> vector<2x4x8xf32>
    "tpu.trace_stop"() : () -> ()
    %355 = arith.addf %349, %354 : vector<2x4x8xf32>
    %c2_218 = arith.constant 2 : index
    %c0_219 = arith.constant 0 : index
    %c0_220 = arith.constant 0 : index
    %356 = vector.load %arg8[%c2_218, %c0_219, %c0_220] : memref<9x16x8xf32, #tpu.memory_space<vmem>>, vector<1x16x8xf32>
    %357 = vector.shape_cast %356 : vector<1x16x8xf32> to vector<16x8xf32>
    %358 = vector.shape_cast %357 : vector<16x8xf32> to vector<1x16x8xf32>
    %359 = vector.broadcast %358 : vector<1x16x8xf32> to vector<2x16x8xf32>
    "tpu.trace_start"() <{level = 10 : i32, message = "nik,nko->nio"}> : () -> ()
    %cst_221 = arith.constant dense<0.000000e+00> : vector<2x4x8xf32>
    %360 = tpu.matmul %332, %359, %cst_221 {dimension_numbers = #tpu.dot_dimension_numbers<[2], [1], [1], [2], [0, 0, 0, 1, 1, 2], [0], [0]>} : vector<2x4x16xf32>, vector<2x16x8xf32>, vector<2x4x8xf32> -> vector<2x4x8xf32>
    "tpu.trace_stop"() : () -> ()
    %361 = arith.addf %355, %360 : vector<2x4x8xf32>
    %c3_222 = arith.constant 3 : index
    %c0_223 = arith.constant 0 : index
    %c0_224 = arith.constant 0 : index
    %362 = vector.load %arg8[%c3_222, %c0_223, %c0_224] : memref<9x16x8xf32, #tpu.memory_space<vmem>>, vector<1x16x8xf32>
    %363 = vector.shape_cast %362 : vector<1x16x8xf32> to vector<16x8xf32>
    %364 = vector.shape_cast %363 : vector<16x8xf32> to vector<1x16x8xf32>
    %365 = vector.broadcast %364 : vector<1x16x8xf32> to vector<2x16x8xf32>
    "tpu.trace_start"() <{level = 10 : i32, message = "nik,nko->nio"}> : () -> ()
    %cst_225 = arith.constant dense<0.000000e+00> : vector<2x4x8xf32>
    %366 = tpu.matmul %337, %365, %cst_225 {dimension_numbers = #tpu.dot_dimension_numbers<[2], [1], [1], [2], [0, 0, 0, 1, 1, 2], [0], [0]>} : vector<2x4x16xf32>, vector<2x16x8xf32>, vector<2x4x8xf32> -> vector<2x4x8xf32>
    "tpu.trace_stop"() : () -> ()
    %367 = arith.addf %361, %366 : vector<2x4x8xf32>
    %c4_226 = arith.constant 4 : index
    %c0_227 = arith.constant 0 : index
    %c0_228 = arith.constant 0 : index
    %368 = vector.load %arg8[%c4_226, %c0_227, %c0_228] : memref<9x16x8xf32, #tpu.memory_space<vmem>>, vector<1x16x8xf32>
    %369 = vector.shape_cast %368 : vector<1x16x8xf32> to vector<16x8xf32>
    %370 = vector.shape_cast %369 : vector<16x8xf32> to vector<1x16x8xf32>
    %371 = vector.broadcast %370 : vector<1x16x8xf32> to vector<2x16x8xf32>
    "tpu.trace_start"() <{level = 10 : i32, message = "nik,nko->nio"}> : () -> ()
    %cst_229 = arith.constant dense<0.000000e+00> : vector<2x4x8xf32>
    %372 = tpu.matmul %337, %371, %cst_229 {dimension_numbers = #tpu.dot_dimension_numbers<[2], [1], [1], [2], [0, 0, 0, 1, 1, 2], [0], [0]>} : vector<2x4x16xf32>, vector<2x16x8xf32>, vector<2x4x8xf32> -> vector<2x4x8xf32>
    "tpu.trace_stop"() : () -> ()
    %373 = arith.addf %367, %372 : vector<2x4x8xf32>
    %c5_230 = arith.constant 5 : index
    %c0_231 = arith.constant 0 : index
    %c0_232 = arith.constant 0 : index
    %374 = vector.load %arg8[%c5_230, %c0_231, %c0_232] : memref<9x16x8xf32, #tpu.memory_space<vmem>>, vector<1x16x8xf32>
    %375 = vector.shape_cast %374 : vector<1x16x8xf32> to vector<16x8xf32>
    %376 = vector.shape_cast %375 : vector<16x8xf32> to vector<1x16x8xf32>
    %377 = vector.broadcast %376 : vector<1x16x8xf32> to vector<2x16x8xf32>
    "tpu.trace_start"() <{level = 10 : i32, message = "nik,nko->nio"}> : () -> ()
    %cst_233 = arith.constant dense<0.000000e+00> : vector<2x4x8xf32>
    %378 = tpu.matmul %337, %377, %cst_233 {dimension_numbers = #tpu.dot_dimension_numbers<[2], [1], [1], [2], [0, 0, 0, 1, 1, 2], [0], [0]>} : vector<2x4x16xf32>, vector<2x16x8xf32>, vector<2x4x8xf32> -> vector<2x4x8xf32>
    "tpu.trace_stop"() : () -> ()
    %379 = arith.addf %373, %378 : vector<2x4x8xf32>
    %c6_234 = arith.constant 6 : index
    %c0_235 = arith.constant 0 : index
    %c0_236 = arith.constant 0 : index
    %380 = vector.load %arg8[%c6_234, %c0_235, %c0_236] : memref<9x16x8xf32, #tpu.memory_space<vmem>>, vector<1x16x8xf32>
    %381 = vector.shape_cast %380 : vector<1x16x8xf32> to vector<16x8xf32>
    %382 = vector.shape_cast %381 : vector<16x8xf32> to vector<1x16x8xf32>
    %383 = vector.broadcast %382 : vector<1x16x8xf32> to vector<2x16x8xf32>
    "tpu.trace_start"() <{level = 10 : i32, message = "nik,nko->nio"}> : () -> ()
    %cst_237 = arith.constant dense<0.000000e+00> : vector<2x4x8xf32>
    %384 = tpu.matmul %342, %383, %cst_237 {dimension_numbers = #tpu.dot_dimension_numbers<[2], [1], [1], [2], [0, 0, 0, 1, 1, 2], [0], [0]>} : vector<2x4x16xf32>, vector<2x16x8xf32>, vector<2x4x8xf32> -> vector<2x4x8xf32>
    "tpu.trace_stop"() : () -> ()
    %385 = arith.addf %379, %384 : vector<2x4x8xf32>
    %c7_238 = arith.constant 7 : index
    %c0_239 = arith.constant 0 : index
    %c0_240 = arith.constant 0 : index
    %386 = vector.load %arg8[%c7_238, %c0_239, %c0_240] : memref<9x16x8xf32, #tpu.memory_space<vmem>>, vector<1x16x8xf32>
    %387 = vector.shape_cast %386 : vector<1x16x8xf32> to vector<16x8xf32>
    %388 = vector.shape_cast %387 : vector<16x8xf32> to vector<1x16x8xf32>
    %389 = vector.broadcast %388 : vector<1x16x8xf32> to vector<2x16x8xf32>
    "tpu.trace_start"() <{level = 10 : i32, message = "nik,nko->nio"}> : () -> ()
    %cst_241 = arith.constant dense<0.000000e+00> : vector<2x4x8xf32>
    %390 = tpu.matmul %342, %389, %cst_241 {dimension_numbers = #tpu.dot_dimension_numbers<[2], [1], [1], [2], [0, 0, 0, 1, 1, 2], [0], [0]>} : vector<2x4x16xf32>, vector<2x16x8xf32>, vector<2x4x8xf32> -> vector<2x4x8xf32>
    "tpu.trace_stop"() : () -> ()
    %391 = arith.addf %385, %390 : vector<2x4x8xf32>
    %c8_242 = arith.constant 8 : index
    %c0_243 = arith.constant 0 : index
    %c0_244 = arith.constant 0 : index
    %392 = vector.load %arg8[%c8_242, %c0_243, %c0_244] : memref<9x16x8xf32, #tpu.memory_space<vmem>>, vector<1x16x8xf32>
    %393 = vector.shape_cast %392 : vector<1x16x8xf32> to vector<16x8xf32>
    %394 = vector.shape_cast %393 : vector<16x8xf32> to vector<1x16x8xf32>
    %395 = vector.broadcast %394 : vector<1x16x8xf32> to vector<2x16x8xf32>
    "tpu.trace_start"() <{level = 10 : i32, message = "nik,nko->nio"}> : () -> ()
    %cst_245 = arith.constant dense<0.000000e+00> : vector<2x4x8xf32>
    %396 = tpu.matmul %342, %395, %cst_245 {dimension_numbers = #tpu.dot_dimension_numbers<[2], [1], [1], [2], [0, 0, 0, 1, 1, 2], [0], [0]>} : vector<2x4x16xf32>, vector<2x16x8xf32>, vector<2x4x8xf32> -> vector<2x4x8xf32>
    "tpu.trace_stop"() : () -> ()
    %397 = arith.addf %391, %396 : vector<2x4x8xf32>
    %c0_246 = arith.constant 0 : index
    %c0_247 = arith.constant 0 : index
    %398 = vector.load %arg12[%c0_246, %c0_247] : memref<8x8xf32, #tpu.memory_space<vmem>>, vector<8x8xf32>
    %399 = vector.shape_cast %398 : vector<8x8xf32> to vector<1x8x8xf32>
    %400 = vector.broadcast %399 : vector<1x8x8xf32> to vector<2x8x8xf32>
    "tpu.trace_start"() <{level = 10 : i32, message = "nik,nkc->nic"}> : () -> ()
    %cst_248 = arith.constant dense<0.000000e+00> : vector<2x4x8xf32>
    %401 = tpu.matmul %397, %400, %cst_248 {dimension_numbers = #tpu.dot_dimension_numbers<[2], [1], [1], [2], [0, 0, 0, 1, 1, 2], [0], [0]>} : vector<2x4x8xf32>, vector<2x8x8xf32>, vector<2x4x8xf32> -> vector<2x4x8xf32>
    "tpu.trace_stop"() : () -> ()
    %402 = arith.mulf %397, %397 : vector<2x4x8xf32>
    "tpu.trace_start"() <{level = 10 : i32, message = "nik,nkc->nic"}> : () -> ()
    %cst_249 = arith.constant dense<0.000000e+00> : vector<2x4x8xf32>
    %403 = tpu.matmul %402, %400, %cst_249 {dimension_numbers = #tpu.dot_dimension_numbers<[2], [1], [1], [2], [0, 0, 0, 1, 1, 2], [0], [0]>} : vector<2x4x8xf32>, vector<2x8x8xf32>, vector<2x4x8xf32> -> vector<2x4x8xf32>
    "tpu.trace_stop"() : () -> ()
    %cst_250 = arith.constant dense<0.000000e+00> : vector<2x8xf32>
    %404 = vector.multi_reduction <add>, %401, %cst_250 [1] : vector<2x4x8xf32> to vector<2x8xf32>
    %405 = vector.shape_cast %404 : vector<2x8xf32> to vector<2x1x8xf32>
    %cst_251 = arith.constant dense<0.000000e+00> : vector<1x8xf32>
    %406 = vector.multi_reduction <add>, %405, %cst_251 [0] : vector<2x1x8xf32> to vector<1x8xf32>
    %407 = vector.shape_cast %406 : vector<1x8xf32> to vector<1x1x8xf32>
    %cst_252 = arith.constant dense<0.000000e+00> : vector<2x8xf32>
    %408 = vector.multi_reduction <add>, %403, %cst_252 [1] : vector<2x4x8xf32> to vector<2x8xf32>
    %409 = vector.shape_cast %408 : vector<2x8xf32> to vector<2x1x8xf32>
    %cst_253 = arith.constant dense<0.000000e+00> : vector<1x8xf32>
    %410 = vector.multi_reduction <add>, %409, %cst_253 [0] : vector<2x1x8xf32> to vector<1x8xf32>
    %411 = vector.shape_cast %410 : vector<1x8xf32> to vector<1x1x8xf32>
    %cst_254 = arith.constant 1.250000e-01 : f32
    %412 = vector.broadcast %cst_254 : f32 to vector<1x1x8xf32>
    %413 = arith.mulf %407, %412 : vector<1x1x8xf32>
    %cst_255 = arith.constant 1.250000e-01 : f32
    %414 = vector.broadcast %cst_255 : f32 to vector<1x1x8xf32>
    %415 = arith.mulf %411, %414 : vector<1x1x8xf32>
    %416 = arith.mulf %413, %413 : vector<1x1x8xf32>
    %417 = arith.subf %415, %416 : vector<1x1x8xf32>
    %c0_256 = arith.constant 0 : index
    %c0_257 = arith.constant 0 : index
    %c0_258 = arith.constant 0 : index
    %418 = vector.load %arg20[%c0_256, %c0_257, %c0_258] : memref<2x1x8xf32, #tpu.memory_space<vmem>>, vector<2x1x8xf32>
    %419 = vector.extract_strided_slice %418 {offsets = [0, 0, 0], sizes = [1, 1, 8], strides = [1, 1, 1]} : vector<2x1x8xf32> to vector<1x1x8xf32>
    %cst_259 = arith.constant 9.99999974E-6 : f32
    %420 = vector.broadcast %cst_259 : f32 to vector<1x1x8xf32>
    %421 = arith.addf %417, %420 : vector<1x1x8xf32>
    %422 = math.rsqrt %421 : vector<1x1x8xf32>
    %423 = arith.mulf %419, %422 : vector<1x1x8xf32>
    %424 = vector.extract_strided_slice %418 {offsets = [1, 0, 0], sizes = [1, 1, 8], strides = [1, 1, 1]} : vector<2x1x8xf32> to vector<1x1x8xf32>
    %425 = arith.mulf %413, %423 : vector<1x1x8xf32>
    %426 = arith.subf %424, %425 : vector<1x1x8xf32>
    %c0_260 = arith.constant 0 : index
    %c0_261 = arith.constant 0 : index
    %427 = vector.load %arg16[%c0_260, %c0_261] : memref<8x8xf32, #tpu.memory_space<vmem>>, vector<8x8xf32>
    %428 = vector.shape_cast %427 : vector<8x8xf32> to vector<1x8x8xf32>
    "tpu.trace_start"() <{level = 10 : i32, message = "nmc,nck->nmk"}> : () -> ()
    %cst_262 = arith.constant dense<0.000000e+00> : vector<1x1x8xf32>
    %429 = tpu.matmul %423, %428, %cst_262 {dimension_numbers = #tpu.dot_dimension_numbers<[2], [1], [1], [2], [0, 0, 0, 1, 1, 2], [0], [0]>} : vector<1x1x8xf32>, vector<1x8x8xf32>, vector<1x1x8xf32> -> vector<1x1x8xf32>
    %cst_263 = arith.constant dense<0.000000e+00> : vector<1x1x8xf32>
    %430 = tpu.matmul %426, %428, %cst_263 {dimension_numbers = #tpu.dot_dimension_numbers<[2], [1], [1], [2], [0, 0, 0, 1, 1, 2], [0], [0]>} : vector<1x1x8xf32>, vector<1x8x8xf32>, vector<1x1x8xf32> -> vector<1x1x8xf32>
    "tpu.trace_stop"() : () -> ()
    %431 = vector.broadcast %429 : vector<1x1x8xf32> to vector<2x4x8xf32>
    %432 = arith.mulf %397, %431 : vector<2x4x8xf32>
    %433 = vector.broadcast %430 : vector<1x1x8xf32> to vector<2x4x8xf32>
    %434 = arith.addf %432, %433 : vector<2x4x8xf32>
    %cst_264 = arith.constant 0.000000e+00 : f32
    %435 = vector.broadcast %cst_264 : f32 to vector<2x4x8xf32>
    %436 = arith.maximumf %434, %435 : vector<2x4x8xf32>
    %c0_265 = arith.constant 0 : index
    %c0_266 = arith.constant 0 : index
    %437 = vector.load %arg21[%c0_265, %c0_266] : memref<8x48xf32, #tpu.memory_space<vmem>>, vector<8x48xf32>
    %438 = vector.shape_cast %437 : vector<8x48xf32> to vector<1x8x48xf32>
    %439 = vector.broadcast %438 : vector<1x8x48xf32> to vector<2x8x48xf32>
    %c0_267 = arith.constant 0 : index
    %c0_268 = arith.constant 0 : index
    %440 = vector.load %arg22[%c0_267, %c0_268] : memref<16x48xf32, #tpu.memory_space<vmem>>, vector<16x48xf32>
    %441 = vector.shape_cast %440 : vector<16x48xf32> to vector<1x16x48xf32>
    %442 = vector.broadcast %441 : vector<1x16x48xf32> to vector<2x16x48xf32>
    "tpu.trace_start"() <{level = 10 : i32, message = "ntd,ndk->ntk"}> : () -> ()
    %cst_269 = arith.constant dense<0.000000e+00> : vector<2x4x48xf32>
    %443 = tpu.matmul %436, %439, %cst_269 {dimension_numbers = #tpu.dot_dimension_numbers<[2], [1], [1], [2], [0, 0, 0, 1, 1, 2], [0], [0]>} : vector<2x4x8xf32>, vector<2x8x48xf32>, vector<2x4x48xf32> -> vector<2x4x48xf32>
    "tpu.trace_stop"() : () -> ()
    %c0_270 = arith.constant 0 : index
    %c0_271 = arith.constant 0 : index
    %c0_272 = arith.constant 0 : index
    %444 = vector.load %arg23[%c0_270, %c0_271, %c0_272] : memref<4x1x16xf32, #tpu.memory_space<vmem>>, vector<4x1x16xf32>
    %445 = vector.extract_strided_slice %444 {offsets = [0, 0, 0], sizes = [1, 1, 16], strides = [1, 1, 1]} : vector<4x1x16xf32> to vector<1x1x16xf32>
    %446 = vector.extract_strided_slice %444 {offsets = [1, 0, 0], sizes = [1, 1, 16], strides = [1, 1, 1]} : vector<4x1x16xf32> to vector<1x1x16xf32>
    %447 = vector.extract_strided_slice %444 {offsets = [2, 0, 0], sizes = [1, 1, 16], strides = [1, 1, 1]} : vector<4x1x16xf32> to vector<1x1x16xf32>
    %448 = vector.extract_strided_slice %444 {offsets = [3, 0, 0], sizes = [1, 1, 16], strides = [1, 1, 1]} : vector<4x1x16xf32> to vector<1x1x16xf32>
    %cst_273 = arith.constant 0.000000e+00 : f32
    %449 = vector.broadcast %cst_273 : f32 to vector<2x1x16xf32>
    %450 = vector.extract_strided_slice %443 {offsets = [0, 0, 0], sizes = [2, 1, 48], strides = [1, 1, 1]} : vector<2x4x48xf32> to vector<2x1x48xf32>
    "tpu.trace_start"() <{level = 10 : i32, message = "nmh,nhk->nmk"}> : () -> ()
    %cst_274 = arith.constant dense<0.000000e+00> : vector<2x1x48xf32>
    %451 = tpu.matmul %449, %442, %cst_274 {dimension_numbers = #tpu.dot_dimension_numbers<[2], [1], [1], [2], [0, 0, 0, 1, 1, 2], [0], [0]>} : vector<2x1x16xf32>, vector<2x16x48xf32>, vector<2x1x48xf32> -> vector<2x1x48xf32>
    "tpu.trace_stop"() : () -> ()
    %452 = vector.extract_strided_slice %450 {offsets = [0, 0, 0], sizes = [2, 1, 16], strides = [1, 1, 1]} : vector<2x1x48xf32> to vector<2x1x16xf32>
    %453 = vector.extract_strided_slice %451 {offsets = [0, 0, 0], sizes = [2, 1, 16], strides = [1, 1, 1]} : vector<2x1x48xf32> to vector<2x1x16xf32>
    %454 = arith.addf %452, %453 : vector<2x1x16xf32>
    %455 = vector.broadcast %445 : vector<1x1x16xf32> to vector<2x1x16xf32>
    %456 = arith.addf %454, %455 : vector<2x1x16xf32>
    %457 = arith.negf %456 : vector<2x1x16xf32>
    %458 = math.exp %457 : vector<2x1x16xf32>
    %cst_275 = arith.constant 1.000000e+00 : f32
    %459 = vector.broadcast %cst_275 : f32 to vector<2x1x16xf32>
    %460 = arith.addf %459, %458 : vector<2x1x16xf32>
    %461 = arith.divf %459, %460 : vector<2x1x16xf32>
    %462 = vector.extract_strided_slice %450 {offsets = [0, 0, 16], sizes = [2, 1, 16], strides = [1, 1, 1]} : vector<2x1x48xf32> to vector<2x1x16xf32>
    %463 = vector.extract_strided_slice %451 {offsets = [0, 0, 16], sizes = [2, 1, 16], strides = [1, 1, 1]} : vector<2x1x48xf32> to vector<2x1x16xf32>
    %464 = arith.addf %462, %463 : vector<2x1x16xf32>
    %465 = vector.broadcast %446 : vector<1x1x16xf32> to vector<2x1x16xf32>
    %466 = arith.addf %464, %465 : vector<2x1x16xf32>
    %467 = arith.negf %466 : vector<2x1x16xf32>
    %468 = math.exp %467 : vector<2x1x16xf32>
    %cst_276 = arith.constant 1.000000e+00 : f32
    %469 = vector.broadcast %cst_276 : f32 to vector<2x1x16xf32>
    %470 = arith.addf %469, %468 : vector<2x1x16xf32>
    %471 = arith.divf %469, %470 : vector<2x1x16xf32>
    %472 = vector.extract_strided_slice %450 {offsets = [0, 0, 32], sizes = [2, 1, 16], strides = [1, 1, 1]} : vector<2x1x48xf32> to vector<2x1x16xf32>
    %473 = vector.broadcast %447 : vector<1x1x16xf32> to vector<2x1x16xf32>
    %474 = arith.addf %472, %473 : vector<2x1x16xf32>
    %475 = vector.extract_strided_slice %451 {offsets = [0, 0, 32], sizes = [2, 1, 16], strides = [1, 1, 1]} : vector<2x1x48xf32> to vector<2x1x16xf32>
    %476 = vector.broadcast %448 : vector<1x1x16xf32> to vector<2x1x16xf32>
    %477 = arith.addf %475, %476 : vector<2x1x16xf32>
    %478 = arith.mulf %461, %477 : vector<2x1x16xf32>
    %479 = arith.addf %474, %478 : vector<2x1x16xf32>
    %480 = math.tanh %479 : vector<2x1x16xf32>
    %cst_277 = arith.constant 1.000000e+00 : f32
    %481 = vector.broadcast %cst_277 : f32 to vector<2x1x16xf32>
    %482 = arith.subf %481, %471 : vector<2x1x16xf32>
    %483 = arith.mulf %482, %480 : vector<2x1x16xf32>
    %484 = arith.mulf %471, %449 : vector<2x1x16xf32>
    %485 = arith.addf %483, %484 : vector<2x1x16xf32>
    %486 = vector.extract_strided_slice %443 {offsets = [0, 1, 0], sizes = [2, 1, 48], strides = [1, 1, 1]} : vector<2x4x48xf32> to vector<2x1x48xf32>
    "tpu.trace_start"() <{level = 10 : i32, message = "nmh,nhk->nmk"}> : () -> ()
    %cst_278 = arith.constant dense<0.000000e+00> : vector<2x1x48xf32>
    %487 = tpu.matmul %485, %442, %cst_278 {dimension_numbers = #tpu.dot_dimension_numbers<[2], [1], [1], [2], [0, 0, 0, 1, 1, 2], [0], [0]>} : vector<2x1x16xf32>, vector<2x16x48xf32>, vector<2x1x48xf32> -> vector<2x1x48xf32>
    "tpu.trace_stop"() : () -> ()
    %488 = vector.extract_strided_slice %486 {offsets = [0, 0, 0], sizes = [2, 1, 16], strides = [1, 1, 1]} : vector<2x1x48xf32> to vector<2x1x16xf32>
    %489 = vector.extract_strided_slice %487 {offsets = [0, 0, 0], sizes = [2, 1, 16], strides = [1, 1, 1]} : vector<2x1x48xf32> to vector<2x1x16xf32>
    %490 = arith.addf %488, %489 : vector<2x1x16xf32>
    %491 = vector.broadcast %445 : vector<1x1x16xf32> to vector<2x1x16xf32>
    %492 = arith.addf %490, %491 : vector<2x1x16xf32>
    %493 = arith.negf %492 : vector<2x1x16xf32>
    %494 = math.exp %493 : vector<2x1x16xf32>
    %cst_279 = arith.constant 1.000000e+00 : f32
    %495 = vector.broadcast %cst_279 : f32 to vector<2x1x16xf32>
    %496 = arith.addf %495, %494 : vector<2x1x16xf32>
    %497 = arith.divf %495, %496 : vector<2x1x16xf32>
    %498 = vector.extract_strided_slice %486 {offsets = [0, 0, 16], sizes = [2, 1, 16], strides = [1, 1, 1]} : vector<2x1x48xf32> to vector<2x1x16xf32>
    %499 = vector.extract_strided_slice %487 {offsets = [0, 0, 16], sizes = [2, 1, 16], strides = [1, 1, 1]} : vector<2x1x48xf32> to vector<2x1x16xf32>
    %500 = arith.addf %498, %499 : vector<2x1x16xf32>
    %501 = vector.broadcast %446 : vector<1x1x16xf32> to vector<2x1x16xf32>
    %502 = arith.addf %500, %501 : vector<2x1x16xf32>
    %503 = arith.negf %502 : vector<2x1x16xf32>
    %504 = math.exp %503 : vector<2x1x16xf32>
    %cst_280 = arith.constant 1.000000e+00 : f32
    %505 = vector.broadcast %cst_280 : f32 to vector<2x1x16xf32>
    %506 = arith.addf %505, %504 : vector<2x1x16xf32>
    %507 = arith.divf %505, %506 : vector<2x1x16xf32>
    %508 = vector.extract_strided_slice %486 {offsets = [0, 0, 32], sizes = [2, 1, 16], strides = [1, 1, 1]} : vector<2x1x48xf32> to vector<2x1x16xf32>
    %509 = vector.broadcast %447 : vector<1x1x16xf32> to vector<2x1x16xf32>
    %510 = arith.addf %508, %509 : vector<2x1x16xf32>
    %511 = vector.extract_strided_slice %487 {offsets = [0, 0, 32], sizes = [2, 1, 16], strides = [1, 1, 1]} : vector<2x1x48xf32> to vector<2x1x16xf32>
    %512 = vector.broadcast %448 : vector<1x1x16xf32> to vector<2x1x16xf32>
    %513 = arith.addf %511, %512 : vector<2x1x16xf32>
    %514 = arith.mulf %497, %513 : vector<2x1x16xf32>
    %515 = arith.addf %510, %514 : vector<2x1x16xf32>
    %516 = math.tanh %515 : vector<2x1x16xf32>
    %cst_281 = arith.constant 1.000000e+00 : f32
    %517 = vector.broadcast %cst_281 : f32 to vector<2x1x16xf32>
    %518 = arith.subf %517, %507 : vector<2x1x16xf32>
    %519 = arith.mulf %518, %516 : vector<2x1x16xf32>
    %520 = arith.mulf %507, %485 : vector<2x1x16xf32>
    %521 = arith.addf %519, %520 : vector<2x1x16xf32>
    %522 = vector.extract_strided_slice %443 {offsets = [0, 2, 0], sizes = [2, 1, 48], strides = [1, 1, 1]} : vector<2x4x48xf32> to vector<2x1x48xf32>
    "tpu.trace_start"() <{level = 10 : i32, message = "nmh,nhk->nmk"}> : () -> ()
    %cst_282 = arith.constant dense<0.000000e+00> : vector<2x1x48xf32>
    %523 = tpu.matmul %521, %442, %cst_282 {dimension_numbers = #tpu.dot_dimension_numbers<[2], [1], [1], [2], [0, 0, 0, 1, 1, 2], [0], [0]>} : vector<2x1x16xf32>, vector<2x16x48xf32>, vector<2x1x48xf32> -> vector<2x1x48xf32>
    "tpu.trace_stop"() : () -> ()
    %524 = vector.extract_strided_slice %522 {offsets = [0, 0, 0], sizes = [2, 1, 16], strides = [1, 1, 1]} : vector<2x1x48xf32> to vector<2x1x16xf32>
    %525 = vector.extract_strided_slice %523 {offsets = [0, 0, 0], sizes = [2, 1, 16], strides = [1, 1, 1]} : vector<2x1x48xf32> to vector<2x1x16xf32>
    %526 = arith.addf %524, %525 : vector<2x1x16xf32>
    %527 = vector.broadcast %445 : vector<1x1x16xf32> to vector<2x1x16xf32>
    %528 = arith.addf %526, %527 : vector<2x1x16xf32>
    %529 = arith.negf %528 : vector<2x1x16xf32>
    %530 = math.exp %529 : vector<2x1x16xf32>
    %cst_283 = arith.constant 1.000000e+00 : f32
    %531 = vector.broadcast %cst_283 : f32 to vector<2x1x16xf32>
    %532 = arith.addf %531, %530 : vector<2x1x16xf32>
    %533 = arith.divf %531, %532 : vector<2x1x16xf32>
    %534 = vector.extract_strided_slice %522 {offsets = [0, 0, 16], sizes = [2, 1, 16], strides = [1, 1, 1]} : vector<2x1x48xf32> to vector<2x1x16xf32>
    %535 = vector.extract_strided_slice %523 {offsets = [0, 0, 16], sizes = [2, 1, 16], strides = [1, 1, 1]} : vector<2x1x48xf32> to vector<2x1x16xf32>
    %536 = arith.addf %534, %535 : vector<2x1x16xf32>
    %537 = vector.broadcast %446 : vector<1x1x16xf32> to vector<2x1x16xf32>
    %538 = arith.addf %536, %537 : vector<2x1x16xf32>
    %539 = arith.negf %538 : vector<2x1x16xf32>
    %540 = math.exp %539 : vector<2x1x16xf32>
    %cst_284 = arith.constant 1.000000e+00 : f32
    %541 = vector.broadcast %cst_284 : f32 to vector<2x1x16xf32>
    %542 = arith.addf %541, %540 : vector<2x1x16xf32>
    %543 = arith.divf %541, %542 : vector<2x1x16xf32>
    %544 = vector.extract_strided_slice %522 {offsets = [0, 0, 32], sizes = [2, 1, 16], strides = [1, 1, 1]} : vector<2x1x48xf32> to vector<2x1x16xf32>
    %545 = vector.broadcast %447 : vector<1x1x16xf32> to vector<2x1x16xf32>
    %546 = arith.addf %544, %545 : vector<2x1x16xf32>
    %547 = vector.extract_strided_slice %523 {offsets = [0, 0, 32], sizes = [2, 1, 16], strides = [1, 1, 1]} : vector<2x1x48xf32> to vector<2x1x16xf32>
    %548 = vector.broadcast %448 : vector<1x1x16xf32> to vector<2x1x16xf32>
    %549 = arith.addf %547, %548 : vector<2x1x16xf32>
    %550 = arith.mulf %533, %549 : vector<2x1x16xf32>
    %551 = arith.addf %546, %550 : vector<2x1x16xf32>
    %552 = math.tanh %551 : vector<2x1x16xf32>
    %cst_285 = arith.constant 1.000000e+00 : f32
    %553 = vector.broadcast %cst_285 : f32 to vector<2x1x16xf32>
    %554 = arith.subf %553, %543 : vector<2x1x16xf32>
    %555 = arith.mulf %554, %552 : vector<2x1x16xf32>
    %556 = arith.mulf %543, %521 : vector<2x1x16xf32>
    %557 = arith.addf %555, %556 : vector<2x1x16xf32>
    %558 = vector.extract_strided_slice %443 {offsets = [0, 3, 0], sizes = [2, 1, 48], strides = [1, 1, 1]} : vector<2x4x48xf32> to vector<2x1x48xf32>
    "tpu.trace_start"() <{level = 10 : i32, message = "nmh,nhk->nmk"}> : () -> ()
    %cst_286 = arith.constant dense<0.000000e+00> : vector<2x1x48xf32>
    %559 = tpu.matmul %557, %442, %cst_286 {dimension_numbers = #tpu.dot_dimension_numbers<[2], [1], [1], [2], [0, 0, 0, 1, 1, 2], [0], [0]>} : vector<2x1x16xf32>, vector<2x16x48xf32>, vector<2x1x48xf32> -> vector<2x1x48xf32>
    "tpu.trace_stop"() : () -> ()
    %560 = vector.extract_strided_slice %558 {offsets = [0, 0, 0], sizes = [2, 1, 16], strides = [1, 1, 1]} : vector<2x1x48xf32> to vector<2x1x16xf32>
    %561 = vector.extract_strided_slice %559 {offsets = [0, 0, 0], sizes = [2, 1, 16], strides = [1, 1, 1]} : vector<2x1x48xf32> to vector<2x1x16xf32>
    %562 = arith.addf %560, %561 : vector<2x1x16xf32>
    %563 = vector.broadcast %445 : vector<1x1x16xf32> to vector<2x1x16xf32>
    %564 = arith.addf %562, %563 : vector<2x1x16xf32>
    %565 = arith.negf %564 : vector<2x1x16xf32>
    %566 = math.exp %565 : vector<2x1x16xf32>
    %cst_287 = arith.constant 1.000000e+00 : f32
    %567 = vector.broadcast %cst_287 : f32 to vector<2x1x16xf32>
    %568 = arith.addf %567, %566 : vector<2x1x16xf32>
    %569 = arith.divf %567, %568 : vector<2x1x16xf32>
    %570 = vector.extract_strided_slice %558 {offsets = [0, 0, 16], sizes = [2, 1, 16], strides = [1, 1, 1]} : vector<2x1x48xf32> to vector<2x1x16xf32>
    %571 = vector.extract_strided_slice %559 {offsets = [0, 0, 16], sizes = [2, 1, 16], strides = [1, 1, 1]} : vector<2x1x48xf32> to vector<2x1x16xf32>
    %572 = arith.addf %570, %571 : vector<2x1x16xf32>
    %573 = vector.broadcast %446 : vector<1x1x16xf32> to vector<2x1x16xf32>
    %574 = arith.addf %572, %573 : vector<2x1x16xf32>
    %575 = arith.negf %574 : vector<2x1x16xf32>
    %576 = math.exp %575 : vector<2x1x16xf32>
    %cst_288 = arith.constant 1.000000e+00 : f32
    %577 = vector.broadcast %cst_288 : f32 to vector<2x1x16xf32>
    %578 = arith.addf %577, %576 : vector<2x1x16xf32>
    %579 = arith.divf %577, %578 : vector<2x1x16xf32>
    %580 = vector.extract_strided_slice %558 {offsets = [0, 0, 32], sizes = [2, 1, 16], strides = [1, 1, 1]} : vector<2x1x48xf32> to vector<2x1x16xf32>
    %581 = vector.broadcast %447 : vector<1x1x16xf32> to vector<2x1x16xf32>
    %582 = arith.addf %580, %581 : vector<2x1x16xf32>
    %583 = vector.extract_strided_slice %559 {offsets = [0, 0, 32], sizes = [2, 1, 16], strides = [1, 1, 1]} : vector<2x1x48xf32> to vector<2x1x16xf32>
    %584 = vector.broadcast %448 : vector<1x1x16xf32> to vector<2x1x16xf32>
    %585 = arith.addf %583, %584 : vector<2x1x16xf32>
    %586 = arith.mulf %569, %585 : vector<2x1x16xf32>
    %587 = arith.addf %582, %586 : vector<2x1x16xf32>
    %588 = math.tanh %587 : vector<2x1x16xf32>
    %cst_289 = arith.constant 1.000000e+00 : f32
    %589 = vector.broadcast %cst_289 : f32 to vector<2x1x16xf32>
    %590 = arith.subf %589, %579 : vector<2x1x16xf32>
    %591 = arith.mulf %590, %588 : vector<2x1x16xf32>
    %592 = arith.mulf %579, %557 : vector<2x1x16xf32>
    %593 = arith.addf %591, %592 : vector<2x1x16xf32>
    %594 = vector.extract_strided_slice %593 {offsets = [1, 0, 0], sizes = [1, 1, 16], strides = [1, 1, 1]} : vector<2x1x16xf32> to vector<1x1x16xf32>
    %595 = vector.extract_strided_slice %593 {offsets = [0, 0, 0], sizes = [1, 1, 16], strides = [1, 1, 1]} : vector<2x1x16xf32> to vector<1x1x16xf32>
    %596 = tpu.concatenate %594, %595 in 0 : vector<1x1x16xf32>, vector<1x1x16xf32> -> vector<2x1x16xf32>
    %cst_290 = arith.constant dense<0.000000e+00> : vector<2x1xf32>
    %597 = vector.multi_reduction <add>, %596, %cst_290 [2] : vector<2x1x16xf32> to vector<2x1xf32>
    %598 = vector.shape_cast %597 : vector<2x1xf32> to vector<2x1x1xf32>
    %cst_291 = arith.constant 1.600000e+01 : f32
    %599 = vector.broadcast %cst_291 : f32 to vector<2x1x1xf32>
    %600 = arith.divf %598, %599 : vector<2x1x1xf32>
    %601 = vector.broadcast %600 : vector<2x1x1xf32> to vector<2x1x16xf32>
    %602 = arith.subf %596, %601 : vector<2x1x16xf32>
    %603 = arith.mulf %602, %602 : vector<2x1x16xf32>
    %cst_292 = arith.constant dense<0.000000e+00> : vector<2x1xf32>
    %604 = vector.multi_reduction <add>, %603, %cst_292 [2] : vector<2x1x16xf32> to vector<2x1xf32>
    %605 = vector.shape_cast %604 : vector<2x1xf32> to vector<2x1x1xf32>
    %cst_293 = arith.constant 1.500000e+01 : f32
    %606 = vector.broadcast %cst_293 : f32 to vector<2x1x1xf32>
    %607 = arith.divf %605, %606 : vector<2x1x1xf32>
    %608 = math.sqrt %607 : vector<2x1x1xf32>
    %cst_294 = arith.constant 9.99999997E-7 : f32
    %609 = vector.broadcast %cst_294 : f32 to vector<2x1x1xf32>
    %610 = arith.addf %608, %609 : vector<2x1x1xf32>
    %cst_295 = arith.constant dense<0.000000e+00> : vector<2x1xf32>
    %611 = vector.multi_reduction <add>, %593, %cst_295 [2] : vector<2x1x16xf32> to vector<2x1xf32>
    %612 = vector.shape_cast %611 : vector<2x1xf32> to vector<2x1x1xf32>
    %cst_296 = arith.constant 1.600000e+01 : f32
    %613 = vector.broadcast %cst_296 : f32 to vector<2x1x1xf32>
    %614 = arith.divf %612, %613 : vector<2x1x1xf32>
    %615 = vector.broadcast %614 : vector<2x1x1xf32> to vector<2x1x16xf32>
    %616 = arith.subf %593, %615 : vector<2x1x16xf32>
    %617 = arith.mulf %616, %616 : vector<2x1x16xf32>
    %cst_297 = arith.constant dense<0.000000e+00> : vector<2x1xf32>
    %618 = vector.multi_reduction <add>, %617, %cst_297 [2] : vector<2x1x16xf32> to vector<2x1xf32>
    %619 = vector.shape_cast %618 : vector<2x1xf32> to vector<2x1x1xf32>
    %cst_298 = arith.constant 1.500000e+01 : f32
    %620 = vector.broadcast %cst_298 : f32 to vector<2x1x1xf32>
    %621 = arith.divf %619, %620 : vector<2x1x1xf32>
    %622 = math.sqrt %621 : vector<2x1x1xf32>
    %cst_299 = arith.constant 9.99999997E-7 : f32
    %623 = vector.broadcast %cst_299 : f32 to vector<2x1x1xf32>
    %624 = arith.addf %622, %623 : vector<2x1x1xf32>
    %625 = vector.broadcast %600 : vector<2x1x1xf32> to vector<2x1x16xf32>
    %626 = arith.subf %596, %625 : vector<2x1x16xf32>
    %627 = vector.broadcast %624 : vector<2x1x1xf32> to vector<2x1x16xf32>
    %628 = arith.mulf %627, %626 : vector<2x1x16xf32>
    %629 = vector.broadcast %610 : vector<2x1x1xf32> to vector<2x1x16xf32>
    %630 = arith.divf %628, %629 : vector<2x1x16xf32>
    %631 = vector.broadcast %614 : vector<2x1x1xf32> to vector<2x1x16xf32>
    %632 = arith.addf %630, %631 : vector<2x1x16xf32>
    %c0_300 = arith.constant 0 : index
    %c0_301 = arith.constant 0 : index
    %c0_302 = arith.constant 0 : index
    %633 = vector.load %arg30[%c0_300, %c0_301, %c0_302] : memref<2x1x16xf32, #tpu.memory_space<vmem>>, vector<2x1x16xf32>
    tpu.vector_store %arg30[%c0_300, %c0_301, %c0_302], %632 {strides = array<i32>} : memref<2x1x16xf32, #tpu.memory_space<vmem>>, vector<2x1x16xf32>,
    %c0_303 = arith.constant 0 : index
    %c0_304 = arith.constant 0 : index
    %634 = vector.load %arg24[%c0_303, %c0_304] : memref<16x16xf32, #tpu.memory_space<vmem>>, vector<16x16xf32>
    %635 = vector.shape_cast %634 : vector<16x16xf32> to vector<1x16x16xf32>
    %636 = vector.broadcast %635 : vector<1x16x16xf32> to vector<2x16x16xf32>
    "tpu.trace_start"() <{level = 10 : i32, message = "nmh,nhk->nmk"}> : () -> ()
    %cst_305 = arith.constant dense<0.000000e+00> : vector<2x1x16xf32>
    %637 = tpu.matmul %632, %636, %cst_305 {dimension_numbers = #tpu.dot_dimension_numbers<[2], [1], [1], [2], [0, 0, 0, 1, 1, 2], [0], [0]>} : vector<2x1x16xf32>, vector<2x16x16xf32>, vector<2x1x16xf32> -> vector<2x1x16xf32>
    "tpu.trace_stop"() : () -> ()
    %c0_306 = arith.constant 0 : index
    %c0_307 = arith.constant 0 : index
    %c0_308 = arith.constant 0 : index
    %638 = vector.load %arg25[%c0_306, %c0_307, %c0_308] : memref<1x1x16xf32, #tpu.memory_space<vmem>>, vector<1x1x16xf32>
    %639 = vector.broadcast %638 : vector<1x1x16xf32> to vector<2x1x16xf32>
    %640 = arith.addf %637, %639 : vector<2x1x16xf32>
    %c0_309 = arith.constant 0 : index
    %c0_310 = arith.constant 0 : index
    %641 = vector.load %arg26[%c0_309, %c0_310] : memref<16x16xf32, #tpu.memory_space<vmem>>, vector<16x16xf32>
    %642 = vector.shape_cast %641 : vector<16x16xf32> to vector<1x16x16xf32>
    %643 = vector.broadcast %642 : vector<1x16x16xf32> to vector<2x16x16xf32>
    "tpu.trace_start"() <{level = 10 : i32, message = "nmh,nhk->nmk"}> : () -> ()
    %cst_311 = arith.constant dense<0.000000e+00> : vector<2x1x16xf32>
    %644 = tpu.matmul %640, %643, %cst_311 {dimension_numbers = #tpu.dot_dimension_numbers<[2], [1], [1], [2], [0, 0, 0, 1, 1, 2], [0], [0]>} : vector<2x1x16xf32>, vector<2x16x16xf32>, vector<2x1x16xf32> -> vector<2x1x16xf32>
    "tpu.trace_stop"() : () -> ()
    %c0_312 = arith.constant 0 : index
    %c0_313 = arith.constant 0 : index
    %c0_314 = arith.constant 0 : index
    %645 = vector.load %arg27[%c0_312, %c0_313, %c0_314] : memref<1x1x16xf32, #tpu.memory_space<vmem>>, vector<1x1x16xf32>
    %646 = vector.broadcast %645 : vector<1x1x16xf32> to vector<2x1x16xf32>
    %647 = arith.addf %644, %646 : vector<2x1x16xf32>
    %c0_315 = arith.constant 0 : index
    %c0_316 = arith.constant 0 : index
    %648 = vector.load %arg28[%c0_315, %c0_316] : memref<16x4xf32, #tpu.memory_space<vmem>>, vector<16x4xf32>
    %649 = vector.shape_cast %648 : vector<16x4xf32> to vector<1x16x4xf32>
    %650 = vector.broadcast %649 : vector<1x16x4xf32> to vector<2x16x4xf32>
    "tpu.trace_start"() <{level = 10 : i32, message = "nmh,nhk->nmk"}> : () -> ()
    %cst_317 = arith.constant dense<0.000000e+00> : vector<2x1x4xf32>
    %651 = tpu.matmul %647, %650, %cst_317 {dimension_numbers = #tpu.dot_dimension_numbers<[2], [1], [1], [2], [0, 0, 0, 1, 1, 2], [0], [0]>} : vector<2x1x16xf32>, vector<2x16x4xf32>, vector<2x1x4xf32> -> vector<2x1x4xf32>
    "tpu.trace_stop"() : () -> ()
    %c0_318 = arith.constant 0 : index
    %c0_319 = arith.constant 0 : index
    %c0_320 = arith.constant 0 : index
    %652 = vector.load %arg29[%c0_318, %c0_319, %c0_320] : memref<1x1x4xf32, #tpu.memory_space<vmem>>, vector<1x1x4xf32>
    %653 = vector.broadcast %652 : vector<1x1x4xf32> to vector<2x1x4xf32>
    %654 = arith.addf %651, %653 : vector<2x1x4xf32>
    %c0_321 = arith.constant 0 : index
    %c0_322 = arith.constant 0 : index
    %c0_323 = arith.constant 0 : index
    %655 = vector.load %arg31[%c0_321, %c0_322, %c0_323] : memref<2x1x4xf32, #tpu.memory_space<vmem>>, vector<2x1x4xf32>
    tpu.vector_store %arg31[%c0_321, %c0_322, %c0_323], %654 {strides = array<i32>} : memref<2x1x4xf32, #tpu.memory_space<vmem>>, vector<2x1x4xf32>,
    return
  }
}

</mosaic_0001>

<bundles_post_ra>
// kernel: style_disentangler_forward.1
= control target key start
LH: loop header
LB: loop body
LE: loop exit
PB: predicated region body
PF: predicated region fallthrough
CT: control target
= control target key end

     0   :  { %s5570_s6 = smov 1   ;;  %s5571_s10 = smov 2   ;;  %s6718_s0 = inlined_call_operand.smem [shape: u32[32], index: -1, kind: input, shape index: {}] }
   0x1   :  { %s5619_s5 = sld [smem:[%s6718_s0]]   ;;  %s5572_s14 = smov 3  }
   0x2   :  { %s5624_s9 = sld [smem:[%s6718_s0 + %s5570_s6]]   ;;  %s5573_s18 = smov 4  }
   0x3   :  { %s5629_s13 = sld [smem:[%s6718_s0 + %s5571_s10]]   ;;  %s5574_s22 = smov 5  }
   0x4   :  { %s5634_s17 = sld [smem:[%s6718_s0 + %s5572_s14]]   ;;  %s5575_s26 = smov 6  }
   0x5   :  { %s5639_s21 = sld [smem:[%s6718_s0 + %s5573_s18]]   ;;  %s5576_s30 = smov 7  }
   0x6   :  { %s5644_s25 = sld [smem:[%s6718_s0 + %s5574_s22]]   ;;  %s5577_s4 = smov 8  }
   0x7   :  { %s5649_s29 = sld [smem:[%s6718_s0 + %s5575_s26]]   ;;  %s5578_s10 = smov 9  }
   0x8   :  { %s5654_s3 = sld [smem:[%s6718_s0 + %s5576_s30]]   ;;  %s5579_s15 = smov 10  }
   0x9   :  { %s5659_s8 = sld [smem:[%s6718_s0 + %s5577_s4]]   ;;  %s5580_s20 = smov 11  }
   0xa   :  { %s5664_s14 = sld [smem:[%s6718_s0 + %s5578_s10]]   ;;  %s5581_s26 = smov 12  }
   0xb   :  { %6727 = sst [smem:[#allocation8_spill]] %s5639_s21  ;;  %s5582_s1 = smov 13  }
   0xc   :  { %s5669_s19 = sld [smem:[%s6718_s0 + %s5579_s15]]   ;;  %s5583_s7 = smov 14  }
   0xd   :  { %s5674_s24 = sld [smem:[%s6718_s0 + %s5580_s20]]   ;;  %s5584_s15 = smov 15  }
   0xe   :  { %s5679_s30 = sld [smem:[%s6718_s0 + %s5581_s26]]   ;;  %s5585_s22 = smov 16  }
   0xf   :  { %6728 = sst [smem:[#allocation9_spill]] %s5659_s8  ;;  %s5586_s28 = smov 17  }
  0x10   :  { %s5684_s6 = sld [smem:[%s6718_s0 + %s5582_s1]]  }
  0x11   :  { %s5689_s12 = sld [smem:[%s6718_s0 + %s5583_s7]]   ;;  %s5587_s7 = smov 18  }
  0x12   :  { %s5694_s20 = sld [smem:[%s6718_s0 + %s5584_s15]]   ;;  %s5588_s15 = smov 19  }
  0x13   :  { %s5699_s27 = sld [smem:[%s6718_s0 + %s5585_s22]]   ;;  %s5589_s22 = smov 20  }
  0x14   :  { %6729 = sst [smem:[#allocation10_spill]] %s5679_s30 }
  0x15   :  { %s5704_s4 = sld [smem:[%s6718_s0 + %s5586_s28]]   ;;  %s5590_s28 = smov 21  }
  0x16   :  { %s5709_s30 = sld [smem:[%s6718_s0 + %s5587_s7]]   ;;  %s5591_s7 = smov 22  }
  0x17   :  { %s5714_s8 = sld [smem:[%s6718_s0 + %s5588_s15]]   ;;  %s5592_s15 = smov 23  }
  0x18   :  { %6730 = sst [smem:[#allocation11_spill]] %s5694_s20 }
  0x19   :  { %6731 = sst [smem:[#allocation12_spill]] %s5699_s27 }
  0x1a   :  { %s5719_s27 = sld [smem:[%s6718_s0 + %s5589_s22]]   ;;  %s5593_s22 = smov 24  }
  0x1b   :  { %s5724_s21 = sld [smem:[%s6718_s0 + %s5590_s28]]   ;;  %s5594_s28 = smov 25  }
  0x1c   :  { %s5729_s20 = sld [smem:[%s6718_s0 + %s5591_s7]]   ;;  %s5595_s7 = smov 26  }
  0x1d   :  { %6732 = sst [smem:[#allocation13_spill]] %s5714_s8 }
  0x1e   :  { %s5734_s8 = sld [smem:[%s6718_s0 + %s5592_s15]]   ;;  %s5596_s15 = smov 27  }
  0x20   :  { %6733 = sst [smem:[#allocation14_spill]] %s5719_s27 }
  0x21   :  { %6734 = sst [smem:[#allocation15_spill]] %s5724_s21 }
  0x22   :  { %6735 = sst [smem:[#allocation16_spill]] %s5729_s20 }
  0x23   :  { %s5739_s27 = sld [smem:[%s6718_s0 + %s5593_s22]]   ;;  %s5597_s22 = smov 28  }
  0x24   :  { %6736 = sst [smem:[#allocation17_spill]] %s5734_s8 }
  0x25   :  { %s5744_s21 = sld [smem:[%s6718_s0 + %s5594_s28]]   ;;  %s5598_s28 = smov 29  }
  0x26   :  { %s5749_s20 = sld [smem:[%s6718_s0 + %s5595_s7]]   ;;  %s5599_s7 = smov 30  }
  0x27   :  { %s5754_s8 = sld [smem:[%s6718_s0 + %s5596_s15]]   ;;  %s5600_s15 = smov 31  }
  0x29   :  { %6737 = sst [smem:[#allocation18_spill]] %s5739_s27 }
  0x2a   :  { %s5759_s27 = sld [smem:[%s6718_s0 + %s5597_s22]]  }
  0x2b   :  { %6738 = sst [smem:[#allocation19_spill]] %s5744_s21 }
  0x2c   :  { %6739 = sst [smem:[#allocation20_spill]] %s5749_s20 }
  0x2d   :  { %6740 = sst [smem:[#allocation21_spill]] %s5754_s8 }
  0x2e   :  { %s5764_s21 = sld [smem:[%s6718_s0 + %s5598_s28]]  }
  0x2f   :  { %s5769_s20 = sld [smem:[%s6718_s0 + %s5599_s7]]  }
  0x30   :  { %s5774_s8 = sld [smem:[%s6718_s0 + %s5600_s15]]  }
  0x31   :  { %69 = vsyncpa [#allocation3], 0  ;;  %v138_v0 = vld [vmem:[%s5619_s5 + $0x38] sm:$0xff]  ;;  %v137_v2 = vld [vmem:[%s5619_s5 + $0x30] sm:$0xff] }
  0x32   :  { %v146_v1 = vld [vmem:[%s5619_s5 + $0x78] sm:$0xff]  ;;  %172 = vmatpush.msra.mxu0 %v138_v0  ;;  %v145_v3 = vld [vmem:[%s5619_s5 + $0x70] sm:$0xff]  ;;  %v136_v4 = vld [vmem:[%s5619_s5 + $0x28] sm:$0xff]  ;;  %247 = vmatpush.msra.mxu2 %v138_v0 }
  0x33   :  { %201 = vmatpush.msra.mxu1 %v146_v1  ;;  %v144_v5 = vld [vmem:[%s5619_s5 + $0x68] sm:$0xff]  ;;  %276 = vmatpush.msra.mxu3 %v146_v1  ;;  %v135_v6 = vld [vmem:[%s5619_s5 + $0x20] sm:$0xff]  ;;  %v134_v8 = vld [vmem:[%s5619_s5 + $0x18] sm:$0xff] }
  0x34   :  { %173 = vmatpush.msra.mxu0 %v137_v2  ;;  %v143_v7 = vld [vmem:[%s5619_s5 + $0x60] sm:$0xff]  ;;  %248 = vmatpush.msra.mxu2 %v137_v2  ;;  %v142_v9 = vld [vmem:[%s5619_s5 + $0x58] sm:$0xff] }
  0x35   :  { %202 = vmatpush.msra.mxu1 %v145_v3  ;;  %277 = vmatpush.msra.mxu3 %v145_v3 }
  0x36   :  { %174 = vmatpush.msra.mxu0 %v136_v4  ;;  %249 = vmatpush.msra.mxu2 %v136_v4 }
  0x37   :  { %203 = vmatpush.msra.mxu1 %v144_v5  ;;  %278 = vmatpush.msra.mxu3 %v144_v5 }
  0x38   :  { %175 = vmatpush.msra.mxu0 %v135_v6 }
  0x39   :  { %204 = vmatpush.msra.mxu1 %v143_v7 }
  0x3a   :  { %70 = vsyncpa [#allocation5], 0  ;;  %v133_v10 = vld [vmem:[%s5619_s5 + $0x10] sm:$0xff]  ;;  %250 = vmatpush.msra.mxu2 %v135_v6  ;;  %279 = vmatpush.msra.mxu3 %v143_v7  ;;  %v132_v12 = vld [vmem:[%s5619_s5 + $0x8] sm:$0xff]  ;;  %vm151_vm0 = vcmask 523264   ;;  %vm385_vm1 = vcmask 392192  }
  0x3b   :  { %v141_v11 = vld [vmem:[%s5619_s5 + $0x50] sm:$0xff]  ;;  %176 = vmatpush.msra.mxu0 %v134_v8  ;;  %205 = vmatpush.msra.mxu1 %v142_v9  ;;  %v140_v13 = vld [vmem:[%s5619_s5 + $0x48] sm:$0xff]  ;;  %v131_v14 = vld [vmem:[%s5619_s5] sm:$0xff]  ;;  %vm1089_vm2 = vcmask 261120   ;;  %vm1262_vm3 = vcmask 31744   ;;  %vm1345_vm4 = vcmask 1043456  }
  0x3c   :  { %251 = vmatpush.msra.mxu2 %v134_v8  ;;  %280 = vmatpush.msra.mxu3 %v142_v9  ;;  %v139_v15 = vld [vmem:[%s5619_s5 + $0x40] sm:$0xff]  ;;  %v148_v18 = vld [vmem:[%s5624_s9 + $0x8] sm:$0xff]  ;;  %v149_v20 = vld [vmem:[%s5624_s9 + $0x10] sm:$0xff]  ;;  %vm2106_vm8 = vcmask 130048   ;;  %vm3001_vm12 = vcmask 64512   ;;  %s6741_s0 = sld [smem:[#allocation11_spill]] }
  0x3d   :  { %177 = vmatpush.msra.mxu0 %v133_v10  ;;  %206 = vmatpush.msra.mxu1 %v141_v11  ;;  %v147_v16 = vld [vmem:[%s5624_s9] sm:$0xff]  ;;  %v4988_v19 = vld [vmem:[%s5624_s9 + $0x28] sm:$0xff]  ;;  %v4989_v21 = vld [vmem:[%s5624_s9 + $0x30] sm:$0xff]  ;;  %s6742_s5 = sld [smem:[#allocation13_spill]]  ;;  %s4918_s28 = sshll.u32 %s5769_s20, 4  ;;  %s4919_s28 = int_to_ptr.hbm [resolvable:$true] %s4918_s28 }
  0x3e   :  { %252 = vmatpush.msra.mxu2 %v133_v10  ;;  %281 = vmatpush.msra.mxu3 %v141_v11  ;;  %v4987_v17 = vld [vmem:[%s5624_s9 + $0x20] sm:$0xff]  ;;  %v5016_v22 = vld [vmem:[%s5644_s25 + $0x58] sm:$0xff]  ;;  %v377_v23 = vld [vmem:[%s5644_s25 + $0x28] sm:$0xff]  ;;  %s6752_s22 = sld [smem:[#allocation20_spill]]  ;;  %s5608_s1 = smov [#allocation2]  }
  0x3f   :  { %178 = vmatpush.msra.mxu0 %v132_v12  ;;  %207 = vmatpush.msra.mxu1 %v140_v13  ;;  %v5015_v24 = vld [vmem:[%s5644_s25 + $0x50] sm:$0xff]  ;;  %v376_v25 = vld [vmem:[%s5644_s25 + $0x20] sm:$0xff]  ;;  %v150_v26 = vld [vmem:[%s5624_s9 + $0x18] sm:$0xff]  ;;  %s6753_s23 = sld [smem:[#allocation19_spill]]  ;;  %s4916_s2 = sshll.u32 %s5608_s1, 4  ;;  %s4917_s2 = int_to_ptr.vmem [resolvable:$true] %s4916_s2 }
  0x40   :  { %253 = vmatpush.msra.mxu2 %v132_v12  ;;  %282 = vmatpush.msra.mxu3 %v140_v13  ;;  %v4990_v27 = vld [vmem:[%s5624_s9 + $0x38] sm:$0xff]  ;;  %v5014_v28 = vld [vmem:[%s5644_s25 + $0x48] sm:$0xff]  ;;  %v5013_v30 = vld [vmem:[%s5644_s25 + $0x40] sm:$0xff]  ;;  %s6754_s26 = sld [smem:[#allocation21_spill]]  ;;  %s5534_s10 = scalar_lea.hbm %s5769_s20, 2 }
  0x41   :  { %179 = vmatpush.msra.mxu0 %v131_v14  ;;  %208 = vmatpush.msra.mxu1 %v139_v15  ;;  %v375_v29 = vld [vmem:[%s5644_s25 + $0x18] sm:$0xff]  ;;  %v374_v31 = vld [vmem:[%s5644_s25 + $0x10] sm:$0xff]  ;;  %v373_v33 = vld [vmem:[%s5644_s25 + $0x8] sm:$0xff] }
  0x42   :  { %4979 = vmatmul.msk.f32.vlgmr.msra.gmra.mxu0 %vm151_vm0, %v147_v16  ;;  %4983 = vmatmul.msk.f32.vlgmr.msra.gmra.mxu1 %vm151_vm0, %v147_v16  ;;  %v5012_v32 = vld [vmem:[%s5644_s25 + $0x38] sm:$0xff]  ;;  %v4999_v34 = vld [vmem:[%s5624_s9 + $0x40] sm:$0xff]  ;;  %v5000_v35 = vld [vmem:[%s5624_s9 + $0x48] sm:$0xff] }
  0x43   :  { %254 = vmatpush.msra.mxu2 %v131_v14  ;;  %283 = vmatpush.msra.mxu3 %v139_v15  ;;  %v5001_v36 = vld [vmem:[%s5624_s9 + $0x50] sm:$0xff]  ;;  %v5002_v37 = vld [vmem:[%s5624_s9 + $0x58] sm:$0xff]  ;;  %v372_v39 = vld [vmem:[%s5644_s25] sm:$0xff]  ;;  %s6743_s9 = sld [smem:[#allocation8_spill]] }
  0x44   :  { %4991 = vmatmul.msk.f32.vlgmr.msra.gmra.mxu2 %vm151_vm0, %v4987_v17  ;;  %4995 = vmatmul.msk.f32.vlgmr.msra.gmra.mxu3 %vm151_vm0, %v4987_v17  ;;  %v5011_v38 = vld [vmem:[%s5644_s25 + $0x30] sm:$0xff]  ;;  %v5038_v40 = vld [vmem:[%s5644_s25 + $0x88] sm:$0xff]  ;;  %v5052_v41 = vld [vmem:[%s5644_s25 + $0xb8] sm:$0xff] }
  0x45   :  { %322 = vmatpush.msrb.mxu0 %v138_v0  ;;  %351 = vmatpush.msrb.mxu1 %v146_v1  ;;  %v5037_v42 = vld [vmem:[%s5644_s25 + $0x80] sm:$0xff]  ;;  %v5051_v43 = vld [vmem:[%s5644_s25 + $0xb0] sm:$0xff]  ;;  %v5036_v44 = vld [vmem:[%s5644_s25 + $0x78] sm:$0xff] }
  0x46   :  { %408 = vmatpush.msrb.mxu2 %v5016_v22  ;;  %449 = vmatpush.msrb.mxu3 %v5016_v22  ;;  %v5050_v45 = vld [vmem:[%s5644_s25 + $0xa8] sm:$0xff]  ;;  %v5035_v46 = vld [vmem:[%s5644_s25 + $0x70] sm:$0xff]  ;;  %v5049_v47 = vld [vmem:[%s5644_s25 + $0xa0] sm:$0xff] }
  0x47   :  { %323 = vmatpush.msrb.mxu0 %v137_v2  ;;  %352 = vmatpush.msrb.mxu1 %v145_v3  ;;  %v5034_v48 = vld [vmem:[%s5644_s25 + $0x68] sm:$0xff]  ;;  %v5048_v49 = vld [vmem:[%s5644_s25 + $0x98] sm:$0xff]  ;;  %v5033_v52 = vld [vmem:[%s5644_s25 + $0x60] sm:$0xff] }
  0x48   :  { %409 = vmatpush.msrb.mxu2 %v5015_v24  ;;  %450 = vmatpush.msrb.mxu3 %v5015_v24  ;;  %v5047_v53 = vld [vmem:[%s5644_s25 + $0x90] sm:$0xff]  ;;  %v5066_v58 = vld [vmem:[%s5644_s25 + $0xe8] sm:$0xff]  ;;  %v5080_v59 = vld [vmem:[%s5644_s25 + $0x118] sm:$0xff] }
  0x49   :  { %324 = vmatpush.msrb.mxu0 %v136_v4  ;;  %353 = vmatpush.msrb.mxu1 %v144_v5  ;;  %v5065_v60 = vld [vmem:[%s5644_s25 + $0xe0] sm:$0xff]  ;;  %v5079_v61 = vld [vmem:[%s5644_s25 + $0x110] sm:$0xff]  ;;  %v5064_v2 = vld [vmem:[%s5644_s25 + $0xd8] sm:$0xff] }
  0x4a   :  { %4980 = vmatmul.msk.f32.gmra.mxu0 %vm151_vm0, %v148_v18  ;;  %4984 = vmatmul.msk.f32.gmra.mxu1 %vm151_vm0, %v148_v18  ;;  %v5078_v3 = vld [vmem:[%s5644_s25 + $0x108] sm:$0xff]  ;;  %v5063_v4 = vld [vmem:[%s5644_s25 + $0xd0] sm:$0xff]  ;;  %v5077_v5 = vld [vmem:[%s5644_s25 + $0x100] sm:$0xff] }
  0x4b   :  { %325 = vmatpush.msrb.mxu0 %v135_v6  ;;  %354 = vmatpush.msrb.mxu1 %v143_v7  ;;  %v5062_v6 = vld [vmem:[%s5644_s25 + $0xc8] sm:$0xff]  ;;  %v5076_v7 = vld [vmem:[%s5644_s25 + $0xf8] sm:$0xff]  ;;  %v5093_v16 = vld [vmem:[%s5644_s25 + $0x140] sm:$0xff] }
  0x4c   :  { %4992 = vmatmul.msk.f32.gmra.mxu2 %vm151_vm0, %v4988_v19  ;;  %4996 = vmatmul.msk.f32.gmra.mxu3 %vm151_vm0, %v4988_v19  ;;  %v5107_v17 = vld [vmem:[%s5644_s25 + $0x170] sm:$0xff]  ;;  %v5090_v24 = vld [vmem:[%s5644_s25 + $0x128] sm:$0xff] }
  0x4d   :  { %326 = vmatpush.msrb.mxu0 %v134_v8  ;;  %355 = vmatpush.msrb.mxu1 %v142_v9  ;;  %v5061_v8 = vld [vmem:[%s5644_s25 + $0xc0] sm:$0xff]  ;;  %v5075_v9 = vld [vmem:[%s5644_s25 + $0xf0] sm:$0xff] }
  0x4e   :  { %410 = vmatpush.msrb.mxu2 %v5014_v28  ;;  %451 = vmatpush.msrb.mxu3 %v5014_v28  ;;  %v5091_v22 = vld [vmem:[%s5644_s25 + $0x130] sm:$0xff]  ;;  %v5122_v28 = vld [vmem:[%s5644_s25 + $0x1a8] sm:$0xff] }
  0x4f   :  { %327 = vmatpush.msrb.mxu0 %v133_v10  ;;  %356 = vmatpush.msrb.mxu1 %v141_v11 }
  0x50   :  { %411 = vmatpush.msrb.mxu2 %v5013_v30  ;;  %452 = vmatpush.msrb.mxu3 %v5013_v30 }
  0x51   :  { %328 = vmatpush.msrb.mxu0 %v132_v12  ;;  %357 = vmatpush.msrb.mxu1 %v140_v13 }
  0x52   :  { %4981 = vmatmul.msk.f32.gmra.mxu0 %vm151_vm0, %v149_v20  ;;  %4985 = vmatmul.msk.f32.gmra.mxu1 %vm151_vm0, %v149_v20  ;;  %v5092_v20 = vld [vmem:[%s5644_s25 + $0x138] sm:$0xff] }
  0x53   :  { %329 = vmatpush.msrb.mxu0 %v131_v14  ;;  %358 = vmatpush.msrb.mxu1 %v139_v15  ;;  %v5094_v14 = vld [vmem:[%s5644_s25 + $0x148] sm:$0xff]  ;;  %v5108_v15 = vld [vmem:[%s5644_s25 + $0x178] sm:$0xff] }
  0x54   :  { %4993 = vmatmul.msk.f32.gmra.mxu2 %vm151_vm0, %v4989_v21  ;;  %4997 = vmatmul.msk.f32.gmra.mxu3 %vm151_vm0, %v4989_v21  ;;  %v5106_v21 = vld [vmem:[%s5644_s25 + $0x168] sm:$0xff] }
  0x55   :  { %478 = vmatpush.msra.mxu0 %v377_v23  ;;  %507 = vmatpush.msra.mxu1 %v377_v23  ;;  %v5105_v23 = vld [vmem:[%s5644_s25 + $0x160] sm:$0xff] }
  0x56   :  { %412 = vmatpush.msrb.mxu2 %v5012_v32  ;;  %453 = vmatpush.msrb.mxu3 %v5012_v32  ;;  %v5120_v32 = vld [vmem:[%s5644_s25 + $0x198] sm:$0xff] }
  0x57   :  { %479 = vmatpush.msra.mxu0 %v376_v25  ;;  %508 = vmatpush.msra.mxu1 %v376_v25  ;;  %v5104_v25 = vld [vmem:[%s5644_s25 + $0x158] sm:$0xff] }
  0x58   :  { %413 = vmatpush.msrb.mxu2 %v5011_v38  ;;  %454 = vmatpush.msrb.mxu3 %v5011_v38 }
  0x59   :  { %480 = vmatpush.msra.mxu0 %v375_v29  ;;  %509 = vmatpush.msra.mxu1 %v375_v29  ;;  %v5121_v29 = vld [vmem:[%s5644_s25 + $0x1a0] sm:$0xff] }
  0x5a   :  { %4982 = vmatmul.msk.f32.gmra.mxu0 %vm151_vm0, %v150_v26  ;;  %4986 = vmatmul.msk.f32.gmra.mxu1 %vm151_vm0, %v150_v26  ;;  %v5089_v26 = vld [vmem:[%s5644_s25 + $0x120] sm:$0xff] }
  0x5b   :  { %481 = vmatpush.msra.mxu0 %v374_v31  ;;  %510 = vmatpush.msra.mxu1 %v374_v31 }
  0x5c   :  { %4994 = vmatmul.msk.f32.gmra.mxu2 %vm151_vm0, %v4990_v27  ;;  %4998 = vmatmul.msk.f32.gmra.mxu3 %vm151_vm0, %v4990_v27  ;;  %v5103_v27 = vld [vmem:[%s5644_s25 + $0x150] sm:$0xff] }
  0x5d   :  { %482 = vmatpush.msra.mxu0 %v373_v33  ;;  %511 = vmatpush.msra.mxu1 %v373_v33  ;;  %v5119_v33 = vld [vmem:[%s5644_s25 + $0x190] sm:$0xff] }
  0x5e   :  { %543 = vmatpush.msra.mxu2 %v5038_v40  ;;  %572 = vmatpush.msra.mxu3 %v5038_v40 }
  0x5f   :  { %483 = vmatpush.msra.mxu0 %v372_v39  ;;  %512 = vmatpush.msra.mxu1 %v372_v39 }
  0x60   :  { %544 = vmatpush.msra.mxu2 %v5037_v42  ;;  %573 = vmatpush.msra.mxu3 %v5037_v42 }
  0x62   :  { %5003 = vmatmul.msk.f32.vlgmr.msrb.gmra.mxu0 %vm151_vm0, %v4999_v34  ;;  %5007 = vmatmul.msk.f32.vlgmr.msrb.gmra.mxu1 %vm151_vm0, %v4999_v34  ;;  %v5118_v34 = vld [vmem:[%s5644_s25 + $0x188] sm:$0xff] }
  0x63   :  { %628 = vmatpush.msrb.mxu0 %v5052_v41  ;;  %669 = vmatpush.msrb.mxu1 %v5052_v41 }
  0x64   :  { %545 = vmatpush.msra.mxu2 %v5036_v44  ;;  %574 = vmatpush.msra.mxu3 %v5036_v44 }
  0x65   :  { %629 = vmatpush.msrb.mxu0 %v5051_v43  ;;  %670 = vmatpush.msrb.mxu1 %v5051_v43 }
  0x66   :  { %546 = vmatpush.msra.mxu2 %v5035_v46  ;;  %575 = vmatpush.msra.mxu3 %v5035_v46 }
  0x67   :  { %630 = vmatpush.msrb.mxu0 %v5050_v45  ;;  %671 = vmatpush.msrb.mxu1 %v5050_v45 }
  0x68   :  { %547 = vmatpush.msra.mxu2 %v5034_v48  ;;  %576 = vmatpush.msra.mxu3 %v5034_v48 }
  0x69   :  { %631 = vmatpush.msrb.mxu0 %v5049_v47  ;;  %672 = vmatpush.msrb.mxu1 %v5049_v47 }
  0x6a   :  { %5004 = vmatmul.msk.f32.gmra.mxu0 %vm151_vm0, %v5000_v35  ;;  %5008 = vmatmul.msk.f32.gmra.mxu1 %vm151_vm0, %v5000_v35  ;;  %v5117_v35 = vld [vmem:[%s5644_s25 + $0x180] sm:$0xff]  ;;  %s6746_s25 = sld [smem:[#allocation12_spill]] }
  0x6b   :  { %632 = vmatpush.msrb.mxu0 %v5048_v49  ;;  %673 = vmatpush.msrb.mxu1 %v5048_v49 }
  0x6c   :  { %548 = vmatpush.msra.mxu2 %v5033_v52  ;;  %577 = vmatpush.msra.mxu3 %v5033_v52 }
  0x6d   :  { %633 = vmatpush.msrb.mxu0 %v5047_v53  ;;  %674 = vmatpush.msrb.mxu1 %v5047_v53 }
  0x72   :  { %5005 = vmatmul.msk.f32.gmra.mxu0 %vm151_vm0, %v5001_v36  ;;  %5009 = vmatmul.msk.f32.gmra.mxu1 %vm151_vm0, %v5001_v36 }
  0x7a   :  { %5006 = vmatmul.msk.f32.gmra.mxu0 %vm151_vm0, %v5002_v37  ;;  %5010 = vmatmul.msk.f32.gmra.mxu1 %vm151_vm0, %v5002_v37  ;;  %vm3758_vm0 = vcmask 60416  }
  0xbf   :  { %v5850_v50 = vpop.f32.mrf.mxu0  ;;  %v5852_v51 = vpop.f32.mrf.mxu1 }
  0xc0   :  { %5017 = vmatmul.msk.f32.vlgmr.msrb.gmra.mxu2 %vm385_vm1, %v5850_v50  ;;  %5021 = vmatmul.msk.f32.vlgmr.msrb.gmra.mxu3 %vm385_vm1, %v5852_v51 }
  0xc1   :  { %5025 = vmatmul.msk.f32.vlgmr.msra.gmra.mxu0 %vm385_vm1, %v5850_v50  ;;  %5029 = vmatmul.msk.f32.vlgmr.msra.gmra.mxu1 %vm385_vm1, %v5852_v51 }
  0xc2   :  { %713 = vmatpush.msrb.mxu2 %v5066_v58  ;;  %742 = vmatpush.msrb.mxu3 %v5066_v58 }
  0xc3   :  { %786 = vmatpush.msra.mxu0 %v5080_v59  ;;  %815 = vmatpush.msra.mxu1 %v5080_v59 }
  0xc4   :  { %714 = vmatpush.msrb.mxu2 %v5065_v60  ;;  %743 = vmatpush.msrb.mxu3 %v5065_v60 }
  0xc5   :  { %787 = vmatpush.msra.mxu0 %v5079_v61  ;;  %816 = vmatpush.msra.mxu1 %v5079_v61 }
  0xc6   :  { %715 = vmatpush.msrb.mxu2 %v5064_v2  ;;  %744 = vmatpush.msrb.mxu3 %v5064_v2 }
  0xc7   :  { %v184_v54 = vpop.f32.mrf.mxu0  ;;  %v213_v55 = vpop.f32.mrf.mxu1  ;;  %788 = vmatpush.msra.mxu0 %v5078_v3  ;;  %817 = vmatpush.msra.mxu1 %v5078_v3 }
  0xc8   :  { %5018 = vmatmul.msk.f32.gmra.mxu2 %vm385_vm1, %v184_v54  ;;  %5022 = vmatmul.msk.f32.gmra.mxu3 %vm385_vm1, %v213_v55  ;;  %v5878_v0 = vpop.f32.mrf.mxu2  ;;  %v5880_v1 = vpop.f32.mrf.mxu3 }
  0xc9   :  { %5026 = vmatmul.msk.f32.gmra.mxu0 %vm385_vm1, %v184_v54  ;;  %5030 = vmatmul.msk.f32.gmra.mxu1 %vm385_vm1, %v213_v55 }
  0xca   :  { %716 = vmatpush.msrb.mxu2 %v5063_v4  ;;  %745 = vmatpush.msrb.mxu3 %v5063_v4 }
  0xcb   :  { %789 = vmatpush.msra.mxu0 %v5077_v5  ;;  %818 = vmatpush.msra.mxu1 %v5077_v5 }
  0xcc   :  { %717 = vmatpush.msrb.mxu2 %v5062_v6  ;;  %746 = vmatpush.msrb.mxu3 %v5062_v6 }
  0xcd   :  { %790 = vmatpush.msra.mxu0 %v5076_v7  ;;  %819 = vmatpush.msra.mxu1 %v5076_v7 }
  0xce   :  { %718 = vmatpush.msrb.mxu2 %v5061_v8  ;;  %747 = vmatpush.msrb.mxu3 %v5061_v8 }
  0xcf   :  { %v187_v56 = vpop.f32.mrf.mxu0  ;;  %v216_v57 = vpop.f32.mrf.mxu1  ;;  %791 = vmatpush.msra.mxu0 %v5075_v9  ;;  %820 = vmatpush.msra.mxu1 %v5075_v9 }
  0xd0   :  { %5019 = vmatmul.msk.f32.gmra.mxu2 %vm385_vm1, %v187_v56  ;;  %5023 = vmatmul.msk.f32.gmra.mxu3 %vm385_vm1, %v216_v57  ;;  %v5900_v10 = vpop.f32.mrf.mxu2  ;;  %v5902_v11 = vpop.f32.mrf.mxu3 }
  0xd1   :  { %5027 = vmatmul.msk.f32.gmra.mxu0 %vm385_vm1, %v187_v56  ;;  %5031 = vmatmul.msk.f32.gmra.mxu1 %vm385_vm1, %v216_v57 }
  0xd7   :  { %v190_v62 = vpop.f32.mrf.mxu0  ;;  %v219_v63 = vpop.f32.mrf.mxu1 }
  0xd8   :  { %5020 = vmatmul.msk.f32.gmra.mxu2 %vm385_vm1, %v190_v62  ;;  %5024 = vmatmul.msk.f32.gmra.mxu3 %vm385_vm1, %v219_v63  ;;  %v262_v12 = vpop.f32.mrf.mxu2  ;;  %v291_v13 = vpop.f32.mrf.mxu3 }
  0xd9   :  { %5028 = vmatmul.msk.f32.gmra.mxu0 %vm385_vm1, %v190_v62  ;;  %5032 = vmatmul.msk.f32.gmra.mxu1 %vm385_vm1, %v219_v63 }
  0xdf   :  { %v331_v30 = vpop.f32.mrf.mxu0  ;;  %v360_v31 = vpop.f32.mrf.mxu1 }
  0xe0   :  { %5039 = vmatmul.msk.f32.vlgmr.msra.gmra.mxu2 %vm385_vm1, %v5850_v50  ;;  %5043 = vmatmul.msk.f32.vlgmr.msra.gmra.mxu3 %vm385_vm1, %v5852_v51  ;;  %v265_v18 = vpop.f32.mrf.mxu2  ;;  %v294_v19 = vpop.f32.mrf.mxu3 }
  0xe1   :  { %5053 = vmatmul.msk.f32.vlgmr.msrb.gmra.mxu0 %vm385_vm1, %v5878_v0  ;;  %5057 = vmatmul.msk.f32.vlgmr.msrb.gmra.mxu1 %vm385_vm1, %v5880_v1 }
  0xe2   :  { %871 = vmatpush.msra.mxu2 %v5094_v14  ;;  %912 = vmatpush.msra.mxu3 %v5094_v14 }
  0xe3   :  { %956 = vmatpush.msrb.mxu0 %v5108_v15  ;;  %985 = vmatpush.msrb.mxu1 %v5108_v15 }
  0xe4   :  { %872 = vmatpush.msra.mxu2 %v5093_v16  ;;  %913 = vmatpush.msra.mxu3 %v5093_v16 }
  0xe5   :  { %957 = vmatpush.msrb.mxu0 %v5107_v17  ;;  %986 = vmatpush.msrb.mxu1 %v5107_v17 }
  0xe6   :  { %873 = vmatpush.msra.mxu2 %v5092_v20  ;;  %914 = vmatpush.msra.mxu3 %v5092_v20 }
  0xe7   :  { %958 = vmatpush.msrb.mxu0 %v5106_v21  ;;  %987 = vmatpush.msrb.mxu1 %v5106_v21  ;;  %v334_v36 = vpop.f32.mrf.mxu0  ;;  %v363_v37 = vpop.f32.mrf.mxu1 }
  0xe8   :  { %5040 = vmatmul.msk.f32.gmra.mxu2 %vm385_vm1, %v184_v54  ;;  %5044 = vmatmul.msk.f32.gmra.mxu3 %vm385_vm1, %v213_v55 }
  0xe9   :  { %5054 = vmatmul.msk.f32.gmra.mxu0 %vm385_vm1, %v5900_v10  ;;  %5058 = vmatmul.msk.f32.gmra.mxu1 %vm385_vm1, %v5902_v11 }
  0xea   :  { %874 = vmatpush.msra.mxu2 %v5091_v22  ;;  %915 = vmatpush.msra.mxu3 %v5091_v22  ;;  %v1088_v22 = vld [vmem:[%s5664_s14 + $0x18] sm:$0xff] }
  0xeb   :  { %959 = vmatpush.msrb.mxu0 %v5105_v23  ;;  %988 = vmatpush.msrb.mxu1 %v5105_v23  ;;  %v1087_v23 = vld [vmem:[%s5664_s14 + $0x10] sm:$0xff] }
  0xec   :  { %875 = vmatpush.msra.mxu2 %v5090_v24  ;;  %916 = vmatpush.msra.mxu3 %v5090_v24 }
  0xed   :  { %960 = vmatpush.msrb.mxu0 %v5104_v25  ;;  %989 = vmatpush.msrb.mxu1 %v5104_v25 }
  0xee   :  { %876 = vmatpush.msra.mxu2 %v5089_v26  ;;  %917 = vmatpush.msra.mxu3 %v5089_v26  ;;  %v1086_v26 = vld [vmem:[%s5664_s14 + $0x8] sm:$0xff] }
  0xef   :  { %961 = vmatpush.msrb.mxu0 %v5103_v27  ;;  %990 = vmatpush.msrb.mxu1 %v5103_v27  ;;  %v337_v38 = vpop.f32.mrf.mxu0  ;;  %v366_v39 = vpop.f32.mrf.mxu1  ;;  %v1085_v27 = vld [vmem:[%s5664_s14] sm:$0xff]  ;;  %s6749_s14 = sld [smem:[#allocation14_spill]] }
  0xf0   :  { %5041 = vmatmul.msk.f32.gmra.mxu2 %vm385_vm1, %v187_v56  ;;  %5045 = vmatmul.msk.f32.gmra.mxu3 %vm385_vm1, %v216_v57 }
  0xf1   :  { %5055 = vmatmul.msk.f32.gmra.mxu0 %vm385_vm1, %v262_v12  ;;  %5059 = vmatmul.msk.f32.gmra.mxu1 %vm385_vm1, %v291_v13 }
  0xf7   :  { %v340_v40 = vpop.f32.mrf.mxu0  ;;  %v369_v41 = vpop.f32.mrf.mxu1 }
  0xf8   :  { %5042 = vmatmul.msk.f32.gmra.mxu2 %vm385_vm1, %v190_v62  ;;  %5046 = vmatmul.msk.f32.gmra.mxu3 %vm385_vm1, %v219_v63 }
  0xf9   :  { %5056 = vmatmul.msk.f32.gmra.mxu0 %vm385_vm1, %v265_v18  ;;  %5060 = vmatmul.msk.f32.gmra.mxu1 %vm385_vm1, %v294_v19 }
 0x100   :  { %5067 = vmatmul.msk.f32.vlgmr.msrb.gmra.mxu2 %vm385_vm1, %v5878_v0  ;;  %5071 = vmatmul.msk.f32.vlgmr.msrb.gmra.mxu3 %vm385_vm1, %v5880_v1 }
 0x101   :  { %5081 = vmatmul.msk.f32.vlgmr.msra.gmra.mxu0 %vm385_vm1, %v5878_v0  ;;  %5085 = vmatmul.msk.f32.vlgmr.msra.gmra.mxu1 %vm385_vm1, %v5880_v1 }
 0x102   :  { %1029 = vmatpush.msrb.mxu2 %v5122_v28  ;;  %1058 = vmatpush.msrb.mxu3 %v5122_v28 }
 0x103   :  { %1114 = vmatpush.msra.mxu0 %v1088_v22  ;;  %1155 = vmatpush.msra.mxu1 %v1088_v22 }
 0x104   :  { %1030 = vmatpush.msrb.mxu2 %v5121_v29  ;;  %1059 = vmatpush.msrb.mxu3 %v5121_v29 }
 0x105   :  { %1115 = vmatpush.msra.mxu0 %v1087_v23  ;;  %1156 = vmatpush.msra.mxu1 %v1087_v23 }
 0x106   :  { %1031 = vmatpush.msrb.mxu2 %v5120_v32  ;;  %1060 = vmatpush.msrb.mxu3 %v5120_v32 }
 0x107   :  { %1116 = vmatpush.msra.mxu0 %v1086_v26  ;;  %1157 = vmatpush.msra.mxu1 %v1086_v26 }
 0x108   :  { %5068 = vmatmul.msk.f32.gmra.mxu2 %vm385_vm1, %v5900_v10  ;;  %5072 = vmatmul.msk.f32.gmra.mxu3 %vm385_vm1, %v5902_v11 }
 0x109   :  { %5082 = vmatmul.msk.f32.gmra.mxu0 %vm385_vm1, %v5900_v10  ;;  %5086 = vmatmul.msk.f32.gmra.mxu1 %vm385_vm1, %v5902_v11 }
 0x10a   :  { %1032 = vmatpush.msrb.mxu2 %v5119_v33  ;;  %1061 = vmatpush.msrb.mxu3 %v5119_v33 }
 0x10b   :  { %1117 = vmatpush.msra.mxu0 %v1085_v27  ;;  %1158 = vmatpush.msra.mxu1 %v1085_v27 }
 0x10c   :  { %1033 = vmatpush.msrb.mxu2 %v5118_v34  ;;  %1062 = vmatpush.msrb.mxu3 %v5118_v34 }
 0x10e   :  { %1034 = vmatpush.msrb.mxu2 %v5117_v35  ;;  %1063 = vmatpush.msrb.mxu3 %v5117_v35 }
 0x110   :  { %5069 = vmatmul.msk.f32.gmra.mxu2 %vm385_vm1, %v262_v12  ;;  %5073 = vmatmul.msk.f32.gmra.mxu3 %vm385_vm1, %v291_v13 }
 0x111   :  { %5083 = vmatmul.msk.f32.gmra.mxu0 %vm385_vm1, %v262_v12  ;;  %5087 = vmatmul.msk.f32.gmra.mxu1 %vm385_vm1, %v291_v13 }
 0x118   :  { %5070 = vmatmul.msk.f32.gmra.mxu2 %vm385_vm1, %v265_v18  ;;  %5074 = vmatmul.msk.f32.gmra.mxu3 %vm385_vm1, %v294_v19 }
 0x119   :  { %5084 = vmatmul.msk.f32.gmra.mxu0 %vm385_vm1, %v265_v18  ;;  %5088 = vmatmul.msk.f32.gmra.mxu1 %vm385_vm1, %v294_v19 }
 0x120   :  { %5095 = vmatmul.msk.f32.vlgmr.msra.gmra.mxu2 %vm385_vm1, %v331_v30  ;;  %5099 = vmatmul.msk.f32.vlgmr.msra.gmra.mxu3 %vm385_vm1, %v360_v31 }
 0x121   :  { %5109 = vmatmul.msk.f32.vlgmr.msrb.gmra.mxu0 %vm385_vm1, %v331_v30  ;;  %5113 = vmatmul.msk.f32.vlgmr.msrb.gmra.mxu1 %vm385_vm1, %v360_v31 }
 0x122   :  { %1204 = vmatpush.msra.mxu2 %v1088_v22  ;;  %1245 = vmatpush.msra.mxu3 %v1088_v22 }
 0x124   :  { %1205 = vmatpush.msra.mxu2 %v1087_v23  ;;  %1246 = vmatpush.msra.mxu3 %v1087_v23 }
 0x126   :  { %1206 = vmatpush.msra.mxu2 %v1086_v26  ;;  %1247 = vmatpush.msra.mxu3 %v1086_v26 }
 0x128   :  { %5096 = vmatmul.msk.f32.gmra.mxu2 %vm385_vm1, %v334_v36  ;;  %5100 = vmatmul.msk.f32.gmra.mxu3 %vm385_vm1, %v363_v37 }
 0x129   :  { %5110 = vmatmul.msk.f32.gmra.mxu0 %vm385_vm1, %v334_v36  ;;  %5114 = vmatmul.msk.f32.gmra.mxu1 %vm385_vm1, %v363_v37 }
 0x12a   :  { %1207 = vmatpush.msra.mxu2 %v1085_v27  ;;  %1248 = vmatpush.msra.mxu3 %v1085_v27 }
 0x130   :  { %5097 = vmatmul.msk.f32.gmra.mxu2 %vm385_vm1, %v337_v38  ;;  %5101 = vmatmul.msk.f32.gmra.mxu3 %vm385_vm1, %v366_v39 }
 0x131   :  { %5111 = vmatmul.msk.f32.gmra.mxu0 %vm385_vm1, %v337_v38  ;;  %5115 = vmatmul.msk.f32.gmra.mxu1 %vm385_vm1, %v366_v39 }
 0x138   :  { %5098 = vmatmul.msk.f32.gmra.mxu2 %vm385_vm1, %v340_v40  ;;  %5102 = vmatmul.msk.f32.gmra.mxu3 %vm385_vm1, %v369_v41 }
 0x139   :  { %5112 = vmatmul.msk.f32.gmra.mxu0 %vm385_vm1, %v340_v40  ;;  %5116 = vmatmul.msk.f32.gmra.mxu1 %vm385_vm1, %v369_v41 }
 0x13e   :  { %v5978_v42 = vpop.f32.mrf.mxu0  ;;  %v5980_v43 = vpop.f32.mrf.mxu1 }
 0x140   :  { %5123 = vmatmul.msk.f32.vlgmr.msrb.gmra.mxu2 %vm385_vm1, %v331_v30  ;;  %5127 = vmatmul.msk.f32.vlgmr.msrb.gmra.mxu3 %vm385_vm1, %v360_v31 }
 0x143   :  { %v5982_v44 = vpop.f32.mrf.mxu2  ;;  %v5984_v45 = vpop.f32.mrf.mxu3 }
 0x144   :  { %v486_v32 = vadd.f32 %v5978_v42, %v5982_v44  ;;  %v515_v33 = vadd.f32 %v5980_v43, %v5984_v45 }
 0x146   :  { %v5992_v48 = vpop.f32.mrf.mxu0  ;;  %v5994_v49 = vpop.f32.mrf.mxu1 }
 0x148   :  { %5124 = vmatmul.msk.f32.gmra.mxu2 %vm385_vm1, %v334_v36  ;;  %5128 = vmatmul.msk.f32.gmra.mxu3 %vm385_vm1, %v363_v37 }
 0x14b   :  { %v5988_v46 = vpop.f32.mrf.mxu2  ;;  %v5990_v47 = vpop.f32.mrf.mxu3 }
 0x14c   :  { %v489_v22 = vadd.f32 %v5992_v48, %v5988_v46  ;;  %v518_v42 = vadd.f32 %v5994_v49, %v5990_v47 }
 0x14e   :  { %v6002_v52 = vpop.f32.mrf.mxu0  ;;  %v6004_v53 = vpop.f32.mrf.mxu1 }
 0x150   :  { %5125 = vmatmul.msk.f32.gmra.mxu2 %vm385_vm1, %v337_v38  ;;  %5129 = vmatmul.msk.f32.gmra.mxu3 %vm385_vm1, %v366_v39 }
 0x153   :  { %v5998_v50 = vpop.f32.mrf.mxu2  ;;  %v6000_v51 = vpop.f32.mrf.mxu3 }
 0x154   :  { %v492_v49 = vadd.f32 %v6002_v52, %v5998_v50 }
 0x156   :  { %v6012_v56 = vpop.f32.mrf.mxu0  ;;  %v6014_v57 = vpop.f32.mrf.mxu1 }
 0x158   :  { %5126 = vmatmul.msk.f32.gmra.mxu2 %vm385_vm1, %v340_v40  ;;  %5130 = vmatmul.msk.f32.gmra.mxu3 %vm385_vm1, %v369_v41 }
 0x15b   :  { %v6008_v54 = vpop.f32.mrf.mxu2  ;;  %v6010_v55 = vpop.f32.mrf.mxu3 }
 0x15e   :  { %v635_v60 = vpop.f32.mrf.mxu0  ;;  %v676_v61 = vpop.f32.mrf.mxu1 }
 0x163   :  { %v550_v58 = vpop.f32.mrf.mxu2  ;;  %v579_v59 = vpop.f32.mrf.mxu3 }
 0x164   :  { %v591_v36 = vadd.f32 %v550_v58, %v486_v32  ;;  %v595_v37 = vadd.f32 %v579_v59, %v515_v33 }
 0x166   :  { %v6024_v2 = vpop.f32.mrf.mxu0  ;;  %v6026_v3 = vpop.f32.mrf.mxu1  ;;  %v688_v40 = vadd.f32 %v635_v60, %v591_v36  ;;  %v692_v41 = vadd.f32 %v676_v61, %v595_v37 }
 0x16b   :  { %v6016_v62 = vpop.f32.mrf.mxu2  ;;  %v6018_v63 = vpop.f32.mrf.mxu3 }
 0x16c   :  { %v592_v45 = vadd.f32 %v6016_v62, %v489_v22  ;;  %v596_v23 = vadd.f32 %v6018_v63, %v518_v42  ;;  %v521_v62 = vadd.f32 %v6004_v53, %v6000_v51 }
 0x16e   :  { %v6032_v6 = vpop.f32.mrf.mxu0  ;;  %v6034_v7 = vpop.f32.mrf.mxu1  ;;  %v689_v32 = vadd.f32 %v6024_v2, %v592_v45  ;;  %v693_v46 = vadd.f32 %v6026_v3, %v596_v23 }
 0x173   :  { %v6020_v0 = vpop.f32.mrf.mxu2  ;;  %v6022_v1 = vpop.f32.mrf.mxu3 }
 0x176   :  { %v6036_v10 = vpop.f32.mrf.mxu0  ;;  %v6038_v11 = vpop.f32.mrf.mxu1 }
 0x17b   :  { %v6028_v4 = vpop.f32.mrf.mxu2  ;;  %v6030_v5 = vpop.f32.mrf.mxu3 }
 0x17e   :  { %v793_v14 = vpop.f32.mrf.mxu0  ;;  %v822_v15 = vpop.f32.mrf.mxu1 }
 0x183   :  { %v720_v8 = vpop.f32.mrf.mxu2  ;;  %v749_v9 = vpop.f32.mrf.mxu3 }
 0x184   :  { %v761_v44 = vadd.f32 %v720_v8, %v688_v40  ;;  %v765_v43 = vadd.f32 %v749_v9, %v692_v41  ;;  %v593_v9 = vadd.f32 %v6020_v0, %v492_v49 }
 0x186   :  { %v796_v20 = vpop.f32.mrf.mxu0  ;;  %v6052_v21 = vpop.f32.mrf.mxu1  ;;  %v834_v60 = vadd.f32 %v793_v14, %v761_v44  ;;  %v838_v61 = vadd.f32 %v822_v15, %v765_v43  ;;  %v597_v14 = vadd.f32 %v6022_v1, %v521_v62  ;;  %v690_v51 = vadd.f32 %v6032_v6, %v593_v9 }
 0x187   :  { %v495_v6 = vadd.f32 %v6012_v56, %v6008_v54 }
 0x188   :  { %v694_v53 = vadd.f32 %v6034_v7, %v597_v14  ;;  %v524_v7 = vadd.f32 %v6014_v57, %v6010_v55 }
 0x18a   :  { %v598_v37 = vadd.f32 %v6030_v5, %v524_v7 }
 0x18b   :  { %v6040_v12 = vpop.f32.mrf.mxu2  ;;  %v6042_v13 = vpop.f32.mrf.mxu3 }
 0x18c   :  { %v762_v63 = vadd.f32 %v6040_v12, %v689_v32  ;;  %v766_v8 = vadd.f32 %v6042_v13, %v693_v46  ;;  %v695_v42 = vadd.f32 %v6038_v11, %v598_v37 }
 0x18e   :  { %v6058_v28 = vpop.f32.mrf.mxu0  ;;  %v6060_v29 = vpop.f32.mrf.mxu1  ;;  %v835_v33 = vadd.f32 %v796_v20, %v762_v63 }
 0x193   :  { %v6044_v16 = vpop.f32.mrf.mxu2  ;;  %v6046_v17 = vpop.f32.mrf.mxu3 }
 0x196   :  { %v6066_v34 = vpop.f32.mrf.mxu0  ;;  %v6068_v35 = vpop.f32.mrf.mxu1 }
 0x19b   :  { %v6048_v18 = vpop.f32.mrf.mxu2  ;;  %v6050_v19 = vpop.f32.mrf.mxu3 }
 0x19e   :  { %v963_v58 = vpop.f32.mrf.mxu0  ;;  %v992_v59 = vpop.f32.mrf.mxu1 }
 0x1a3   :  { %v878_v24 = vpop.f32.mrf.mxu2  ;;  %v919_v25 = vpop.f32.mrf.mxu3 }
 0x1a4   :  { %v931_v48 = vadd.f32 %v878_v24, %v834_v60  ;;  %v935_v47 = vadd.f32 %v919_v25, %v838_v61  ;;  %v839_v25 = vadd.f32 %v6052_v21, %v766_v8  ;;  %v763_v21 = vadd.f32 %v6044_v16, %v690_v51 }
 0x1a6   :  { %v1004_v15 = vadd.f32 %v963_v58, %v931_v48  ;;  %v1008_v2 = vadd.f32 %v992_v59, %v935_v47  ;;  %v966_v12 = vpop.f32.mrf.mxu0  ;;  %v995_v0 = vpop.f32.mrf.mxu1  ;;  %v836_v22 = vadd.f32 %v6058_v28, %v763_v21 }
 0x1ab   :  { %v881_v30 = vpop.f32.mrf.mxu2  ;;  %v922_v31 = vpop.f32.mrf.mxu3 }
 0x1ac   :  { %v932_v13 = vadd.f32 %v881_v30, %v835_v33  ;;  %v936_v1 = vadd.f32 %v922_v31, %v839_v25  ;;  %v767_v30 = vadd.f32 %v6046_v17, %v694_v53  ;;  %v594_v31 = vadd.f32 %v6028_v4, %v495_v6 }
 0x1ae   :  { %v1005_v40 = vadd.f32 %v966_v12, %v932_v13  ;;  %v1009_v41 = vadd.f32 %v995_v0, %v936_v1  ;;  %v840_v55 = vadd.f32 %v6060_v29, %v767_v30  ;;  %v691_v17 = vadd.f32 %v6036_v10, %v594_v31  ;;  %v969_v29 = vpop.f32.mrf.mxu0  ;;  %v998_v11 = vpop.f32.mrf.mxu1 }
 0x1b0   :  { %v764_v10 = vadd.f32 %v6048_v18, %v691_v17 }
 0x1b2   :  { %v837_v45 = vadd.f32 %v6066_v34, %v764_v10 }
 0x1b3   :  { %v6070_v38 = vpop.f32.mrf.mxu2  ;;  %v6072_v39 = vpop.f32.mrf.mxu3 }
 0x1b4   :  { %v933_v4 = vadd.f32 %v6070_v38, %v836_v22  ;;  %v937_v5 = vadd.f32 %v6072_v39, %v840_v55  ;;  %v768_v38 = vadd.f32 %v6050_v19, %v695_v42 }
 0x1b6   :  { %v1006_v39 = vadd.f32 %v969_v29, %v933_v4  ;;  %v1010_v43 = vadd.f32 %v998_v11, %v937_v5  ;;  %v841_v59 = vadd.f32 %v6068_v35, %v768_v38  ;;  %v972_v34 = vpop.f32.mrf.mxu0  ;;  %v1001_v35 = vpop.f32.mrf.mxu1 }
 0x1bb   :  { %v6080_v26 = vpop.f32.mrf.mxu2  ;;  %v6082_v27 = vpop.f32.mrf.mxu3 }
 0x1bc   :  { %v934_v18 = vadd.f32 %v6080_v26, %v837_v45  ;;  %v938_v19 = vadd.f32 %v6082_v27, %v841_v59 }
 0x1be   :  { %v1007_v26 = vadd.f32 %v972_v34, %v934_v18  ;;  %v1011_v27 = vadd.f32 %v1001_v35, %v938_v19 }
 0x1c3   :  { %v1036_v3 = vpop.f32.mrf.mxu2  ;;  %v1065_v24 = vpop.f32.mrf.mxu3 }
 0x1c4   :  { %v6095_v50 = vadd.f32 %v1036_v3, %v1004_v15  ;;  %v6097_v52 = vadd.f32 %v1065_v24, %v1008_v2 }
 0x1c6   :  { %v1172_v20 = vmul.f32 %v6095_v50, %v6095_v50  ;;  %v1176_v36 = vmul.f32 %v6097_v52, %v6097_v52  ;;  %5131 = vmatmul.msk.f32.vlgmr.msra.gmra.mxu0 %vm1089_vm2, %v6095_v50  ;;  %5135 = vmatmul.msk.f32.vlgmr.msra.gmra.mxu1 %vm1089_vm2, %v6097_v52 }
 0x1c8   :  { %5139 = vmatmul.msk.f32.vlgmr.msra.gmra.mxu2 %vm1089_vm2, %v1172_v20  ;;  %5143 = vmatmul.msk.f32.vlgmr.msra.gmra.mxu3 %vm1089_vm2, %v1176_v36 }
 0x1cb   :  { %v1039_v54 = vpop.f32.mrf.mxu2  ;;  %v1068_v56 = vpop.f32.mrf.mxu3 }
 0x1cc   :  { %v6121_v57 = vadd.f32 %v1039_v54, %v1005_v40  ;;  %v6123_v16 = vadd.f32 %v1068_v56, %v1009_v41 }
 0x1ce   :  { %v1173_v44 = vmul.f32 %v6121_v57, %v6121_v57  ;;  %v1177_v28 = vmul.f32 %v6123_v16, %v6123_v16  ;;  %5132 = vmatmul.msk.f32.gmra.mxu0 %vm1089_vm2, %v6121_v57  ;;  %5136 = vmatmul.msk.f32.gmra.mxu1 %vm1089_vm2, %v6123_v16 }
 0x1d0   :  { %5140 = vmatmul.msk.f32.gmra.mxu2 %vm1089_vm2, %v1173_v44  ;;  %5144 = vmatmul.msk.f32.gmra.mxu3 %vm1089_vm2, %v1177_v28 }
 0x1d3   :  { %v1042_v23 = vpop.f32.mrf.mxu2  ;;  %v1071_v58 = vpop.f32.mrf.mxu3 }
 0x1d4   :  { %v6143_v60 = vadd.f32 %v1042_v23, %v1006_v39  ;;  %v6145_v61 = vadd.f32 %v1071_v58, %v1010_v43 }
 0x1d6   :  { %v1174_v32 = vmul.f32 %v6143_v60, %v6143_v60  ;;  %v1178_v46 = vmul.f32 %v6145_v61, %v6145_v61  ;;  %5133 = vmatmul.msk.f32.gmra.mxu0 %vm1089_vm2, %v6143_v60  ;;  %5137 = vmatmul.msk.f32.gmra.mxu1 %vm1089_vm2, %v6145_v61 }
 0x1d8   :  { %5141 = vmatmul.msk.f32.gmra.mxu2 %vm1089_vm2, %v1174_v32  ;;  %5145 = vmatmul.msk.f32.gmra.mxu3 %vm1089_vm2, %v1178_v46 }
 0x1db   :  { %v1045_v48 = vpop.f32.mrf.mxu2  ;;  %v1074_v47 = vpop.f32.mrf.mxu3 }
 0x1dc   :  { %v6159_v49 = vadd.f32 %v1045_v48, %v1007_v26  ;;  %v6161_v62 = vadd.f32 %v1074_v47, %v1011_v27 }
 0x1de   :  { %v1175_v63 = vmul.f32 %v6159_v49, %v6159_v49  ;;  %v1179_v8 = vmul.f32 %v6161_v62, %v6161_v62  ;;  %5134 = vmatmul.msk.f32.gmra.mxu0 %vm1089_vm2, %v6159_v49  ;;  %5138 = vmatmul.msk.f32.gmra.mxu1 %vm1089_vm2, %v6161_v62 }
 0x1e0   :  { %5142 = vmatmul.msk.f32.gmra.mxu2 %vm1089_vm2, %v1175_v63  ;;  %5146 = vmatmul.msk.f32.gmra.mxu3 %vm1089_vm2, %v1179_v8 }
 0x243   :  { %v1119_v9 = vpop.f32.mrf.mxu0  ;;  %v1160_v14 = vpop.f32.mrf.mxu1 }
 0x244   :  { %v1263_v13 = vsel %vm1262_vm3, %v1119_v9, 0.0  ;;  %v1276_v1 = vsel %vm1262_vm3, %v1160_v14, 0.0 }
 0x24b   :  { %v1122_v15 = vpop.f32.mrf.mxu0  ;;  %v1163_v2 = vpop.f32.mrf.mxu1 }
 0x24c   :  { %v1209_v33 = vpop.f32.mrf.mxu2  ;;  %v1250_v3 = vpop.f32.mrf.mxu3  ;;  %v1264_v12 = vsel %vm1262_vm3, %v1122_v15, 0.0  ;;  %v1277_v0 = vsel %vm1262_vm3, %v1163_v2, 0.0 }
 0x24d   :  { %v1265_v6 = vadd.f32 %v1264_v12, %v1263_v13  ;;  %v1278_v7 = vadd.f32 %v1277_v0, %v1276_v1  ;;  %v1292_v44 = vsel %vm1262_vm3, %v1209_v33, 0.0  ;;  %v1305_v28 = vsel %vm1262_vm3, %v1250_v3, 0.0  ;;  %v1341_v33 = vld [vmem:[%s5684_s6] sm:$0xf]  ;;  %s5604_s6 = smov 16  }
 0x24e   :  { %5147 = vmatpush.msk.msrb.mxu0 %vm1345_vm4, %v1341_v33  ;;  %5149 = vmatpush.msk.msrb.mxu1 %vm1345_vm4, %v1341_v33  ;;  %v1419_v33 = vld [vmem:[%s5629_s13 + $0x8] sm:$0xff] }
 0x253   :  { %v1125_v24 = vpop.f32.mrf.mxu0  ;;  %v1166_v25 = vpop.f32.mrf.mxu1 }
 0x254   :  { %v1212_v51 = vpop.f32.mrf.mxu2  ;;  %v1253_v53 = vpop.f32.mrf.mxu3  ;;  %v1266_v20 = vsel %vm1262_vm3, %v1125_v24, 0.0  ;;  %v1279_v36 = vsel %vm1262_vm3, %v1166_v25, 0.0 }
 0x255   :  { %v1267_v21 = vadd.f32 %v1266_v20, %v1265_v6  ;;  %v1280_v30 = vadd.f32 %v1279_v36, %v1278_v7  ;;  %v1293_v17 = vsel %vm1262_vm3, %v1212_v51, 0.0  ;;  %v1306_v42 = vsel %vm1262_vm3, %v1253_v53, 0.0 }
 0x256   :  { %v1294_v39 = vadd.f32 %v1293_v17, %v1292_v44  ;;  %v1307_v43 = vadd.f32 %v1306_v42, %v1305_v28  ;;  %v1325_v42 = vld [vmem:[%s5704_s4] sm:$0x1]  ;;  %v1326_v28 = vld [vmem:[%s5704_s4 + $0x1] sm:$0x1]  ;;  %s6751_s4 = sld [smem:[#allocation18_spill]] }
 0x25b   :  { %v1128_v31 = vpop.f32.mrf.mxu0  ;;  %v1169_v37 = vpop.f32.mrf.mxu1 }
 0x25c   :  { %v1268_v40 = vsel %vm1262_vm3, %v1128_v31, 0.0  ;;  %v1281_v41 = vsel %vm1262_vm3, %v1169_v37, 0.0  ;;  %v1215_v22 = vpop.f32.mrf.mxu2  ;;  %v1256_v54 = vpop.f32.mrf.mxu3 }
 0x25d   :  { %v1269_v56 = vadd.f32 %v1268_v40, %v1267_v21  ;;  %v1282_v55 = vadd.f32 %v1281_v41, %v1280_v30  ;;  %v1295_v11 = vsel %vm1262_vm3, %v1215_v22, 0.0  ;;  %v1308_v38 = vsel %vm1262_vm3, %v1256_v54, 0.0 }
 0x25e   :  { %v1296_v58 = vadd.f32 %v1295_v11, %v1294_v39  ;;  %v1309_v59 = vadd.f32 %v1308_v38, %v1307_v43 }
 0x25f   :  { %v1270_v4 = vrot.slane %v1269_v56, 4  ;;  %v1283_v5 = vrot.slane %v1282_v55, 4 }
 0x261   :  { %v1271_v10 = vadd.f32 %v1270_v4, %v1269_v56  ;;  %v1284_v29 = vadd.f32 %v1283_v5, %v1282_v55 }
 0x263   :  { %v1272_v45 = vrot.slane %v1271_v10, 2  ;;  %v1285_v23 = vrot.slane %v1284_v29, 2 }
 0x264   :  { %v1218_v18 = vpop.f32.mrf.mxu2  ;;  %v1259_v19 = vpop.f32.mrf.mxu3 }
 0x265   :  { %v1273_v32 = vadd.f32 %v1272_v45, %v1271_v10  ;;  %v1286_v46 = vadd.f32 %v1285_v23, %v1284_v29  ;;  %v1297_v34 = vsel %vm1262_vm3, %v1218_v18, 0.0  ;;  %v1310_v35 = vsel %vm1262_vm3, %v1259_v19, 0.0 }
 0x266   :  { %v1298_v26 = vadd.f32 %v1297_v34, %v1296_v58  ;;  %v1311_v27 = vadd.f32 %v1310_v35, %v1309_v59 }
 0x267   :  { %v1274_v48 = vrot.slane %v1273_v32, 1  ;;  %v1287_v47 = vrot.slane %v1286_v46, 1 }
 0x268   :  { %v1299_v63 = vrot.slane %v1298_v26, 4  ;;  %v1312_v8 = vrot.slane %v1311_v27, 4 }
 0x269   :  { %v1275_v9 = vadd.f32 %v1274_v48, %v1273_v32  ;;  %v1288_v14 = vadd.f32 %v1287_v47, %v1286_v46 }
 0x26a   :  { %v1300_v15 = vadd.f32 %v1299_v63, %v1298_v26  ;;  %v1313_v2 = vadd.f32 %v1312_v8, %v1311_v27 }
 0x26b   :  { %v1289_v3 = vsel %vm1262_vm3, %v1275_v9, 0.0  ;;  %v1290_v24 = vsel %vm1262_vm3, %v1288_v14, 0.0  ;;  %v1418_v9 = vld [vmem:[%s5629_s13] sm:$0xff]  ;;  %v5155_v14 = vld [vmem:[%s5629_s13 + $0x10] sm:$0xff] }
 0x26c   :  { %v1301_v25 = vrot.slane %v1300_v15, 2  ;;  %v1314_v51 = vrot.slane %v1313_v2, 2  ;;  %v1291_v0 = vadd.f32 %v1290_v24, %v1289_v3  ;;  %v1585_v3 = vld [vmem:[%s5649_s29 + $0x18] sm:$0xff] }
 0x26d   :  { %v5156_v24 = vld [vmem:[%s5629_s13 + $0x18] sm:$0xff] }
 0x26e   :  { %v1302_v53 = vadd.f32 %v1301_v25, %v1300_v15  ;;  %v1315_v12 = vadd.f32 %v1314_v51, %v1313_v2  ;;  %v1321_v6 = vmul.f32 0.001953125, %v1291_v0  ;;  %v5170_v15 = vld [vmem:[%s5649_s29 + $0x38] sm:$0xff]  ;;  %v5169_v2 = vld [vmem:[%s5649_s29 + $0x30] sm:$0xff]  ;;  %v5168_v51 = vld [vmem:[%s5649_s29 + $0x28] sm:$0xff] }
 0x26f   :  { %v1584_v25 = vld [vmem:[%s5649_s29 + $0x10] sm:$0xff]  ;;  %v5162_v0 = vld [vmem:[%s5629_s13 + $0x28] sm:$0xff] }
 0x270   :  { %v1303_v13 = vrot.slane %v1302_v53, 1  ;;  %v1316_v1 = vrot.slane %v1315_v12, 1  ;;  %v1323_v31 = vmul.f32 %v1321_v6, %v1321_v6 }
 0x272   :  { %v1304_v20 = vadd.f32 %v1303_v13, %v1302_v53  ;;  %v1317_v36 = vadd.f32 %v1316_v1, %v1315_v12  ;;  %v1583_v53 = vld [vmem:[%s5649_s29 + $0x8] sm:$0xff]  ;;  %v5161_v12 = vld [vmem:[%s5629_s13 + $0x20] sm:$0xff]  ;;  %s6744_s13 = sld [smem:[#allocation9_spill]] }
 0x273   :  { %v5167_v13 = vld [vmem:[%s5649_s29 + $0x20] sm:$0xff] }
 0x274   :  { %v1318_v7 = vsel %vm1262_vm3, %v1304_v20, 0.0  ;;  %v1319_v21 = vsel %vm1262_vm3, %v1317_v36, 0.0  ;;  %v1582_v1 = vld [vmem:[%s5649_s29] sm:$0xff]  ;;  %v5182_v20 = vld [vmem:[%s5649_s29 + $0x58] sm:$0xff] }
 0x275   :  { %v1320_v30 = vadd.f32 %v1319_v21, %v1318_v7  ;;  %v5190_v36 = vld [vmem:[%s5649_s29 + $0x78] sm:$0xff]  ;;  %v5189_v7 = vld [vmem:[%s5649_s29 + $0x70] sm:$0xff]  ;;  %v5180_v21 = vld [vmem:[%s5649_s29 + $0x48] sm:$0xff] }
 0x277   :  { %v1322_v37 = vmul.f32 0.001953125, %v1320_v30  ;;  %v5188_v30 = vld [vmem:[%s5649_s29 + $0x68] sm:$0xff] }
 0x279   :  { %v1324_v40 = vsub.f32 %v1322_v37, %v1323_v31  ;;  %v5179_v31 = vld [vmem:[%s5649_s29 + $0x40] sm:$0xff] }
 0x27a   :  { %v5187_v37 = vld [vmem:[%s5649_s29 + $0x60] sm:$0xff] }
 0x27b   :  { %v1327_v41 = vadd.f32 1e-05, %v1324_v40 }
 0x27d   :  { %5418 = vrsqrt.f32 %v1327_v41  ;;  %vm1334_vm6 = vweird.f32 %v1327_v41 }
 0x283   :  { %v5419_v22 = vpop.eup %5418 }
 0x284   :  { %v1329_v54 = vmul.f32 %v5419_v22, %v1327_v41  ;;  %vm1335_vm5 = vweird.f32 %v5419_v22 }
 0x285   :  { %vm1336_vm7 = vmor %vm1334_vm6, %vm1335_vm5 }
 0x286   :  { %v1330_v56 = vmul.f32 %v5419_v22, %v1329_v54  ;;  %v5206_v54 = vld [vmem:[%s5649_s29 + $0xb8] sm:$0xff] }
 0x288   :  { %v1331_v55 = vmul.f32 0.5, %v1330_v56  ;;  %v5197_v56 = vld [vmem:[%s5649_s29 + $0x90] sm:$0xff] }
 0x28a   :  { %v1332_v17 = vsub.f32 1.5, %v1331_v55  ;;  %v5205_v55 = vld [vmem:[%s5649_s29 + $0xb0] sm:$0xff] }
 0x28c   :  { %v1333_v4 = vmul.f32 %v5419_v22, %v1332_v17  ;;  %v5196_v17 = vld [vmem:[%s5649_s29 + $0x88] sm:$0xff] }
 0x28e   :  { %v1337_v5 = vsel %vm1336_vm7, %v5419_v22, %v1333_v4  ;;  %v5198_v22 = vld [vmem:[%s5649_s29 + $0x98] sm:$0xff] }
 0x28f   :  { %v1338_v44 = vmul.f32 %v1337_v5, %v1325_v42  ;;  %v5204_v42 = vld [vmem:[%s5649_s29 + $0xa8] sm:$0xff] }
 0x291   :  { %5148 = vmatmul.msk.f32.vlgmr.msrb.gmra.mxu0 %vm1262_vm3, %v1338_v44  ;;  %v1339_v10 = vmul.f32 %v1338_v44, %v1321_v6  ;;  %v5181_v6 = vld [vmem:[%s5649_s29 + $0x50] sm:$0xff]  ;;  %v5195_v44 = vld [vmem:[%s5649_s29 + $0x80] sm:$0xff] }
 0x293   :  { %v1340_v29 = vsub.f32 %v1326_v28, %v1339_v10  ;;  %v5203_v28 = vld [vmem:[%s5649_s29 + $0xa0] sm:$0xff] }
 0x295   :  { %5150 = vmatmul.msk.f32.vlgmr.msrb.gmra.mxu1 %vm1262_vm3, %v1340_v29 }
 0x30e   :  { %v1366_v11 = vpop.f32.mrf.mxu0 }
 0x30f   :  { %v1392_v38 = vperm.slane %v1366_v11, 0  ;;  %v5214_v11 = vld [vmem:[%s5649_s29 + $0xd8] sm:$0xff] }
 0x311   :  { %v1396_v43 = vmul.f32 %v1392_v38, %v6159_v49  ;;  %v1400_v23 = vmul.f32 %v1392_v38, %v6161_v62  ;;  %v1395_v58 = vmul.f32 %v1392_v38, %v6143_v60  ;;  %v1399_v59 = vmul.f32 %v1392_v38, %v6145_v61 }
 0x312   :  { %v1389_v39 = vpop.f32.mrf.mxu1  ;;  %v1394_v18 = vmul.f32 %v1392_v38, %v6121_v57  ;;  %v1398_v19 = vmul.f32 %v1392_v38, %v6123_v16  ;;  %v1393_v26 = vmul.f32 %v1392_v38, %v6095_v50  ;;  %v1397_v27 = vmul.f32 %v1392_v38, %v6097_v52  ;;  %v5222_v38 = vld [vmem:[%s5649_s29 + $0xf8] sm:$0xff] }
 0x313   :  { %v1401_v45 = vperm.slane %v1389_v39, 0  ;;  %v5213_v39 = vld [vmem:[%s5649_s29 + $0xd0] sm:$0xff] }
 0x315   :  { %v1405_v32 = vadd.f32 %v1401_v45, %v1396_v43  ;;  %v1409_v46 = vadd.f32 %v1401_v45, %v1400_v23  ;;  %v1404_v34 = vadd.f32 %v1401_v45, %v1395_v58  ;;  %v1408_v35 = vadd.f32 %v1401_v45, %v1399_v59  ;;  %v5221_v43 = vld [vmem:[%s5649_s29 + $0xf0] sm:$0xff]  ;;  %v5220_v23 = vld [vmem:[%s5649_s29 + $0xe8] sm:$0xff] }
 0x316   :  { %v1403_v47 = vadd.f32 %v1401_v45, %v1394_v18  ;;  %v1407_v62 = vadd.f32 %v1401_v45, %v1398_v19  ;;  %v1402_v63 = vadd.f32 %v1401_v45, %v1393_v26  ;;  %v1406_v57 = vadd.f32 %v1401_v45, %v1397_v27  ;;  %v5212_v45 = vld [vmem:[%s5649_s29 + $0xc8] sm:$0xff]  ;;  %v5211_v18 = vld [vmem:[%s5649_s29 + $0xc0] sm:$0xff] }
 0x317   :  { %v1413_v49 = vmax.f32 %v1405_v32, 0.0  ;;  %v1417_v48 = vmax.f32 %v1409_v46, 0.0  ;;  %v1412_v60 = vmax.f32 %v1404_v34, 0.0  ;;  %v1416_v61 = vmax.f32 %v1408_v35, 0.0  ;;  %v5219_v19 = vld [vmem:[%s5649_s29 + $0xe0] sm:$0xff]  ;;  %v5230_v32 = vld [vmem:[%s5649_s29 + $0x118] sm:$0xff] }
 0x318   :  { %v1411_v16 = vmax.f32 %v1403_v47, 0.0  ;;  %v1415_v50 = vmax.f32 %v1407_v62, 0.0  ;;  %v1410_v52 = vmax.f32 %v1402_v63, 0.0  ;;  %v1414_v8 = vmax.f32 %v1406_v57, 0.0  ;;  %v5229_v46 = vld [vmem:[%s5649_s29 + $0x110] sm:$0xff]  ;;  %v5228_v34 = vld [vmem:[%s5649_s29 + $0x108] sm:$0xff] }
 0x319   :  { %1438 = vmatpush.msrb.mxu2 %v1413_v49  ;;  %1461 = vmatpush.msrb.mxu3 %v1417_v48  ;;  %v5227_v35 = vld [vmem:[%s5649_s29 + $0x100] sm:$0xff]  ;;  %s6747_s29 = sld [smem:[#allocation16_spill]] }
 0x31a   :  { %1493 = vmatpush.msra.mxu0 %v1413_v49  ;;  %1516 = vmatpush.msra.mxu1 %v1417_v48 }
 0x31b   :  { %1439 = vmatpush.msrb.mxu2 %v1412_v60  ;;  %1462 = vmatpush.msrb.mxu3 %v1416_v61 }
 0x31c   :  { %1494 = vmatpush.msra.mxu0 %v1412_v60  ;;  %1517 = vmatpush.msra.mxu1 %v1416_v61 }
 0x31d   :  { %1440 = vmatpush.msrb.mxu2 %v1411_v16  ;;  %1463 = vmatpush.msrb.mxu3 %v1415_v50 }
 0x31e   :  { %1495 = vmatpush.msra.mxu0 %v1411_v16  ;;  %1518 = vmatpush.msra.mxu1 %v1415_v50 }
 0x31f   :  { %1441 = vmatpush.msrb.mxu2 %v1410_v52  ;;  %1464 = vmatpush.msrb.mxu3 %v1414_v8 }
 0x320   :  { %1496 = vmatpush.msra.mxu0 %v1410_v52  ;;  %1519 = vmatpush.msra.mxu1 %v1414_v8 }
 0x321   :  { %5151 = vmatmul.msk.f32.vlgmr.msrb.gmra.mxu2 %vm1089_vm2, %v1418_v9  ;;  %5153 = vmatmul.msk.f32.vlgmr.msrb.gmra.mxu3 %vm1089_vm2, %v1418_v9 }
 0x322   :  { %1548 = vmatpush.msra.mxu2 %v1413_v49  ;;  %1571 = vmatpush.msra.mxu3 %v1417_v48 }
 0x323   :  { %5157 = vmatmul.msk.f32.vlgmr.msra.gmra.mxu0 %vm1089_vm2, %v5155_v14  ;;  %5159 = vmatmul.msk.f32.vlgmr.msra.gmra.mxu1 %vm1089_vm2, %v5155_v14 }
 0x324   :  { %1549 = vmatpush.msra.mxu2 %v1412_v60  ;;  %1572 = vmatpush.msra.mxu3 %v1416_v61 }
 0x325   :  { %1609 = vmatpush.msrb.mxu0 %v5170_v15  ;;  %1638 = vmatpush.msrb.mxu1 %v5170_v15 }
 0x326   :  { %1550 = vmatpush.msra.mxu2 %v1411_v16  ;;  %1573 = vmatpush.msra.mxu3 %v1415_v50 }
 0x327   :  { %1610 = vmatpush.msrb.mxu0 %v5169_v2  ;;  %1639 = vmatpush.msrb.mxu1 %v5169_v2 }
 0x328   :  { %1551 = vmatpush.msra.mxu2 %v1410_v52  ;;  %1574 = vmatpush.msra.mxu3 %v1414_v8 }
 0x329   :  { %5152 = vmatmul.msk.f32.gmra.mxu2 %vm1089_vm2, %v1419_v33  ;;  %5154 = vmatmul.msk.f32.gmra.mxu3 %vm1089_vm2, %v1419_v33 }
 0x32a   :  { %1661 = vmatpush.msrb.mxu2 %v1585_v3  ;;  %1684 = vmatpush.msrb.mxu3 %v1585_v3 }
 0x32b   :  { %5158 = vmatmul.msk.f32.gmra.mxu0 %vm1089_vm2, %v5156_v24  ;;  %5160 = vmatmul.msk.f32.gmra.mxu1 %vm1089_vm2, %v5156_v24 }
 0x32c   :  { %1662 = vmatpush.msrb.mxu2 %v1584_v25  ;;  %1685 = vmatpush.msrb.mxu3 %v1584_v25 }
 0x32d   :  { %1611 = vmatpush.msrb.mxu0 %v5168_v51  ;;  %1640 = vmatpush.msrb.mxu1 %v5168_v51  ;;  %v2105_v51 = vld [vmem:[%s5669_s19 + $0x8] sm:$0xff] }
 0x32e   :  { %1663 = vmatpush.msrb.mxu2 %v1583_v53  ;;  %1686 = vmatpush.msrb.mxu3 %v1583_v53  ;;  %v2104_v53 = vld [vmem:[%s5669_s19] sm:$0xff]  ;;  %s5601_s19 = smov 32  }
 0x32f   :  { %1612 = vmatpush.msrb.mxu0 %v5167_v13  ;;  %1641 = vmatpush.msrb.mxu1 %v5167_v13 }
 0x330   :  { %1664 = vmatpush.msrb.mxu2 %v1582_v1  ;;  %1687 = vmatpush.msrb.mxu3 %v1582_v1 }
 0x331   :  { %5163 = vmatmul.msk.f32.vlgmr.msra.gmra.mxu2 %vm1089_vm2, %v5161_v12  ;;  %5165 = vmatmul.msk.f32.vlgmr.msra.gmra.mxu3 %vm1089_vm2, %v5161_v12 }
 0x332   :  { %1712 = vmatpush.msra.mxu0 %v5182_v20  ;;  %1735 = vmatpush.msra.mxu1 %v5182_v20 }
 0x333   :  { %1773 = vmatpush.msra.mxu2 %v5190_v36  ;;  %1802 = vmatpush.msra.mxu3 %v5190_v36 }
 0x334   :  { %1713 = vmatpush.msra.mxu0 %v5181_v6  ;;  %1736 = vmatpush.msra.mxu1 %v5181_v6 }
 0x335   :  { %1774 = vmatpush.msra.mxu2 %v5189_v7  ;;  %1803 = vmatpush.msra.mxu3 %v5189_v7 }
 0x336   :  { %1714 = vmatpush.msra.mxu0 %v5180_v21  ;;  %1737 = vmatpush.msra.mxu1 %v5180_v21 }
 0x337   :  { %1775 = vmatpush.msra.mxu2 %v5188_v30  ;;  %1804 = vmatpush.msra.mxu3 %v5188_v30 }
 0x338   :  { %1715 = vmatpush.msra.mxu0 %v5179_v31  ;;  %1738 = vmatpush.msra.mxu1 %v5179_v31 }
 0x339   :  { %5164 = vmatmul.msk.f32.gmra.mxu2 %vm1089_vm2, %v5162_v0  ;;  %5166 = vmatmul.msk.f32.gmra.mxu3 %vm1089_vm2, %v5162_v0 }
 0x33a   :  { %1776 = vmatpush.msra.mxu2 %v5187_v37  ;;  %1805 = vmatpush.msra.mxu3 %v5187_v37 }
 0x3a0   :  { %v1498_v10 = vpop.f32.mrf.mxu0  ;;  %v1521_v29 = vpop.f32.mrf.mxu1 }
 0x3a4   :  { %v1443_v40 = vpop.f32.mrf.mxu2  ;;  %v1466_v41 = vpop.f32.mrf.mxu3 }
 0x3a5   :  { %5171 = vmatmul.msk.f32.vlgmr.msrb.gmra.mxu0 %vm1089_vm2, %v1443_v40  ;;  %5173 = vmatmul.msk.f32.vlgmr.msrb.gmra.mxu1 %vm1089_vm2, %v1466_v41 }
 0x3a6   :  { %5175 = vmatmul.msk.f32.vlgmr.msrb.gmra.mxu2 %vm1089_vm2, %v1443_v40  ;;  %5177 = vmatmul.msk.f32.vlgmr.msrb.gmra.mxu3 %vm1089_vm2, %v1466_v41 }
 0x3a7   :  { %1834 = vmatpush.msrb.mxu0 %v5198_v22  ;;  %1857 = vmatpush.msrb.mxu1 %v5198_v22 }
 0x3a8   :  { %1889 = vmatpush.msrb.mxu2 %v5206_v54  ;;  %1912 = vmatpush.msrb.mxu3 %v5206_v54  ;;  %v1501_v58 = vpop.f32.mrf.mxu0  ;;  %v1524_v59 = vpop.f32.mrf.mxu1 }
 0x3a9   :  { %1835 = vmatpush.msrb.mxu0 %v5197_v56  ;;  %1858 = vmatpush.msrb.mxu1 %v5197_v56 }
 0x3aa   :  { %1890 = vmatpush.msrb.mxu2 %v5205_v55  ;;  %1913 = vmatpush.msrb.mxu3 %v5205_v55 }
 0x3ab   :  { %1836 = vmatpush.msrb.mxu0 %v5196_v17  ;;  %1859 = vmatpush.msrb.mxu1 %v5196_v17 }
 0x3ac   :  { %v1446_v4 = vpop.f32.mrf.mxu2  ;;  %v1469_v5 = vpop.f32.mrf.mxu3  ;;  %1891 = vmatpush.msrb.mxu2 %v5204_v42  ;;  %1914 = vmatpush.msrb.mxu3 %v5204_v42 }
 0x3ad   :  { %5172 = vmatmul.msk.f32.gmra.mxu0 %vm1089_vm2, %v1446_v4  ;;  %5174 = vmatmul.msk.f32.gmra.mxu1 %vm1089_vm2, %v1469_v5 }
 0x3ae   :  { %5176 = vmatmul.msk.f32.gmra.mxu2 %vm1089_vm2, %v1446_v4  ;;  %5178 = vmatmul.msk.f32.gmra.mxu3 %vm1089_vm2, %v1469_v5 }
 0x3af   :  { %1837 = vmatpush.msrb.mxu0 %v5195_v44  ;;  %1860 = vmatpush.msrb.mxu1 %v5195_v44 }
 0x3b0   :  { %1892 = vmatpush.msrb.mxu2 %v5203_v28  ;;  %1915 = vmatpush.msrb.mxu3 %v5203_v28 }
 0x3b4   :  { %v1553_v26 = vpop.f32.mrf.mxu2  ;;  %v1576_v27 = vpop.f32.mrf.mxu3 }
 0x3b5   :  { %5183 = vmatmul.msk.f32.vlgmr.msra.gmra.mxu0 %vm1089_vm2, %v1443_v40  ;;  %5185 = vmatmul.msk.f32.vlgmr.msra.gmra.mxu1 %vm1089_vm2, %v1466_v41 }
 0x3b6   :  { %5191 = vmatmul.msk.f32.vlgmr.msra.gmra.mxu2 %vm1089_vm2, %v1498_v10  ;;  %5193 = vmatmul.msk.f32.vlgmr.msra.gmra.mxu3 %vm1089_vm2, %v1521_v29 }
 0x3b7   :  { %1950 = vmatpush.msra.mxu0 %v5214_v11  ;;  %1979 = vmatpush.msra.mxu1 %v5214_v11 }
 0x3b8   :  { %2011 = vmatpush.msra.mxu2 %v5222_v38  ;;  %2034 = vmatpush.msra.mxu3 %v5222_v38 }
 0x3b9   :  { %1951 = vmatpush.msra.mxu0 %v5213_v39  ;;  %1980 = vmatpush.msra.mxu1 %v5213_v39 }
 0x3ba   :  { %2012 = vmatpush.msra.mxu2 %v5221_v43  ;;  %2035 = vmatpush.msra.mxu3 %v5221_v43 }
 0x3bb   :  { %1952 = vmatpush.msra.mxu0 %v5212_v45  ;;  %1981 = vmatpush.msra.mxu1 %v5212_v45 }
 0x3bc   :  { %2013 = vmatpush.msra.mxu2 %v5220_v23  ;;  %2036 = vmatpush.msra.mxu3 %v5220_v23  ;;  %v1556_v49 = vpop.f32.mrf.mxu2  ;;  %v1579_v48 = vpop.f32.mrf.mxu3 }
 0x3bd   :  { %5184 = vmatmul.msk.f32.gmra.mxu0 %vm1089_vm2, %v1446_v4  ;;  %5186 = vmatmul.msk.f32.gmra.mxu1 %vm1089_vm2, %v1469_v5 }
 0x3be   :  { %5192 = vmatmul.msk.f32.gmra.mxu2 %vm1089_vm2, %v1501_v58  ;;  %5194 = vmatmul.msk.f32.gmra.mxu3 %vm1089_vm2, %v1524_v59 }
 0x3bf   :  { %1953 = vmatpush.msra.mxu0 %v5211_v18  ;;  %1982 = vmatpush.msra.mxu1 %v5211_v18 }
 0x3c0   :  { %2014 = vmatpush.msra.mxu2 %v5219_v19  ;;  %2037 = vmatpush.msra.mxu3 %v5219_v19 }
 0x3c5   :  { %5199 = vmatmul.msk.f32.vlgmr.msrb.gmra.mxu0 %vm1089_vm2, %v1498_v10  ;;  %5201 = vmatmul.msk.f32.vlgmr.msrb.gmra.mxu1 %vm1089_vm2, %v1521_v29 }
 0x3c6   :  { %5207 = vmatmul.msk.f32.vlgmr.msrb.gmra.mxu2 %vm1089_vm2, %v1498_v10  ;;  %5209 = vmatmul.msk.f32.vlgmr.msrb.gmra.mxu3 %vm1089_vm2, %v1521_v29 }
 0x3c7   :  { %2066 = vmatpush.msrb.mxu0 %v5230_v32  ;;  %2089 = vmatpush.msrb.mxu1 %v5230_v32 }
 0x3c8   :  { %2127 = vmatpush.msrb.mxu2 %v2105_v51  ;;  %2156 = vmatpush.msrb.mxu3 %v2105_v51 }
 0x3c9   :  { %2067 = vmatpush.msrb.mxu0 %v5229_v46  ;;  %2090 = vmatpush.msrb.mxu1 %v5229_v46 }
 0x3ca   :  { %2128 = vmatpush.msrb.mxu2 %v2104_v53  ;;  %2157 = vmatpush.msrb.mxu3 %v2104_v53 }
 0x3cb   :  { %2068 = vmatpush.msrb.mxu0 %v5228_v34  ;;  %2091 = vmatpush.msrb.mxu1 %v5228_v34 }
 0x3cd   :  { %5200 = vmatmul.msk.f32.gmra.mxu0 %vm1089_vm2, %v1501_v58  ;;  %5202 = vmatmul.msk.f32.gmra.mxu1 %vm1089_vm2, %v1524_v59 }
 0x3ce   :  { %5208 = vmatmul.msk.f32.gmra.mxu2 %vm1089_vm2, %v1501_v58  ;;  %5210 = vmatmul.msk.f32.gmra.mxu3 %vm1089_vm2, %v1524_v59 }
 0x3cf   :  { %2069 = vmatpush.msrb.mxu0 %v5227_v35  ;;  %2092 = vmatpush.msrb.mxu1 %v5227_v35 }
 0x3d5   :  { %5215 = vmatmul.msk.f32.vlgmr.msra.gmra.mxu0 %vm1089_vm2, %v1553_v26  ;;  %5217 = vmatmul.msk.f32.vlgmr.msra.gmra.mxu1 %vm1089_vm2, %v1576_v27 }
 0x3d6   :  { %5223 = vmatmul.msk.f32.vlgmr.msra.gmra.mxu2 %vm1089_vm2, %v1553_v26  ;;  %5225 = vmatmul.msk.f32.vlgmr.msra.gmra.mxu3 %vm1089_vm2, %v1576_v27 }
 0x3d7   :  { %2189 = vmatpush.msra.mxu0 %v2105_v51  ;;  %2218 = vmatpush.msra.mxu1 %v2105_v51 }
 0x3d9   :  { %2190 = vmatpush.msra.mxu0 %v2104_v53  ;;  %2219 = vmatpush.msra.mxu1 %v2104_v53 }
 0x3dd   :  { %5216 = vmatmul.msk.f32.gmra.mxu0 %vm1089_vm2, %v1556_v49  ;;  %5218 = vmatmul.msk.f32.gmra.mxu1 %vm1089_vm2, %v1579_v48 }
 0x3de   :  { %5224 = vmatmul.msk.f32.gmra.mxu2 %vm1089_vm2, %v1556_v49  ;;  %5226 = vmatmul.msk.f32.gmra.mxu3 %vm1089_vm2, %v1579_v48 }
 0x3e5   :  { %5231 = vmatmul.msk.f32.vlgmr.msrb.gmra.mxu0 %vm1089_vm2, %v1553_v26  ;;  %5233 = vmatmul.msk.f32.vlgmr.msrb.gmra.mxu1 %vm1089_vm2, %v1576_v27 }
 0x3ed   :  { %5232 = vmatmul.msk.f32.gmra.mxu0 %vm1089_vm2, %v1556_v49  ;;  %5234 = vmatmul.msk.f32.gmra.mxu1 %vm1089_vm2, %v1579_v48 }
 0x422   :  { %v1614_v47 = vpop.f32.mrf.mxu0  ;;  %v1643_v62 = vpop.f32.mrf.mxu1 }
 0x429   :  { %v1666_v60 = vpop.f32.mrf.mxu2  ;;  %v1689_v61 = vpop.f32.mrf.mxu3 }
 0x42a   :  { %v1617_v63 = vpop.f32.mrf.mxu0  ;;  %v1646_v57 = vpop.f32.mrf.mxu1  ;;  %v1667_v21 = vadd.f32 %v1666_v60, %v1614_v47  ;;  %v1690_v30 = vadd.f32 %v1689_v61, %v1643_v62 }
 0x431   :  { %v1669_v16 = vpop.f32.mrf.mxu2  ;;  %v1692_v50 = vpop.f32.mrf.mxu3 }
 0x432   :  { %v1717_v52 = vpop.f32.mrf.mxu0  ;;  %v1740_v8 = vpop.f32.mrf.mxu1  ;;  %v1670_v17 = vadd.f32 %v1669_v16, %v1617_v63  ;;  %v1693_v5 = vadd.f32 %v1692_v50, %v1646_v57 }
 0x433   :  { %v1746_v31 = vadd.f32 %v1717_v52, %v1667_v21  ;;  %v1748_v37 = vadd.f32 %v1740_v8, %v1690_v30 }
 0x439   :  { %v1778_v9 = vpop.f32.mrf.mxu2  ;;  %v1807_v14 = vpop.f32.mrf.mxu3 }
 0x43a   :  { %v1720_v15 = vpop.f32.mrf.mxu0  ;;  %v1743_v2 = vpop.f32.mrf.mxu1  ;;  %v1813_v40 = vadd.f32 %v1778_v9, %v1746_v31  ;;  %v1815_v41 = vadd.f32 %v1807_v14, %v1748_v37 }
 0x43b   :  { %v1747_v10 = vadd.f32 %v1720_v15, %v1670_v17  ;;  %v1749_v29 = vadd.f32 %v1743_v2, %v1693_v5 }
 0x441   :  { %v1781_v33 = vpop.f32.mrf.mxu2  ;;  %v1810_v3 = vpop.f32.mrf.mxu3 }
 0x442   :  { %v1839_v24 = vpop.f32.mrf.mxu0  ;;  %v1862_v25 = vpop.f32.mrf.mxu1  ;;  %v1814_v39 = vadd.f32 %v1781_v33, %v1747_v10  ;;  %v1816_v43 = vadd.f32 %v1810_v3, %v1749_v29 }
 0x443   :  { %v1868_v56 = vadd.f32 %v1839_v24, %v1813_v40  ;;  %v1870_v55 = vadd.f32 %v1862_v25, %v1815_v41 }
 0x449   :  { %v1894_v12 = vpop.f32.mrf.mxu2  ;;  %v1917_v0 = vpop.f32.mrf.mxu3 }
 0x44a   :  { %v1842_v13 = vpop.f32.mrf.mxu0  ;;  %v1865_v1 = vpop.f32.mrf.mxu1  ;;  %v1923_v44 = vadd.f32 %v1894_v12, %v1868_v56  ;;  %v1925_v28 = vadd.f32 %v1917_v0, %v1870_v55 }
 0x44b   :  { %v1869_v58 = vadd.f32 %v1842_v13, %v1814_v39  ;;  %v1871_v19 = vadd.f32 %v1865_v1, %v1816_v43 }
 0x451   :  { %v1897_v20 = vpop.f32.mrf.mxu2  ;;  %v1920_v36 = vpop.f32.mrf.mxu3 }
 0x452   :  { %v1955_v6 = vpop.f32.mrf.mxu0  ;;  %v1984_v7 = vpop.f32.mrf.mxu1  ;;  %v1924_v34 = vadd.f32 %v1897_v20, %v1869_v58  ;;  %v1926_v35 = vadd.f32 %v1920_v36, %v1871_v19 }
 0x453   :  { %v1990_v11 = vadd.f32 %v1955_v6, %v1923_v44  ;;  %v1992_v38 = vadd.f32 %v1984_v7, %v1925_v28 }
 0x459   :  { %v2016_v42 = vpop.f32.mrf.mxu2  ;;  %v2039_v4 = vpop.f32.mrf.mxu3 }
 0x45a   :  { %v1958_v22 = vpop.f32.mrf.mxu0  ;;  %v1987_v54 = vpop.f32.mrf.mxu1  ;;  %v2045_v45 = vadd.f32 %v2016_v42, %v1990_v11  ;;  %v2047_v23 = vadd.f32 %v2039_v4, %v1992_v38 }
 0x45b   :  { %v1991_v47 = vadd.f32 %v1958_v22, %v1924_v34  ;;  %v1993_v62 = vadd.f32 %v1987_v54, %v1926_v35  ;;  %v2289_v34 = vld [vmem:[%s5689_s12] sm:$0xf]  ;;  %s5605_s12 = smov 112  }
 0x45c   :  { %5243 = vmatpush.msk.msra.mxu2 %vm1345_vm4, %v2289_v34  ;;  %5245 = vmatpush.msk.msra.mxu3 %vm1345_vm4, %v2289_v34 }
 0x461   :  { %v2019_v49 = vpop.f32.mrf.mxu2  ;;  %v2042_v48 = vpop.f32.mrf.mxu3 }
 0x462   :  { %v2071_v59 = vpop.f32.mrf.mxu0  ;;  %v2094_v18 = vpop.f32.mrf.mxu1  ;;  %v2046_v60 = vadd.f32 %v2019_v49, %v1991_v47  ;;  %v2048_v61 = vadd.f32 %v2042_v48, %v1993_v62 }
 0x463   :  { %v6300_v32 = vadd.f32 %v2071_v59, %v2045_v45  ;;  %v6302_v46 = vadd.f32 %v2094_v18, %v2047_v23 }
 0x465   :  { %v2165_v26 = vmul.f32 %v6300_v32, %v6300_v32  ;;  %v2167_v27 = vmul.f32 %v6302_v46, %v6302_v46  ;;  %5235 = vmatmul.msk.f32.vlgmr.msrb.gmra.mxu2 %vm2106_vm8, %v6300_v32  ;;  %5237 = vmatmul.msk.f32.vlgmr.msrb.gmra.mxu3 %vm2106_vm8, %v6302_v46 }
 0x467   :  { %5239 = vmatmul.msk.f32.vlgmr.msra.gmra.mxu0 %vm2106_vm8, %v2165_v26  ;;  %5241 = vmatmul.msk.f32.vlgmr.msra.gmra.mxu1 %vm2106_vm8, %v2167_v27 }
 0x46a   :  { %v2074_v63 = vpop.f32.mrf.mxu0  ;;  %v2097_v57 = vpop.f32.mrf.mxu1 }
 0x46b   :  { %v6314_v16 = vadd.f32 %v2074_v63, %v2046_v60  ;;  %v6316_v50 = vadd.f32 %v2097_v57, %v2048_v61 }
 0x46d   :  { %v2166_v52 = vmul.f32 %v6314_v16, %v6314_v16  ;;  %v2168_v8 = vmul.f32 %v6316_v50, %v6316_v50  ;;  %5236 = vmatmul.msk.f32.gmra.mxu2 %vm2106_vm8, %v6314_v16  ;;  %5238 = vmatmul.msk.f32.gmra.mxu3 %vm2106_vm8, %v6316_v50 }
 0x46f   :  { %5240 = vmatmul.msk.f32.gmra.mxu0 %vm2106_vm8, %v2166_v52  ;;  %5242 = vmatmul.msk.f32.gmra.mxu1 %vm2106_vm8, %v2168_v8 }
 0x4e4   :  { %v2192_v9 = vpop.f32.mrf.mxu0  ;;  %v2221_v14 = vpop.f32.mrf.mxu1 }
 0x4e5   :  { %v2248_v24 = vsel %vm1262_vm3, %v2192_v9, 0.0  ;;  %v2257_v25 = vsel %vm1262_vm3, %v2221_v14, 0.0  ;;  %v2273_v14 = vld [vmem:[%s5709_s30] sm:$0x1] }
 0x4e8   :  { %v2130_v15 = vpop.f32.mrf.mxu2  ;;  %v2159_v2 = vpop.f32.mrf.mxu3 }
 0x4e9   :  { %v2227_v6 = vsel %vm1262_vm3, %v2130_v15, 0.0  ;;  %v2236_v7 = vsel %vm1262_vm3, %v2159_v2, 0.0 }
 0x4ec   :  { %v2195_v33 = vpop.f32.mrf.mxu0  ;;  %v2224_v3 = vpop.f32.mrf.mxu1 }
 0x4ed   :  { %v2249_v51 = vsel %vm1262_vm3, %v2195_v33, 0.0  ;;  %v2258_v53 = vsel %vm1262_vm3, %v2224_v3, 0.0  ;;  %v2274_v3 = vld [vmem:[%s5709_s30 + $0x1] sm:$0x1]  ;;  %s5603_s30 = smov 96  }
 0x4ee   :  { %v2250_v12 = vadd.f32 %v2249_v51, %v2248_v24  ;;  %v2259_v0 = vadd.f32 %v2258_v53, %v2257_v25 }
 0x4f0   :  { %v2251_v13 = vrot.slane %v2250_v12, 4  ;;  %v2260_v1 = vrot.slane %v2259_v0, 4  ;;  %v2133_v20 = vpop.f32.mrf.mxu2  ;;  %v2162_v36 = vpop.f32.mrf.mxu3 }
 0x4f1   :  { %v2228_v21 = vsel %vm1262_vm3, %v2133_v20, 0.0  ;;  %v2237_v30 = vsel %vm1262_vm3, %v2162_v36, 0.0 }
 0x4f2   :  { %v2252_v31 = vadd.f32 %v2251_v13, %v2250_v12  ;;  %v2261_v37 = vadd.f32 %v2260_v1, %v2259_v0  ;;  %v2229_v40 = vadd.f32 %v2228_v21, %v2227_v6  ;;  %v2238_v41 = vadd.f32 %v2237_v30, %v2236_v7 }
 0x4f4   :  { %v2253_v22 = vrot.slane %v2252_v31, 2  ;;  %v2262_v54 = vrot.slane %v2261_v37, 2  ;;  %v2230_v56 = vrot.slane %v2229_v40, 4  ;;  %v2239_v55 = vrot.slane %v2238_v41, 4 }
 0x4f6   :  { %v2254_v17 = vadd.f32 %v2253_v22, %v2252_v31  ;;  %v2263_v42 = vadd.f32 %v2262_v54, %v2261_v37  ;;  %v2231_v4 = vadd.f32 %v2230_v56, %v2229_v40  ;;  %v2240_v5 = vadd.f32 %v2239_v55, %v2238_v41  ;;  %v5252_v41 = vld [vmem:[%s5634_s17 + $0x10] sm:$0xff]  ;;  %v2488_v22 = vld [vmem:[%s5654_s3 + $0x8] sm:$0xff]  ;;  %v2487_v56 = vld [vmem:[%s5654_s3] sm:$0xff] }
 0x4f7   :  { %v5255_v54 = vld [vmem:[%s5654_s3 + $0x10] sm:$0xff]  ;;  %v5262_v55 = vld [vmem:[%s5654_s3 + $0x28] sm:$0xff] }
 0x4f8   :  { %v2255_v44 = vrot.slane %v2254_v17, 1  ;;  %v2264_v28 = vrot.slane %v2263_v42, 1  ;;  %v2232_v10 = vrot.slane %v2231_v4, 2  ;;  %v2241_v29 = vrot.slane %v2240_v5, 2 }
 0x4fa   :  { %v2256_v11 = vadd.f32 %v2255_v44, %v2254_v17  ;;  %v2265_v38 = vadd.f32 %v2264_v28, %v2263_v42  ;;  %v2233_v39 = vadd.f32 %v2232_v10, %v2231_v4  ;;  %v2242_v43 = vadd.f32 %v2241_v29, %v2240_v5  ;;  %v5261_v17 = vld [vmem:[%s5654_s3 + $0x20] sm:$0xff]  ;;  %v5266_v42 = vld [vmem:[%s5654_s3 + $0x38] sm:$0xff]  ;;  %v5265_v4 = vld [vmem:[%s5654_s3 + $0x30] sm:$0xff] }
 0x4fb   :  { %v5270_v28 = vld [vmem:[%s5654_s3 + $0x48] sm:$0xff]  ;;  %v5274_v10 = vld [vmem:[%s5654_s3 + $0x58] sm:$0xff]  ;;  %v5269_v29 = vld [vmem:[%s5654_s3 + $0x40] sm:$0xff] }
 0x4fc   :  { %v2234_v45 = vrot.slane %v2233_v39, 1  ;;  %v2243_v23 = vrot.slane %v2242_v43, 1  ;;  %v2266_v58 = vsel %vm1262_vm3, %v2256_v11, 0.0  ;;  %v2267_v59 = vsel %vm1262_vm3, %v2265_v38, 0.0  ;;  %v5273_v11 = vld [vmem:[%s5654_s3 + $0x50] sm:$0xff] }
 0x4fd   :  { %v2268_v27 = vadd.f32 %v2267_v59, %v2266_v58  ;;  %v5281_v58 = vld [vmem:[%s5654_s3 + $0x70] sm:$0xff]  ;;  %v5286_v59 = vld [vmem:[%s5654_s3 + $0x88] sm:$0xff] }
 0x4fe   :  { %v2235_v18 = vadd.f32 %v2234_v45, %v2233_v39  ;;  %v2244_v19 = vadd.f32 %v2243_v23, %v2242_v43  ;;  %v5278_v43 = vld [vmem:[%s5654_s3 + $0x68] sm:$0xff]  ;;  %v5282_v45 = vld [vmem:[%s5654_s3 + $0x78] sm:$0xff]  ;;  %v5277_v23 = vld [vmem:[%s5654_s3 + $0x60] sm:$0xff] }
 0x4ff   :  { %v2270_v47 = vmul.f32 0.0078125, %v2268_v27 }
 0x500   :  { %v2245_v35 = vsel %vm1262_vm3, %v2235_v18, 0.0  ;;  %v2246_v26 = vsel %vm1262_vm3, %v2244_v19, 0.0  ;;  %v5285_v18 = vld [vmem:[%s5654_s3 + $0x80] sm:$0xff] }
 0x501   :  { %v2247_v49 = vadd.f32 %v2246_v26, %v2245_v35 }
 0x503   :  { %v2269_v48 = vmul.f32 0.0078125, %v2247_v49 }
 0x505   :  { %v2271_v62 = vmul.f32 %v2269_v48, %v2269_v48 }
 0x507   :  { %v2272_v60 = vsub.f32 %v2270_v47, %v2271_v62  ;;  %v2905_v47 = vld [vmem:[%s5674_s24] sm:$0xff] }
 0x509   :  { %v2275_v61 = vadd.f32 1e-05, %v2272_v60 }
 0x50b   :  { %5420 = vrsqrt.f32 %v2275_v61  ;;  %vm2282_vm10 = vweird.f32 %v2275_v61 }
 0x511   :  { %v5421_v63 = vpop.eup %5420 }
 0x512   :  { %v2277_v57 = vmul.f32 %v5421_v63, %v2275_v61  ;;  %vm2283_vm9 = vweird.f32 %v5421_v63 }
 0x513   :  { %vm2284_vm11 = vmor %vm2282_vm10, %vm2283_vm9 }
 0x514   :  { %v2278_v52 = vmul.f32 %v5421_v63, %v2277_v57 }
 0x516   :  { %v2279_v8 = vmul.f32 0.5, %v2278_v52 }
 0x518   :  { %v2280_v9 = vsub.f32 1.5, %v2279_v8 }
 0x51a   :  { %v2281_v15 = vmul.f32 %v5421_v63, %v2280_v9 }
 0x51c   :  { %v2285_v2 = vsel %vm2284_vm11, %v5421_v63, %v2281_v15 }
 0x51d   :  { %v2286_v33 = vmul.f32 %v2285_v2, %v2273_v14 }
 0x51f   :  { %v2287_v24 = vmul.f32 %v2286_v33, %v2269_v48  ;;  %5244 = vmatmul.msk.f32.vlgmr.msra.gmra.mxu2 %vm1262_vm3, %v2286_v33  ;;  %v2906_v48 = vld [vmem:[%s5674_s24 + $0x8] sm:$0xff]  ;;  %s6750_s24 = sld [smem:[#allocation15_spill]] }
 0x521   :  { %v2288_v25 = vsub.f32 %v2274_v3, %v2287_v24 }
 0x523   :  { %5246 = vmatmul.msk.f32.vlgmr.msra.gmra.mxu3 %vm1262_vm3, %v2288_v25 }
 0x5a2   :  { %v2313_v51 = vpop.f32.mrf.mxu2 }
 0x5a3   :  { %v2339_v53 = vperm.slane %v2313_v51, 0 }
 0x5a5   :  { %v2341_v12 = vmul.f32 %v2339_v53, %v6314_v16  ;;  %v2343_v13 = vmul.f32 %v2339_v53, %v6316_v50  ;;  %v2340_v20 = vmul.f32 %v2339_v53, %v6300_v32  ;;  %v2342_v36 = vmul.f32 %v2339_v53, %v6302_v46  ;;  %v2353_v50 = vld [vmem:[%s5634_s17] sm:$0xff]  ;;  %v5249_v32 = vld [vmem:[%s5634_s17 + $0x8] sm:$0xff]  ;;  %v5256_v46 = vld [vmem:[%s5654_s3 + $0x18] sm:$0xff]  ;;  %s6745_s17 = sld [smem:[#allocation10_spill]] }
 0x5a6   :  { %v2336_v0 = vpop.f32.mrf.mxu3  ;;  %s6748_s3 = sld [smem:[#allocation17_spill]] }
 0x5a7   :  { %v2344_v1 = vperm.slane %v2336_v0, 0 }
 0x5a9   :  { %v2346_v6 = vadd.f32 %v2344_v1, %v2341_v12  ;;  %v2348_v7 = vadd.f32 %v2344_v1, %v2343_v13  ;;  %v2345_v21 = vadd.f32 %v2344_v1, %v2340_v20  ;;  %v2347_v30 = vadd.f32 %v2344_v1, %v2342_v36 }
 0x5ab   :  { %v2350_v31 = vmax.f32 %v2346_v6, 0.0  ;;  %v2352_v37 = vmax.f32 %v2348_v7, 0.0  ;;  %v2349_v16 = vmax.f32 %v2345_v21, 0.0  ;;  %v2351_v40 = vmax.f32 %v2347_v30, 0.0 }
 0x5ad   :  { %2371 = vmatpush.msrb.mxu0 %v2350_v31  ;;  %2391 = vmatpush.msrb.mxu1 %v2352_v37 }
 0x5ae   :  { %2416 = vmatpush.msrb.mxu2 %v2350_v31  ;;  %2436 = vmatpush.msrb.mxu3 %v2352_v37 }
 0x5af   :  { %2372 = vmatpush.msrb.mxu0 %v2349_v16  ;;  %2392 = vmatpush.msrb.mxu1 %v2351_v40 }
 0x5b0   :  { %2417 = vmatpush.msrb.mxu2 %v2349_v16  ;;  %2437 = vmatpush.msrb.mxu3 %v2351_v40 }
 0x5b1   :  { %5247 = vmatmul.msk.f32.vlgmr.msrb.gmra.mxu0 %vm2106_vm8, %v2353_v50  ;;  %5248 = vmatmul.msk.f32.vlgmr.msrb.gmra.mxu1 %vm2106_vm8, %v2353_v50 }
 0x5b2   :  { %2461 = vmatpush.msra.mxu0 %v2350_v31  ;;  %2481 = vmatpush.msra.mxu1 %v2352_v37 }
 0x5b3   :  { %5250 = vmatmul.msk.f32.vlgmr.msrb.gmra.mxu2 %vm2106_vm8, %v5249_v32  ;;  %5251 = vmatmul.msk.f32.vlgmr.msrb.gmra.mxu3 %vm2106_vm8, %v5249_v32 }
 0x5b4   :  { %2462 = vmatpush.msra.mxu0 %v2349_v16  ;;  %2482 = vmatpush.msra.mxu1 %v2351_v40 }
 0x5b5   :  { %2509 = vmatpush.msra.mxu2 %v5256_v46  ;;  %2532 = vmatpush.msra.mxu3 %v5256_v46 }
 0x5b6   :  { %2552 = vmatpush.msrb.mxu0 %v2488_v22  ;;  %2572 = vmatpush.msrb.mxu1 %v2488_v22 }
 0x5b7   :  { %2510 = vmatpush.msra.mxu2 %v5255_v54  ;;  %2533 = vmatpush.msra.mxu3 %v5255_v54 }
 0x5b8   :  { %2553 = vmatpush.msrb.mxu0 %v2487_v56  ;;  %2573 = vmatpush.msrb.mxu1 %v2487_v56 }
 0x5b9   :  { %5253 = vmatmul.msk.f32.vlgmr.msra.gmra.mxu0 %vm2106_vm8, %v5252_v41  ;;  %5254 = vmatmul.msk.f32.vlgmr.msra.gmra.mxu1 %vm2106_vm8, %v5252_v41 }
 0x5ba   :  { %2595 = vmatpush.msrb.mxu2 %v5262_v55  ;;  %2615 = vmatpush.msrb.mxu3 %v5262_v55 }
 0x5bb   :  { %2643 = vmatpush.msra.mxu0 %v5266_v42  ;;  %2666 = vmatpush.msra.mxu1 %v5266_v42 }
 0x5bc   :  { %2596 = vmatpush.msrb.mxu2 %v5261_v17  ;;  %2616 = vmatpush.msrb.mxu3 %v5261_v17 }
 0x5bd   :  { %2644 = vmatpush.msra.mxu0 %v5265_v4  ;;  %2667 = vmatpush.msra.mxu1 %v5265_v4 }
 0x62e   :  { %v2374_v5 = vpop.f32.mrf.mxu0  ;;  %v2394_v44 = vpop.f32.mrf.mxu1 }
 0x62f   :  { %5257 = vmatmul.msk.f32.vlgmr.msra.gmra.mxu2 %vm2106_vm8, %v2374_v5  ;;  %5258 = vmatmul.msk.f32.vlgmr.msra.gmra.mxu3 %vm2106_vm8, %v2394_v44 }
 0x630   :  { %5259 = vmatmul.msk.f32.vlgmr.msrb.gmra.mxu0 %vm2106_vm8, %v2374_v5  ;;  %5260 = vmatmul.msk.f32.vlgmr.msrb.gmra.mxu1 %vm2106_vm8, %v2394_v44 }
 0x631   :  { %2691 = vmatpush.msra.mxu2 %v5270_v28  ;;  %2711 = vmatpush.msra.mxu3 %v5270_v28 }
 0x632   :  { %2736 = vmatpush.msrb.mxu0 %v5274_v10  ;;  %2756 = vmatpush.msrb.mxu1 %v5274_v10 }
 0x633   :  { %2692 = vmatpush.msra.mxu2 %v5269_v29  ;;  %2712 = vmatpush.msra.mxu3 %v5269_v29 }
 0x634   :  { %2737 = vmatpush.msrb.mxu0 %v5273_v11  ;;  %2757 = vmatpush.msrb.mxu1 %v5273_v11 }
 0x636   :  { %v2419_v38 = vpop.f32.mrf.mxu2  ;;  %v2439_v39 = vpop.f32.mrf.mxu3 }
 0x637   :  { %5263 = vmatmul.msk.f32.vlgmr.msrb.gmra.mxu2 %vm2106_vm8, %v2374_v5  ;;  %5264 = vmatmul.msk.f32.vlgmr.msrb.gmra.mxu3 %vm2106_vm8, %v2394_v44  ;;  %v2464_v19 = vpop.f32.mrf.mxu0  ;;  %v2484_v34 = vpop.f32.mrf.mxu1 }
 0x638   :  { %5267 = vmatmul.msk.f32.vlgmr.msra.gmra.mxu0 %vm2106_vm8, %v2419_v38  ;;  %5268 = vmatmul.msk.f32.vlgmr.msra.gmra.mxu1 %vm2106_vm8, %v2439_v39 }
 0x639   :  { %2784 = vmatpush.msrb.mxu2 %v5278_v43  ;;  %2807 = vmatpush.msrb.mxu3 %v5278_v43 }
 0x63a   :  { %2832 = vmatpush.msra.mxu0 %v5282_v45  ;;  %2852 = vmatpush.msra.mxu1 %v5282_v45 }
 0x63b   :  { %2785 = vmatpush.msrb.mxu2 %v5277_v23  ;;  %2808 = vmatpush.msrb.mxu3 %v5277_v23 }
 0x63c   :  { %2833 = vmatpush.msra.mxu0 %v5281_v58  ;;  %2853 = vmatpush.msra.mxu1 %v5281_v58 }
 0x63f   :  { %5271 = vmatmul.msk.f32.vlgmr.msra.gmra.mxu2 %vm2106_vm8, %v2419_v38  ;;  %5272 = vmatmul.msk.f32.vlgmr.msra.gmra.mxu3 %vm2106_vm8, %v2439_v39 }
 0x640   :  { %5275 = vmatmul.msk.f32.vlgmr.msrb.gmra.mxu0 %vm2106_vm8, %v2419_v38  ;;  %5276 = vmatmul.msk.f32.vlgmr.msrb.gmra.mxu1 %vm2106_vm8, %v2439_v39 }
 0x641   :  { %2877 = vmatpush.msra.mxu2 %v5286_v59  ;;  %2897 = vmatpush.msra.mxu3 %v5286_v59 }
 0x642   :  { %2924 = vmatpush.msrb.mxu0 %v2906_v48  ;;  %2947 = vmatpush.msrb.mxu1 %v2906_v48 }
 0x643   :  { %2878 = vmatpush.msra.mxu2 %v5285_v18  ;;  %2898 = vmatpush.msra.mxu3 %v5285_v18 }
 0x644   :  { %2925 = vmatpush.msrb.mxu0 %v2905_v47  ;;  %2948 = vmatpush.msrb.mxu1 %v2905_v47 }
 0x647   :  { %5279 = vmatmul.msk.f32.vlgmr.msrb.gmra.mxu2 %vm2106_vm8, %v2464_v19  ;;  %5280 = vmatmul.msk.f32.vlgmr.msrb.gmra.mxu3 %vm2106_vm8, %v2484_v34 }
 0x648   :  { %5283 = vmatmul.msk.f32.vlgmr.msra.gmra.mxu0 %vm2106_vm8, %v2464_v19  ;;  %5284 = vmatmul.msk.f32.vlgmr.msra.gmra.mxu1 %vm2106_vm8, %v2484_v34 }
 0x649   :  { %2972 = vmatpush.msrb.mxu2 %v2906_v48  ;;  %2995 = vmatpush.msrb.mxu3 %v2906_v48 }
 0x64b   :  { %2973 = vmatpush.msrb.mxu2 %v2905_v47  ;;  %2996 = vmatpush.msrb.mxu3 %v2905_v47 }
 0x64f   :  { %5287 = vmatmul.msk.f32.vlgmr.msra.gmra.mxu2 %vm2106_vm8, %v2464_v19  ;;  %5288 = vmatmul.msk.f32.vlgmr.msra.gmra.mxu3 %vm2106_vm8, %v2484_v34 }
 0x6ad   :  { %v2555_v35 = vpop.f32.mrf.mxu0  ;;  %v2575_v26 = vpop.f32.mrf.mxu1 }
 0x6b2   :  { %v2512_v27 = vpop.f32.mrf.mxu2  ;;  %v2535_v49 = vpop.f32.mrf.mxu3 }
 0x6b3   :  { %v2556_v57 = vadd.f32 %v2555_v35, %v2512_v27  ;;  %v2576_v52 = vadd.f32 %v2575_v26, %v2535_v49  ;;  %v3056_v27 = vld [vmem:[%s6741_s0] sm:$0xff] }
 0x6b4   :  { %3075 = vmatpush.msra.mxu0 %v3056_v27  ;;  %3098 = vmatpush.msra.mxu1 %v3056_v27 }
 0x6b5   :  { %v2646_v61 = vpop.f32.mrf.mxu0  ;;  %v2669_v63 = vpop.f32.mrf.mxu1 }
 0x6ba   :  { %v2598_v62 = vpop.f32.mrf.mxu2  ;;  %v2618_v60 = vpop.f32.mrf.mxu3 }
 0x6bb   :  { %v2621_v8 = vadd.f32 %v2598_v62, %v2556_v57  ;;  %v2622_v9 = vadd.f32 %v2618_v60, %v2576_v52 }
 0x6bd   :  { %v2672_v2 = vadd.f32 %v2646_v61, %v2621_v8  ;;  %v2673_v33 = vadd.f32 %v2669_v63, %v2622_v9  ;;  %v2739_v3 = vpop.f32.mrf.mxu0  ;;  %v2759_v24 = vpop.f32.mrf.mxu1 }
 0x6c2   :  { %v2694_v14 = vpop.f32.mrf.mxu2  ;;  %v2714_v15 = vpop.f32.mrf.mxu3 }
 0x6c3   :  { %v2717_v25 = vadd.f32 %v2694_v14, %v2672_v2  ;;  %v2718_v51 = vadd.f32 %v2714_v15, %v2673_v33 }
 0x6c5   :  { %v2762_v0 = vadd.f32 %v2739_v3, %v2717_v25  ;;  %v2763_v13 = vadd.f32 %v2759_v24, %v2718_v51  ;;  %v2835_v36 = vpop.f32.mrf.mxu0  ;;  %v2855_v6 = vpop.f32.mrf.mxu1 }
 0x6ca   :  { %v2787_v53 = vpop.f32.mrf.mxu2  ;;  %v2810_v12 = vpop.f32.mrf.mxu3 }
 0x6cb   :  { %v2813_v1 = vadd.f32 %v2787_v53, %v2762_v0  ;;  %v2814_v20 = vadd.f32 %v2810_v12, %v2763_v13  ;;  %v3040_v0 = vld [vmem:[%s6742_s5] sm:$0x1] }
 0x6cd   :  { %v2858_v7 = vadd.f32 %v2835_v36, %v2813_v1  ;;  %v2859_v21 = vadd.f32 %v2855_v6, %v2814_v20  ;;  %v3041_v20 = vld [vmem:[%s6742_s5 + $0x1] sm:$0x1] }
 0x6d2   :  { %v2880_v30 = vpop.f32.mrf.mxu2  ;;  %v2900_v31 = vpop.f32.mrf.mxu3 }
 0x6d3   :  { %v6398_v37 = vadd.f32 %v2880_v30, %v2858_v7  ;;  %v6400_v16 = vadd.f32 %v2900_v31, %v2859_v21 }
 0x6d5   :  { %v2953_v40 = vmul.f32 %v6398_v37, %v6398_v37  ;;  %v2954_v50 = vmul.f32 %v6400_v16, %v6400_v16  ;;  %5289 = vmatmul.msk.f32.vlgmr.msrb.gmra.mxu0 %vm2106_vm8, %v6398_v37  ;;  %5290 = vmatmul.msk.f32.vlgmr.msrb.gmra.mxu1 %vm2106_vm8, %v6400_v16 }
 0x6d7   :  { %5291 = vmatmul.msk.f32.vlgmr.msrb.gmra.mxu2 %vm2106_vm8, %v2953_v40  ;;  %5292 = vmatmul.msk.f32.vlgmr.msrb.gmra.mxu3 %vm2106_vm8, %v2954_v50 }
 0x752   :  { %v2927_v32 = vpop.f32.mrf.mxu0  ;;  %v2950_v46 = vpop.f32.mrf.mxu1 }
 0x753   :  { %v3002_v41 = vsel %vm3001_vm12, %v2927_v32, 0.0  ;;  %v3009_v22 = vsel %vm3001_vm12, %v2950_v46, 0.0 }
 0x754   :  { %v3003_v54 = vrot.slane %v3002_v41, 4  ;;  %v3010_v56 = vrot.slane %v3009_v22, 4 }
 0x756   :  { %v3004_v55 = vadd.f32 %v3003_v54, %v3002_v41  ;;  %v3011_v17 = vadd.f32 %v3010_v56, %v3009_v22  ;;  %v3111_v54 = vld [vmem:[%s6743_s9] sm:$0xf]  ;;  %v5297_v56 = vld [vmem:[%s6743_s9 + $0x4] sm:$0xf] }
 0x758   :  { %v3005_v42 = vrot.slane %v3004_v55, 2  ;;  %v3012_v4 = vrot.slane %v3011_v17, 2 }
 0x75a   :  { %v3006_v5 = vadd.f32 %v3005_v42, %v3004_v55  ;;  %v3013_v44 = vadd.f32 %v3012_v4, %v3011_v17  ;;  %v2975_v28 = vpop.f32.mrf.mxu2  ;;  %v2998_v10 = vpop.f32.mrf.mxu3  ;;  %v5300_v55 = vld [vmem:[%s6743_s9 + $0x8] sm:$0xf]  ;;  %v5303_v17 = vld [vmem:[%s6744_s13 + $0x10] sm:$0xff]  ;;  %v3245_v42 = vld [vmem:[%s6744_s13] sm:$0xff] }
 0x75b   :  { %v3019_v29 = vsel %vm3001_vm12, %v2975_v28, 0.0  ;;  %v3026_v11 = vsel %vm3001_vm12, %v2998_v10, 0.0  ;;  %v5310_v4 = vld [vmem:[%s6744_s13 + $0x28] sm:$0xff]  ;;  %v5313_v28 = vld [vmem:[%s6744_s13 + $0x30] sm:$0xff] }
 0x75c   :  { %v3007_v38 = vrot.slane %v3006_v5, 1  ;;  %v3014_v39 = vrot.slane %v3013_v44, 1  ;;  %v3020_v43 = vrot.slane %v3019_v29, 4  ;;  %v3027_v45 = vrot.slane %v3026_v11, 4 }
 0x75e   :  { %v3008_v23 = vadd.f32 %v3007_v38, %v3006_v5  ;;  %v3015_v58 = vadd.f32 %v3014_v39, %v3013_v44  ;;  %v3021_v59 = vadd.f32 %v3020_v43, %v3019_v29  ;;  %v3028_v18 = vadd.f32 %v3027_v45, %v3026_v11  ;;  %v5314_v5 = vld [vmem:[%s6744_s13 + $0x38] sm:$0xff]  ;;  %v5309_v44 = vld [vmem:[%s6744_s13 + $0x20] sm:$0xff]  ;;  %v5318_v11 = vld [vmem:[%s6744_s13 + $0x48] sm:$0xff] }
 0x75f   :  { %v5322_v38 = vld [vmem:[%s6744_s13 + $0x58] sm:$0xff]  ;;  %v5317_v39 = vld [vmem:[%s6744_s13 + $0x40] sm:$0xff]  ;;  %v5321_v43 = vld [vmem:[%s6744_s13 + $0x50] sm:$0xff] }
 0x760   :  { %v3016_v19 = vsel %vm3001_vm12, %v3008_v23, 0.0  ;;  %v3017_v34 = vsel %vm3001_vm12, %v3015_v58, 0.0  ;;  %v3022_v35 = vrot.slane %v3021_v59, 2  ;;  %v3029_v26 = vrot.slane %v3028_v18, 2  ;;  %v5326_v58 = vld [vmem:[%s6744_s13 + $0x68] sm:$0xff] }
 0x761   :  { %v3018_v47 = vadd.f32 %v3017_v34, %v3016_v19  ;;  %v5329_v19 = vld [vmem:[%s6744_s13 + $0x70] sm:$0xff]  ;;  %v5334_v34 = vld [vmem:[%s6744_s13 + $0x88] sm:$0xff] }
 0x762   :  { %v3023_v49 = vadd.f32 %v3022_v35, %v3021_v59  ;;  %v3030_v48 = vadd.f32 %v3029_v26, %v3028_v18  ;;  %v5330_v59 = vld [vmem:[%s6744_s13 + $0x78] sm:$0xff]  ;;  %v5325_v18 = vld [vmem:[%s6744_s13 + $0x60] sm:$0xff] }
 0x763   :  { %v3036_v57 = vmul.f32 0.03125, %v3018_v47  ;;  %v5333_v35 = vld [vmem:[%s6744_s13 + $0x80] sm:$0xff] }
 0x764   :  { %v3024_v62 = vrot.slane %v3023_v49, 1  ;;  %v3031_v60 = vrot.slane %v3030_v48, 1  ;;  %v3663_v47 = vld [vmem:[%s6745_s17] sm:$0xff] }
 0x765   :  { %v3038_v14 = vmul.f32 %v3036_v57, %v3036_v57 }
 0x766   :  { %v3025_v61 = vadd.f32 %v3024_v62, %v3023_v49  ;;  %v3032_v63 = vadd.f32 %v3031_v60, %v3030_v48 }
 0x768   :  { %v3033_v52 = vsel %vm3001_vm12, %v3025_v61, 0.0  ;;  %v3034_v8 = vsel %vm3001_vm12, %v3032_v63, 0.0 }
 0x769   :  { %v3035_v9 = vadd.f32 %v3034_v8, %v3033_v52 }
 0x76b   :  { %v3037_v15 = vmul.f32 0.03125, %v3035_v9 }
 0x76d   :  { %v3039_v2 = vsub.f32 %v3037_v15, %v3038_v14 }
 0x76f   :  { %v3042_v33 = vadd.f32 1e-05, %v3039_v2 }
 0x771   :  { %5422 = vrsqrt.f32 %v3042_v33  ;;  %vm3049_vm14 = vweird.f32 %v3042_v33 }
 0x777   :  { %v5423_v3 = vpop.eup %5422 }
 0x778   :  { %v3044_v24 = vmul.f32 %v5423_v3, %v3042_v33  ;;  %vm3050_vm13 = vweird.f32 %v5423_v3 }
 0x779   :  { %vm3051_vm15 = vmor %vm3049_vm14, %vm3050_vm13 }
 0x77a   :  { %v3045_v25 = vmul.f32 %v5423_v3, %v3044_v24 }
 0x77c   :  { %v3046_v51 = vmul.f32 0.5, %v3045_v25 }
 0x77e   :  { %v3047_v53 = vsub.f32 1.5, %v3046_v51 }
 0x780   :  { %v3048_v12 = vmul.f32 %v5423_v3, %v3047_v53 }
 0x782   :  { %v3052_v13 = vsel %vm3051_vm15, %v5423_v3, %v3048_v12 }
 0x783   :  { %v3053_v1 = vmul.f32 %v3052_v13, %v3040_v0 }
 0x785   :  { %5293 = vmatmul.msk.f32.vlgmr.msra.gmra.mxu0 %vm3001_vm12, %v3053_v1  ;;  %v3054_v36 = vmul.f32 %v3053_v1, %v3036_v57 }
 0x787   :  { %v3055_v6 = vsub.f32 %v3041_v20, %v3054_v36 }
 0x789   :  { %5294 = vmatmul.msk.f32.vlgmr.msra.gmra.mxu1 %vm3001_vm12, %v3055_v6 }
 0x802   :  { %v3077_v7 = vpop.f32.mrf.mxu0 }
 0x803   :  { %v3103_v21 = vperm.slane %v3077_v7, 0 }
 0x805   :  { %v3104_v31 = vmul.f32 %v3103_v21, %v6398_v37  ;;  %v3105_v40 = vmul.f32 %v3103_v21, %v6400_v16  ;;  %v5304_v37 = vld [vmem:[%s6744_s13 + $0x18] sm:$0xff]  ;;  %v3246_v16 = vld [vmem:[%s6744_s13 + $0x8] sm:$0xff] }
 0x806   :  { %v3100_v30 = vpop.f32.mrf.mxu1 }
 0x807   :  { %v3106_v50 = vperm.slane %v3100_v30, 0 }
 0x809   :  { %v3107_v32 = vadd.f32 %v3106_v50, %v3104_v31  ;;  %v3108_v46 = vadd.f32 %v3106_v50, %v3105_v40 }
 0x80b   :  { %v3109_v41 = vmax.f32 %v3107_v32, 0.0  ;;  %v3110_v22 = vmax.f32 %v3108_v46, 0.0 }
 0x80d   :  { %3130 = vmatpush.msra.mxu2 %v3109_v41  ;;  %3150 = vmatpush.msra.mxu3 %v3110_v22 }
 0x80e   :  { %3175 = vmatpush.msrb.mxu0 %v3109_v41  ;;  %3195 = vmatpush.msrb.mxu1 %v3110_v22 }
 0x80f   :  { %5295 = vmatmul.msk.f32.vlgmr.msra.gmra.mxu2 %vm3001_vm12, %v3111_v54  ;;  %5296 = vmatmul.msk.f32.vlgmr.msra.gmra.mxu3 %vm3001_vm12, %v3111_v54 }
 0x810   :  { %3220 = vmatpush.msrb.mxu2 %v3109_v41  ;;  %3240 = vmatpush.msrb.mxu3 %v3110_v22 }
 0x811   :  { %5298 = vmatmul.msk.f32.vlgmr.msrb.gmra.mxu0 %vm3001_vm12, %v5297_v56  ;;  %5299 = vmatmul.msk.f32.vlgmr.msrb.gmra.mxu1 %vm3001_vm12, %v5297_v56 }
 0x812   :  { %3267 = vmatpush.msra.mxu0 %v5304_v37  ;;  %3290 = vmatpush.msra.mxu1 %v5304_v37 }
 0x813   :  { %3310 = vmatpush.msra.mxu2 %v3246_v16  ;;  %3330 = vmatpush.msra.mxu3 %v3246_v16 }
 0x814   :  { %3268 = vmatpush.msra.mxu0 %v5303_v17  ;;  %3291 = vmatpush.msra.mxu1 %v5303_v17 }
 0x815   :  { %3311 = vmatpush.msra.mxu2 %v3245_v42  ;;  %3331 = vmatpush.msra.mxu3 %v3245_v42 }
 0x816   :  { %3353 = vmatpush.msrb.mxu0 %v5310_v4  ;;  %3373 = vmatpush.msrb.mxu1 %v5310_v4 }
 0x817   :  { %5301 = vmatmul.msk.f32.vlgmr.msrb.gmra.mxu2 %vm3001_vm12, %v5300_v55  ;;  %5302 = vmatmul.msk.f32.vlgmr.msrb.gmra.mxu3 %vm3001_vm12, %v5300_v55 }
 0x818   :  { %3401 = vmatpush.msrb.mxu2 %v5314_v5  ;;  %3424 = vmatpush.msrb.mxu3 %v5314_v5 }
 0x819   :  { %3354 = vmatpush.msrb.mxu0 %v5309_v44  ;;  %3374 = vmatpush.msrb.mxu1 %v5309_v44 }
 0x81a   :  { %3402 = vmatpush.msrb.mxu2 %v5313_v28  ;;  %3425 = vmatpush.msrb.mxu3 %v5313_v28 }
 0x88e   :  { %v3177_v45 = vpop.f32.mrf.mxu0  ;;  %v3197_v23 = vpop.f32.mrf.mxu1 }
 0x892   :  { %v3132_v10 = vpop.f32.mrf.mxu2  ;;  %v3152_v29 = vpop.f32.mrf.mxu3 }
 0x893   :  { %5305 = vmatmul.msk.f32.vlgmr.msra.gmra.mxu0 %vm2106_vm8, %v3132_v10  ;;  %5306 = vmatmul.msk.f32.vlgmr.msra.gmra.mxu1 %vm2106_vm8, %v3152_v29 }
 0x894   :  { %5307 = vmatmul.msk.f32.vlgmr.msra.gmra.mxu2 %vm2106_vm8, %v3132_v10  ;;  %5308 = vmatmul.msk.f32.vlgmr.msra.gmra.mxu3 %vm2106_vm8, %v3152_v29 }
 0x895   :  { %3449 = vmatpush.msra.mxu0 %v5318_v11  ;;  %3469 = vmatpush.msra.mxu1 %v5318_v11 }
 0x896   :  { %3494 = vmatpush.msra.mxu2 %v5322_v38  ;;  %3514 = vmatpush.msra.mxu3 %v5322_v38 }
 0x897   :  { %3450 = vmatpush.msra.mxu0 %v5317_v39  ;;  %3470 = vmatpush.msra.mxu1 %v5317_v39 }
 0x898   :  { %3495 = vmatpush.msra.mxu2 %v5321_v43  ;;  %3515 = vmatpush.msra.mxu3 %v5321_v43 }
 0x89a   :  { %v3222_v26 = vpop.f32.mrf.mxu2  ;;  %v3242_v27 = vpop.f32.mrf.mxu3 }
 0x89b   :  { %5311 = vmatmul.msk.f32.vlgmr.msrb.gmra.mxu0 %vm2106_vm8, %v3132_v10  ;;  %5312 = vmatmul.msk.f32.vlgmr.msrb.gmra.mxu1 %vm2106_vm8, %v3152_v29 }
 0x89c   :  { %5315 = vmatmul.msk.f32.vlgmr.msrb.gmra.mxu2 %vm2106_vm8, %v3177_v45  ;;  %5316 = vmatmul.msk.f32.vlgmr.msrb.gmra.mxu3 %vm2106_vm8, %v3197_v23 }
 0x89d   :  { %3542 = vmatpush.msrb.mxu0 %v5326_v58  ;;  %3565 = vmatpush.msrb.mxu1 %v5326_v58 }
 0x89e   :  { %3590 = vmatpush.msrb.mxu2 %v5330_v59  ;;  %3610 = vmatpush.msrb.mxu3 %v5330_v59 }
 0x89f   :  { %3543 = vmatpush.msrb.mxu0 %v5325_v18  ;;  %3566 = vmatpush.msrb.mxu1 %v5325_v18 }
 0x8a0   :  { %3591 = vmatpush.msrb.mxu2 %v5329_v19  ;;  %3611 = vmatpush.msrb.mxu3 %v5329_v19 }
 0x8a3   :  { %5319 = vmatmul.msk.f32.vlgmr.msra.gmra.mxu0 %vm2106_vm8, %v3177_v45  ;;  %5320 = vmatmul.msk.f32.vlgmr.msra.gmra.mxu1 %vm2106_vm8, %v3197_v23 }
 0x8a4   :  { %5323 = vmatmul.msk.f32.vlgmr.msra.gmra.mxu2 %vm2106_vm8, %v3177_v45  ;;  %5324 = vmatmul.msk.f32.vlgmr.msra.gmra.mxu3 %vm2106_vm8, %v3197_v23 }
 0x8a5   :  { %3635 = vmatpush.msra.mxu0 %v5334_v34  ;;  %3655 = vmatpush.msra.mxu1 %v5334_v34 }
 0x8a6   :  { %3682 = vmatpush.msra.mxu2 %v3663_v47  ;;  %3705 = vmatpush.msra.mxu3 %v3663_v47 }
 0x8a7   :  { %3636 = vmatpush.msra.mxu0 %v5333_v35  ;;  %3656 = vmatpush.msra.mxu1 %v5333_v35 }
 0x8ab   :  { %5327 = vmatmul.msk.f32.vlgmr.msrb.gmra.mxu0 %vm2106_vm8, %v3222_v26  ;;  %5328 = vmatmul.msk.f32.vlgmr.msrb.gmra.mxu1 %vm2106_vm8, %v3242_v27 }
 0x8ac   :  { %5331 = vmatmul.msk.f32.vlgmr.msrb.gmra.mxu2 %vm2106_vm8, %v3222_v26  ;;  %5332 = vmatmul.msk.f32.vlgmr.msrb.gmra.mxu3 %vm2106_vm8, %v3242_v27 }
 0x8ad   :  { %3730 = vmatpush.msrb.mxu0 %v3663_v47  ;;  %3753 = vmatpush.msrb.mxu1 %v3663_v47 }
 0x8b3   :  { %5335 = vmatmul.msk.f32.vlgmr.msra.gmra.mxu0 %vm2106_vm8, %v3222_v26  ;;  %5336 = vmatmul.msk.f32.vlgmr.msra.gmra.mxu1 %vm2106_vm8, %v3242_v27 }
 0x910   :  { %v3270_v49 = vpop.f32.mrf.mxu0  ;;  %v3293_v48 = vpop.f32.mrf.mxu1 }
 0x917   :  { %v3313_v62 = vpop.f32.mrf.mxu2  ;;  %v3333_v60 = vpop.f32.mrf.mxu3 }
 0x918   :  { %v3356_v61 = vpop.f32.mrf.mxu0  ;;  %v3376_v63 = vpop.f32.mrf.mxu1  ;;  %v3314_v57 = vadd.f32 %v3313_v62, %v3270_v49  ;;  %v3334_v52 = vadd.f32 %v3333_v60, %v3293_v48  ;;  %v3813_v62 = vld [vmem:[%s6746_s25] sm:$0xff] }
 0x919   :  { %3832 = vmatpush.msrb.mxu2 %v3813_v62  ;;  %3855 = vmatpush.msrb.mxu3 %v3813_v62 }
 0x91a   :  { %v3379_v2 = vadd.f32 %v3356_v61, %v3314_v57  ;;  %v3380_v33 = vadd.f32 %v3376_v63, %v3334_v52 }
 0x91f   :  { %v3404_v8 = vpop.f32.mrf.mxu2  ;;  %v3427_v9 = vpop.f32.mrf.mxu3 }
 0x920   :  { %v3452_v14 = vpop.f32.mrf.mxu0  ;;  %v3472_v15 = vpop.f32.mrf.mxu1  ;;  %v3430_v3 = vadd.f32 %v3404_v8, %v3379_v2  ;;  %v3431_v24 = vadd.f32 %v3427_v9, %v3380_v33  ;;  %v3870_v2 = vld [vmem:[%s6747_s29 + $0x8] sm:$0xff]  ;;  %v3869_v33 = vld [vmem:[%s6747_s29] sm:$0xff] }
 0x922   :  { %v3475_v53 = vadd.f32 %v3452_v14, %v3430_v3  ;;  %v3476_v12 = vadd.f32 %v3472_v15, %v3431_v24 }
 0x927   :  { %v3497_v25 = vpop.f32.mrf.mxu2  ;;  %v3517_v51 = vpop.f32.mrf.mxu3 }
 0x928   :  { %v3545_v0 = vpop.f32.mrf.mxu0  ;;  %v3568_v13 = vpop.f32.mrf.mxu1  ;;  %v3520_v1 = vadd.f32 %v3497_v25, %v3475_v53  ;;  %v3521_v20 = vadd.f32 %v3517_v51, %v3476_v12  ;;  %v5414_v51 = vld [vmem:[%s6748_s3 + $0x3] ss:$0 sm:$0xff] }
 0x929   :  { %4040 = vrot.lane.b32.xlu0 %v5414_v51, %s5601_s19 }
 0x92a   :  { %v3571_v36 = vadd.f32 %v3545_v0, %v3520_v1  ;;  %v3572_v6 = vadd.f32 %v3568_v13, %v3521_v20 }
 0x92f   :  { %v3593_v7 = vpop.f32.mrf.mxu2  ;;  %v3613_v21 = vpop.f32.mrf.mxu3 }
 0x930   :  { %v3616_v30 = vadd.f32 %v3593_v7, %v3571_v36  ;;  %v3617_v31 = vadd.f32 %v3613_v21, %v3572_v6  ;;  %v3638_v40 = vpop.f32.mrf.mxu0  ;;  %v3658_v50 = vpop.f32.mrf.mxu1  ;;  %v3797_v36 = vld [vmem:[%s6749_s14] sm:$0x1] }
 0x932   :  { %v6473_v32 = vadd.f32 %v3638_v40, %v3616_v30  ;;  %v6475_v46 = vadd.f32 %v3658_v50, %v3617_v31  ;;  %v3798_v30 = vld [vmem:[%s6749_s14 + $0x1] sm:$0x1]  ;;  %v5602_v50 = vmov 0.0  }
 0x934   :  { %v3710_v41 = vmul.f32 %v6473_v32, %v6473_v32  ;;  %v3711_v22 = vmul.f32 %v6475_v46, %v6475_v46  ;;  %5337 = vmatmul.msk.f32.vlgmr.msra.gmra.mxu2 %vm3001_vm12, %v6473_v32  ;;  %5338 = vmatmul.msk.f32.vlgmr.msra.gmra.mxu3 %vm3001_vm12, %v6475_v46 }
 0x935   :  { %3938 = vmatpush.msra.mxu2 %v3870_v2  ;;  %4097 = vmatpush.msra.mxu3 %v3870_v2 }
 0x936   :  { %5339 = vmatmul.msk.f32.vlgmr.msrb.gmra.mxu0 %vm3001_vm12, %v3710_v41  ;;  %5340 = vmatmul.msk.f32.vlgmr.msrb.gmra.mxu1 %vm3001_vm12, %v3711_v22  ;;  %v3868_v41 = vld [vmem:[%s6750_s24] sm:$0xff] }
 0x937   :  { %3939 = vmatpush.msra.mxu2 %v3869_v33  ;;  %4098 = vmatpush.msra.mxu3 %v3869_v33  ;;  %v5415_v22 = vld [vmem:[%s6748_s3 + $0x2] ss:$0 sm:$0xff] }
 0x938   :  { %3889 = vmatpush.msra.mxu0 %v3868_v41  ;;  %3912 = vmatpush.msra.mxu1 %v3868_v41 }
 0x939   :  { %4033 = vrot.lane.b32.xlu1 %v5415_v22, %s5601_s19 }
 0x93a   :  { %4122 = vmatpush.msrb.mxu0 %v3870_v2  ;;  %4285 = vmatpush.msrb.mxu1 %v3870_v2 }
 0x93c   :  { %4123 = vmatpush.msrb.mxu0 %v3869_v33  ;;  %4286 = vmatpush.msrb.mxu1 %v3869_v33 }
 0x9b3   :  { %v3732_v54 = vpop.f32.mrf.mxu0  ;;  %v3755_v56 = vpop.f32.mrf.mxu1 }
 0x9b4   :  { %v3776_v37 = vsel %vm3758_vm0, %v3732_v54, 0.0  ;;  %v3783_v16 = vsel %vm3758_vm0, %v3755_v56, 0.0 }
 0x9b5   :  { %v3777_v55 = vrot.slane %v3776_v37, 4  ;;  %v3784_v17 = vrot.slane %v3783_v16, 4 }
 0x9b7   :  { %v3778_v42 = vadd.f32 %v3777_v55, %v3776_v37  ;;  %v3785_v4 = vadd.f32 %v3784_v17, %v3783_v16  ;;  %v3684_v5 = vpop.f32.mrf.mxu2  ;;  %v3707_v44 = vpop.f32.mrf.mxu3 }
 0x9b8   :  { %v3759_v28 = vsel %vm3758_vm0, %v3684_v5, 0.0  ;;  %v3766_v10 = vsel %vm3758_vm0, %v3707_v44, 0.0 }
 0x9b9   :  { %v3779_v29 = vrot.slane %v3778_v42, 2  ;;  %v3786_v11 = vrot.slane %v3785_v4, 2  ;;  %v3760_v38 = vrot.slane %v3759_v28, 4  ;;  %v3767_v39 = vrot.slane %v3766_v10, 4 }
 0x9bb   :  { %v3780_v43 = vadd.f32 %v3779_v29, %v3778_v42  ;;  %v3787_v45 = vadd.f32 %v3786_v11, %v3785_v4  ;;  %v3761_v23 = vadd.f32 %v3760_v38, %v3759_v28  ;;  %v3768_v58 = vadd.f32 %v3767_v39, %v3766_v10  ;;  %v6505_v42 = vpop.permute.xlu0 %4040 }
 0x9bd   :  { %v3781_v59 = vrot.slane %v3780_v43, 1  ;;  %v3788_v18 = vrot.slane %v3787_v45, 1  ;;  %v3762_v19 = vrot.slane %v3761_v23, 2  ;;  %v3769_v34 = vrot.slane %v3768_v58, 2 }
 0x9bf   :  { %v3782_v35 = vadd.f32 %v3781_v59, %v3780_v43  ;;  %v3789_v26 = vadd.f32 %v3788_v18, %v3787_v45  ;;  %v3763_v27 = vadd.f32 %v3762_v19, %v3761_v23  ;;  %v3770_v49 = vadd.f32 %v3769_v34, %v3768_v58 }
 0x9c1   :  { %v3764_v48 = vrot.slane %v3763_v27, 1  ;;  %v3771_v47 = vrot.slane %v3770_v49, 1  ;;  %v3790_v60 = vsel %vm3001_vm12, %v3782_v35, 0.0  ;;  %v3791_v61 = vsel %vm3001_vm12, %v3789_v26, 0.0 }
 0x9c2   :  { %v3792_v9 = vadd.f32 %v3791_v61, %v3790_v60 }
 0x9c3   :  { %v3765_v63 = vadd.f32 %v3764_v48, %v3763_v27  ;;  %v3772_v57 = vadd.f32 %v3771_v47, %v3770_v49 }
 0x9c4   :  { %v3794_v3 = vmul.f32 0.125, %v3792_v9 }
 0x9c5   :  { %v3773_v52 = vsel %vm3001_vm12, %v3765_v63, 0.0  ;;  %v3774_v8 = vsel %vm3001_vm12, %v3772_v57, 0.0 }
 0x9c6   :  { %v3775_v14 = vadd.f32 %v3774_v8, %v3773_v52 }
 0x9c8   :  { %v3793_v15 = vmul.f32 0.125, %v3775_v14 }
 0x9ca   :  { %v3795_v24 = vmul.f32 %v3793_v15, %v3793_v15 }
 0x9cc   :  { %v3796_v25 = vsub.f32 %v3794_v3, %v3795_v24 }
 0x9ce   :  { %v3799_v53 = vadd.f32 1e-05, %v3796_v25 }
 0x9d0   :  { %5424 = vrsqrt.f32 %v3799_v53  ;;  %vm3806_vm2 = vweird.f32 %v3799_v53 }
 0x9d6   :  { %v5425_v12 = vpop.eup %5424 }
 0x9d7   :  { %v3801_v0 = vmul.f32 %v5425_v12, %v3799_v53  ;;  %vm3807_vm1 = vweird.f32 %v5425_v12 }
 0x9d8   :  { %vm3808_vm3 = vmor %vm3806_vm2, %vm3807_vm1 }
 0x9d9   :  { %v3802_v13 = vmul.f32 %v5425_v12, %v3801_v0  ;;  %v4034_v0 = vpop.permute.xlu1 %4033 }
 0x9db   :  { %v3803_v1 = vmul.f32 0.5, %v3802_v13 }
 0x9dd   :  { %v3804_v20 = vsub.f32 1.5, %v3803_v1 }
 0x9df   :  { %v3805_v6 = vmul.f32 %v5425_v12, %v3804_v20 }
 0x9e1   :  { %v3809_v7 = vsel %vm3808_vm3, %v5425_v12, %v3805_v6  ;;  %v5417_v12 = vld [vmem:[%s6748_s3 + $0x1] ss:$0 sm:$0xff] }
 0x9e2   :  { %v3810_v21 = vmul.f32 %v3809_v7, %v3797_v36 }
 0x9e4   :  { %v3811_v31 = vmul.f32 %v3810_v21, %v3793_v15  ;;  %5341 = vmatmul.msk.f32.vlgmr.msrb.gmra.mxu2 %vm3001_vm12, %v3810_v21 }
 0x9e5   :  { %4311 = vmatpush.msrb.mxu2 %v3870_v2 }
 0x9e6   :  { %v3812_v40 = vsub.f32 %v3798_v30, %v3811_v31 }
 0x9e7   :  { %4312 = vmatpush.msrb.mxu2 %v3869_v33 }
 0x9e8   :  { %5342 = vmatmul.msk.f32.vlgmr.msrb.gmra.mxu3 %vm3001_vm12, %v3812_v40 }
 0x9e9   :  { %4471 = vmatpush.msrb.mxu3 %v3870_v2 }
 0x9eb   :  { %4472 = vmatpush.msrb.mxu3 %v3869_v33 }
 0x9ec   :  { %3940 = vmatmul.f32.vlgmr.msra.gmra.mxu2 %v5602_v50 }
 0xa67   :  { %v3834_v54 = vpop.f32.mrf.mxu2 }
 0xa68   :  { %v3860_v56 = vperm.slane %v3834_v54, 0 }
 0xa6a   :  { %v3861_v16 = vmul.f32 %v3860_v56, %v6473_v32  ;;  %v3862_v55 = vmul.f32 %v3860_v56, %v6475_v46  ;;  %v3917_v46 = vld [vmem:[%s6748_s3] sm:$0x1] }
 0xa6b   :  { %v3857_v37 = vpop.f32.mrf.mxu3 }
 0xa6c   :  { %v3863_v17 = vperm.slane %v3857_v37, 0 }
 0xa6e   :  { %v3864_v4 = vadd.f32 %v3863_v17, %v3861_v16  ;;  %v3865_v5 = vadd.f32 %v3863_v17, %v3862_v55 }
 0xa6f   :  { %v3941_v44 = vpop.f32.mrf.mxu2 }
 0xa70   :  { %v3866_v28 = vmax.f32 %v3864_v4, 0.0  ;;  %v3867_v10 = vmax.f32 %v3865_v5, 0.0  ;;  %v4043_v29 = vadd.f32 %v6505_v42, %v3941_v44 }
 0xa72   :  { %5343 = vmatmul.msk.f32.vlgmr.msra.gmra.mxu0 %vm3001_vm12, %v3866_v28  ;;  %5344 = vmatmul.msk.f32.vlgmr.msra.gmra.mxu1 %vm3001_vm12, %v3867_v10 }
 0xa73   :  { %4045 = vrot.lane.b32.xlu0 %v4043_v29, %s5603_s30  ;;  %4497 = vmatpush.msra.mxu0 %v3870_v2 }
 0xa75   :  { %4498 = vmatpush.msra.mxu0 %v3869_v33 }
 0xae5   :  { %v4046_v9 = vpop.permute.xlu0 %4045 }
 0xaef   :  { %v6511_v32 = vpop.f32.mrf.mxu0  ;;  %v6514_v11 = vpop.f32.mrf.mxu1 }
 0xaf0   :  { %v6517_v38 = vadd.f32 %v3941_v44, %v6511_v32  ;;  %v6520_v39 = vadd.f32 %v3941_v44, %v6514_v11  ;;  %v6529_v13 = vadd.f32 %v4034_v0, %v6514_v11  ;;  %v6534_v6 = vadd.f32 %v4034_v0, %v6511_v32 }
 0xaf2   :  { %v3946_v43 = vadd.f32 %v6517_v38, %v3917_v46  ;;  %v3947_v45 = vadd.f32 %v6520_v39, %v3917_v46 }
 0xaf4   :  { %v5345_v23 = vmul.f32 -1.442695, %v3946_v43  ;;  %v5346_v58 = vmul.f32 -1.442695, %v3947_v45 }
 0xaf6   :  { %5426 = vpow2.f32 %v5345_v23 }
 0xaf7   :  { %5428 = vpow2.f32 %v5346_v58 }
 0xafc   :  { %v5427_v59 = vpop.eup %5426 }
 0xafd   :  { %v5429_v18 = vpop.eup %5428  ;;  %v3954_v19 = vadd.f32 1.0, %v5427_v59 }
 0xafe   :  { %v3955_v34 = vadd.f32 1.0, %v5429_v18 }
 0xaff   :  { %5430 = vrcp.f32 %v3954_v19  ;;  %v3967_v47 = vand.u32 2147483648, %v3954_v19  ;;  %v3965_v61 = vand.u32 2147483647, %v3954_v19  ;;  %vm3961_vm6 = vweird.f32 %v3954_v19 }
 0xb00   :  { %5432 = vrcp.f32 %v3955_v34  ;;  %v3982_v63 = vand.u32 2147483648, %v3955_v34  ;;  %v3980_v52 = vand.u32 2147483647, %v3955_v34  ;;  %vm3976_vm9 = vweird.f32 %v3955_v34 }
 0xb01   :  { %v3968_v14 = vor.u32 1.1754944e-38, %v3967_v47  ;;  %vm3966_vm10 = vcmp.eq.f32.partialorder %v3965_v61, 8.507059e+37 }
 0xb02   :  { %v3983_v33 = vor.u32 1.1754944e-38, %v3982_v63  ;;  %vm3981_vm12 = vcmp.eq.f32.partialorder %v3980_v52, 8.507059e+37 }
 0xb05   :  { %v5431_v35 = vpop.eup %5430 }
 0xb06   :  { %v5433_v26 = vpop.eup %5432  ;;  %v3957_v27 = vmul.f32 %v5431_v35, %v3954_v19  ;;  %vm3962_vm4 = vweird.f32 %v5431_v35 }
 0xb07   :  { %v3972_v49 = vmul.f32 %v5433_v26, %v3955_v34  ;;  %vm3977_vm5 = vweird.f32 %v5433_v26  ;;  %vm3963_vm7 = vmor %vm3961_vm6, %vm3962_vm4 }
 0xb08   :  { %v3958_v48 = vsub.f32 1.0, %v3957_v27  ;;  %vm3978_vm11 = vmor %vm3976_vm9, %vm3977_vm5 }
 0xb09   :  { %v3973_v62 = vsub.f32 1.0, %v3972_v49 }
 0xb0a   :  { %v3959_v60 = vmul.f32 %v5431_v35, %v3958_v48 }
 0xb0b   :  { %v3974_v57 = vmul.f32 %v5433_v26, %v3973_v62 }
 0xb0c   :  { %v3960_v8 = vadd.f32 %v5431_v35, %v3959_v60 }
 0xb0d   :  { %v3975_v15 = vadd.f32 %v5433_v26, %v3974_v57 }
 0xb0e   :  { %v3964_v2 = vsel %vm3963_vm7, %v5431_v35, %v3960_v8 }
 0xb0f   :  { %v3969_v3 = vsel %vm3966_vm10, %v3968_v14, %v3964_v2  ;;  %v3979_v24 = vsel %vm3978_vm11, %v5433_v26, %v3975_v15 }
 0xb10   :  { %v4048_v25 = vmul.f32 %v4046_v9, %v3969_v3  ;;  %v3984_v51 = vsel %vm3981_vm12, %v3983_v33, %v3979_v24 }
 0xb11   :  { %v4049_v53 = vmul.f32 %v4046_v9, %v3984_v51 }
 0xb12   :  { %4052 = vrot.lane.b32.xlu1 %v4048_v25, %s5601_s19 }
 0xb13   :  { %4054 = vrot.lane.b32.xlu2 %v4049_v53, %s5601_s19 }
 0xb1b   :  { %3988 = vrot.lane.b32.xlu2 %v5417_v12, %s5604_s6 }
 0xb6d   :  { %v4055_v1 = vpop.permute.xlu2 %4054 }
 0xb6e   :  { %v4059_v20 = vadd.f32 %v4055_v1, %v6529_v13 }
 0xb70   :  { %5434 = vtanh.f32 %v4059_v20 }
 0xb75   :  { %v6538_v31 = vpop.permute.xlu2 %3988 }
 0xb76   :  { %v5435_v36 = vpop.eup %5434  ;;  %v3992_v40 = vadd.f32 %v6538_v31, %v6520_v39  ;;  %v3991_v54 = vadd.f32 %v6538_v31, %v6517_v38 }
 0xb77   :  { %4068 = vrot.lane.b32.xlu1 %v5435_v36, %s5605_s12 }
 0xb78   :  { %v5348_v50 = vmul.f32 -1.442695, %v3992_v40  ;;  %v5347_v37 = vmul.f32 -1.442695, %v3991_v54 }
 0xb84   :  { %v4053_v7 = vpop.permute.xlu1 %4052 }
 0xb85   :  { %v4058_v21 = vadd.f32 %v4053_v7, %v6534_v6 }
 0xb87   :  { %5436 = vtanh.f32 %v4058_v21 }
 0xb88   :  { %5438 = vpow2.f32 %v5348_v50 }
 0xb8d   :  { %v5437_v30 = vpop.eup %5436 }
 0xb8e   :  { %4066 = vrot.lane.b32.xlu0 %v5437_v30, %s5605_s12  ;;  %v5439_v41 = vpop.eup %5438 }
 0xb8f   :  { %v4000_v22 = vadd.f32 1.0, %v5439_v41 }
 0xb91   :  { %5440 = vrcp.f32 %v4000_v22  ;;  %v4027_v28 = vand.u32 2147483648, %v4000_v22  ;;  %vm4021_vm14 = vweird.f32 %v4000_v22  ;;  %v4025_v10 = vand.u32 2147483647, %v4000_v22 }
 0xb92   :  { %5442 = vpow2.f32 %v5347_v37 }
 0xb93   :  { %v4028_v46 = vor.u32 1.1754944e-38, %v4027_v28  ;;  %vm4026_vm0 = vcmp.eq.f32.partialorder %v4025_v10, 8.507059e+37 }
 0xb97   :  { %v5441_v56 = vpop.eup %5440 }
 0xb98   :  { %v4017_v16 = vmul.f32 %v5441_v56, %v4000_v22  ;;  %v5443_v17 = vpop.eup %5442  ;;  %vm4022_vm13 = vweird.f32 %v5441_v56 }
 0xb99   :  { %v3999_v5 = vadd.f32 1.0, %v5443_v17  ;;  %vm4023_vm15 = vmor %vm4021_vm14, %vm4022_vm13 }
 0xb9a   :  { %v4018_v55 = vsub.f32 1.0, %v4017_v16 }
 0xb9b   :  { %5444 = vrcp.f32 %v3999_v5  ;;  %v4012_v26 = vand.u32 2147483648, %v3999_v5  ;;  %vm4006_vm2 = vweird.f32 %v3999_v5  ;;  %v4010_v27 = vand.u32 2147483647, %v3999_v5 }
 0xb9c   :  { %v4019_v4 = vmul.f32 %v5441_v56, %v4018_v55 }
 0xb9d   :  { %v4013_v48 = vor.u32 1.1754944e-38, %v4012_v26  ;;  %vm4011_vm4 = vcmp.eq.f32.partialorder %v4010_v27, 8.507059e+37 }
 0xb9e   :  { %v4020_v44 = vadd.f32 %v5441_v56, %v4019_v4 }
 0xba0   :  { %v4024_v29 = vsel %vm4023_vm15, %v5441_v56, %v4020_v44 }
 0xba1   :  { %v4029_v39 = vsel %vm4026_vm0, %v4028_v46, %v4024_v29  ;;  %v5445_v38 = vpop.eup %5444 }
 0xba2   :  { %v4063_v43 = vsub.f32 1.0, %v4029_v39  ;;  %v4002_v23 = vmul.f32 %v5445_v38, %v3999_v5  ;;  %v4075_v58 = vmul.f32 0.0, %v4029_v39  ;;  %vm4007_vm1 = vweird.f32 %v5445_v38 }
 0xba3   :  { %vm4008_vm3 = vmor %vm4006_vm2, %vm4007_vm1 }
 0xba4   :  { %v4003_v19 = vsub.f32 1.0, %v4002_v23 }
 0xba6   :  { %v4004_v34 = vmul.f32 %v5445_v38, %v4003_v19 }
 0xba8   :  { %v4005_v35 = vadd.f32 %v5445_v38, %v4004_v34 }
 0xbaa   :  { %v4009_v49 = vsel %vm4008_vm3, %v5445_v38, %v4005_v35 }
 0xbab   :  { %v4014_v47 = vsel %vm4011_vm4, %v4013_v48, %v4009_v49 }
 0xbac   :  { %v4062_v62 = vsub.f32 1.0, %v4014_v47  ;;  %v4074_v61 = vmul.f32 0.0, %v4014_v47 }
 0xbe9   :  { %v4069_v45 = vpop.permute.xlu1 %4068 }
 0xbea   :  { %v4073_v59 = vmul.f32 %v4069_v45, %v4063_v43 }
 0xbec   :  { %v6544_v18 = vadd.f32 %v4075_v58, %v4073_v59 }
 0xbee   :  { %4104 = vrot.lane.b32.xlu0 %v6544_v18, %s5605_s12  ;;  %v4258_v5 = vrot.slane %v6544_v18, 7  ;;  %v6571_v18 = vld [vmem:[%s6748_s3] ss:$0 sm:$0xff] }
 0xc00   :  { %v4067_v60 = vpop.permute.xlu0 %4066 }
 0xc01   :  { %v4072_v63 = vmul.f32 %v4067_v60, %v4062_v62 }
 0xc03   :  { %v4076_v57 = vadd.f32 %v4074_v61, %v4072_v63 }
 0xc05   :  { %4079 = vrot.lane.b32.xlu2 %v4076_v57, %s5605_s12  ;;  %v4257_v45 = vrot.slane %v4076_v57, 7 }
 0xc5f   :  { %v4080_v52 = vpop.permute.xlu2 %4079 }
 0xc60   :  { %v4105_v8 = vpop.permute.xlu0 %4104  ;;  %5349 = vmatmul.msk.f32.vlgmr.msra.gmra.mxu3 %vm2106_vm8, %v4080_v52 }
 0xc61   :  { %5350 = vmatmul.msk.f32.vlgmr.msrb.gmra.mxu0 %vm2106_vm8, %v4105_v8 }
 0xcde   :  { %v4125_v9 = vpop.f32.mrf.mxu0 }
 0xcdf   :  { %v4131_v14 = vrot.slane %v4125_v9, 7  ;;  %v4220_v15 = vadd.f32 %v4125_v9, %v6505_v42 }
 0xce1   :  { %v4135_v2 = vadd.f32 %v4131_v14, %v6514_v11  ;;  %v4224_v33 = vrot.slane %v4220_v15, 7 }
 0xce3   :  { %v4180_v3 = vadd.f32 %v4135_v2, %v6538_v31  ;;  %4227 = vrot.lane.b32.xlu2 %v4224_v33, %s5603_s30  ;;  %v4100_v24 = vpop.f32.mrf.mxu3  ;;  %v4140_v19 = vadd.f32 %v6571_v18, %v4135_v2 }
 0xce4   :  { %v4130_v25 = vrot.slane %v4100_v24, 7  ;;  %v4219_v51 = vadd.f32 %v4100_v24, %v6505_v42 }
 0xce5   :  { %v5354_v53 = vmul.f32 -1.442695, %v4180_v3  ;;  %v5352_v34 = vmul.f32 -1.442695, %v4140_v19 }
 0xce6   :  { %v4134_v12 = vadd.f32 %v4130_v25, %v6511_v32  ;;  %v4223_v0 = vrot.slane %v4219_v51, 7 }
 0xce7   :  { %5446 = vpow2.f32 %v5354_v53 }
 0xce8   :  { %v4179_v1 = vadd.f32 %v4134_v12, %v6538_v31  ;;  %4225 = vrot.lane.b32.xlu1 %v4223_v0, %s5603_s30  ;;  %v4139_v49 = vadd.f32 %v6571_v18, %v4134_v12 }
 0xcea   :  { %v5353_v20 = vmul.f32 -1.442695, %v4179_v1  ;;  %v5351_v47 = vmul.f32 -1.442695, %v4139_v49 }
 0xcec   :  { %5448 = vpow2.f32 %v5353_v20 }
 0xced   :  { %v5447_v36 = vpop.eup %5446 }
 0xcee   :  { %v4188_v7 = vadd.f32 1.0, %v5447_v36 }
 0xcf0   :  { %5450 = vrcp.f32 %v4188_v7  ;;  %v4215_v22 = vand.u32 2147483648, %v4188_v7  ;;  %v4213_v37 = vand.u32 2147483647, %v4188_v7  ;;  %vm4209_vm6 = vweird.f32 %v4188_v7 }
 0xcf2   :  { %v5449_v21 = vpop.eup %5448  ;;  %v4216_v17 = vor.u32 1.1754944e-38, %v4215_v22  ;;  %vm4214_vm9 = vcmp.eq.f32.partialorder %v4213_v37, 8.507059e+37 }
 0xcf3   :  { %v4187_v30 = vadd.f32 1.0, %v5449_v21 }
 0xcf5   :  { %5452 = vrcp.f32 %v4187_v30  ;;  %v4200_v28 = vand.u32 2147483648, %v4187_v30  ;;  %v4198_v46 = vand.u32 2147483647, %v4187_v30  ;;  %vm4194_vm11 = vweird.f32 %v4187_v30 }
 0xcf6   :  { %v5451_v40 = vpop.eup %5450  ;;  %5454 = vpow2.f32 %v5352_v34 }
 0xcf7   :  { %v4205_v50 = vmul.f32 %v5451_v40, %v4188_v7  ;;  %vm4210_vm5 = vweird.f32 %v5451_v40  ;;  %v4201_v43 = vor.u32 1.1754944e-38, %v4200_v28  ;;  %vm4199_vm13 = vcmp.eq.f32.partialorder %v4198_v46, 8.507059e+37 }
 0xcf8   :  { %vm4211_vm7 = vmor %vm4209_vm6, %vm4210_vm5 }
 0xcf9   :  { %v4206_v41 = vsub.f32 1.0, %v4205_v50 }
 0xcfb   :  { %v5453_v54 = vpop.eup %5452  ;;  %v4207_v56 = vmul.f32 %v5451_v40, %v4206_v41 }
 0xcfc   :  { %v4190_v16 = vmul.f32 %v5453_v54, %v4187_v30  ;;  %vm4195_vm10 = vweird.f32 %v5453_v54  ;;  %v5455_v35 = vpop.eup %5454 }
 0xcfd   :  { %v4208_v55 = vadd.f32 %v5451_v40, %v4207_v56  ;;  %vm4196_vm12 = vmor %vm4194_vm11, %vm4195_vm10  ;;  %v4148_v26 = vadd.f32 1.0, %v5455_v35 }
 0xcfe   :  { %v4191_v4 = vsub.f32 1.0, %v4190_v16 }
 0xcff   :  { %v4212_v44 = vsel %vm4211_vm7, %v5451_v40, %v4208_v55  ;;  %5456 = vrcp.f32 %v4148_v26  ;;  %v4175_v57 = vand.u32 2147483648, %v4148_v26  ;;  %vm4169_vm15 = vweird.f32 %v4148_v26 }
 0xd00   :  { %v6560_v10 = vsel %vm4214_vm9, %v4216_v17, %v4212_v44  ;;  %v4192_v29 = vmul.f32 %v5453_v54, %v4191_v4  ;;  %5458 = vpow2.f32 %v5351_v47  ;;  %v4173_v52 = vand.u32 2147483647, %v4148_v26 }
 0xd01   :  { %v6563_v39 = vmul.f32 %v4258_v5, %v6560_v10  ;;  %v4176_v14 = vor.u32 1.1754944e-38, %v4175_v57  ;;  %v4246_v56 = vsub.f32 1.0, %v6560_v10 }
 0xd02   :  { %v4193_v38 = vadd.f32 %v5453_v54, %v4192_v29  ;;  %vm4174_vm1 = vcmp.eq.f32.partialorder %v4173_v52, 8.507059e+37 }
 0xd04   :  { %v4197_v23 = vsel %vm4196_vm12, %v5453_v54, %v4193_v38 }
 0xd05   :  { %v6565_v58 = vsel %vm4199_vm13, %v4201_v43, %v4197_v23  ;;  %v5457_v27 = vpop.eup %5456 }
 0xd06   :  { %v6568_v59 = vmul.f32 %v4257_v45, %v6565_v58  ;;  %v4165_v48 = vmul.f32 %v5457_v27, %v4148_v26  ;;  %vm4170_vm14 = vweird.f32 %v5457_v27  ;;  %v5459_v63 = vpop.eup %5458  ;;  %v4245_v17 = vsub.f32 1.0, %v6565_v58 }
 0xd07   :  { %vm4171_vm0 = vmor %vm4169_vm15, %vm4170_vm14  ;;  %v4147_v8 = vadd.f32 1.0, %v5459_v63 }
 0xd08   :  { %v4166_v62 = vsub.f32 1.0, %v4165_v48 }
 0xd09   :  { %5460 = vrcp.f32 %v4147_v8  ;;  %v4160_v12 = vand.u32 2147483648, %v4147_v8  ;;  %vm4154_vm3 = vweird.f32 %v4147_v8  ;;  %v4158_v0 = vand.u32 2147483647, %v4147_v8 }
 0xd0a   :  { %v4167_v60 = vmul.f32 %v5457_v27, %v4166_v62 }
 0xd0b   :  { %v4161_v20 = vor.u32 1.1754944e-38, %v4160_v12  ;;  %vm4159_vm5 = vcmp.eq.f32.partialorder %v4158_v0, 8.507059e+37 }
 0xd0c   :  { %v4168_v61 = vadd.f32 %v5457_v27, %v4167_v60 }
 0xd0e   :  { %v4172_v9 = vsel %vm4171_vm0, %v5457_v27, %v4168_v61 }
 0xd0f   :  { %v4177_v2 = vsel %vm4174_vm1, %v4176_v14, %v4172_v9  ;;  %v5461_v3 = vpop.eup %5460 }
 0xd10   :  { %v4150_v24 = vmul.f32 %v5461_v3, %v4147_v8  ;;  %vm4155_vm2 = vweird.f32 %v5461_v3 }
 0xd11   :  { %vm4156_vm4 = vmor %vm4154_vm3, %vm4155_vm2 }
 0xd12   :  { %v4151_v25 = vsub.f32 1.0, %v4150_v24 }
 0xd14   :  { %v4152_v51 = vmul.f32 %v5461_v3, %v4151_v25 }
 0xd16   :  { %v4153_v53 = vadd.f32 %v5461_v3, %v4152_v51 }
 0xd18   :  { %v4157_v1 = vsel %vm4156_vm4, %v5461_v3, %v4153_v53 }
 0xd19   :  { %v4162_v36 = vsel %vm4159_vm5, %v4161_v20, %v4157_v1 }
 0xd3d   :  { %v4228_v15 = vpop.permute.xlu2 %4227 }
 0xd3e   :  { %v4232_v33 = vmul.f32 %v4228_v15, %v4177_v2 }
 0xd40   :  { %4237 = vrot.lane.b32.xlu1 %v4232_v33, %s5601_s19 }
 0xd5a   :  { %v4226_v7 = vpop.permute.xlu1 %4225 }
 0xd5b   :  { %v4231_v21 = vmul.f32 %v4226_v7, %v4162_v36 }
 0xd5d   :  { %4235 = vrot.lane.b32.xlu0 %v4231_v21, %s5601_s19 }
 0xdb2   :  { %v4238_v30 = vpop.permute.xlu1 %4237 }
 0xdb3   :  { %v4242_v40 = vadd.f32 %v4238_v30, %v6529_v13 }
 0xdb5   :  { %5462 = vtanh.f32 %v4242_v40 }
 0xdbb   :  { %v5463_v50 = vpop.eup %5462 }
 0xdbc   :  { %4251 = vrot.lane.b32.xlu0 %v5463_v50, %s5605_s12 }
 0xdcf   :  { %v4236_v41 = vpop.permute.xlu0 %4235 }
 0xdd0   :  { %v4241_v22 = vadd.f32 %v4236_v41, %v6534_v6 }
 0xdd2   :  { %5464 = vtanh.f32 %v4241_v22 }
 0xdd8   :  { %v5465_v54 = vpop.eup %5464 }
 0xdd9   :  { %4249 = vrot.lane.b32.xlu2 %v5465_v54, %s5605_s12 }
 0xe2e   :  { %v4252_v37 = vpop.permute.xlu0 %4251 }
 0xe2f   :  { %v4256_v16 = vmul.f32 %v4252_v37, %v4246_v56 }
 0xe31   :  { %v4264_v55 = vadd.f32 %v6563_v39, %v4256_v16 }
 0xe33   :  { %v4250_v4 = vpop.permute.xlu2 %4249  ;;  %v4292_v5 = vrot.slane %v4264_v55, 1  ;;  %v4444_v15 = vrot.slane %v4264_v55, 7 }
 0xe34   :  { %v4255_v44 = vmul.f32 %v4250_v4, %v4245_v17 }
 0xe35   :  { %4293 = vrot.lane.b32.xlu2 %v4292_v5, %s5605_s12 }
 0xe36   :  { %v6586_v28 = vadd.f32 %v6568_v59, %v4255_v44 }
 0xe38   :  { %v4266_v29 = vrot.slane %v6586_v28, 1  ;;  %v4443_v21 = vrot.slane %v6586_v28, 7 }
 0xe3a   :  { %4267 = vrot.lane.b32.xlu1 %v4266_v29, %s5605_s12 }
 0xe8f   :  { %v4294_v46 = vpop.permute.xlu2 %4293 }
 0xe90   :  { %5356 = vmatmul.msk.f32.vlgmr.msrb.gmra.mxu2 %vm2106_vm8, %v4294_v46 }
 0xeac   :  { %v4268_v10 = vpop.permute.xlu1 %4267 }
 0xead   :  { %5355 = vmatmul.msk.f32.vlgmr.msrb.gmra.mxu1 %vm2106_vm8, %v4268_v10 }
 0xf13   :  { %v4314_v39 = vpop.f32.mrf.mxu2 }
 0xf14   :  { %v4320_v38 = vrot.slane %v4314_v39, 6  ;;  %v4406_v43 = vadd.f32 %v4314_v39, %v6505_v42 }
 0xf16   :  { %v4324_v45 = vadd.f32 %v4320_v38, %v6514_v11  ;;  %v4410_v23 = vrot.slane %v4406_v43, 6 }
 0xf18   :  { %v4366_v58 = vadd.f32 %v4324_v45, %v6538_v31  ;;  %4413 = vrot.lane.b32.xlu1 %v4410_v23, %s5603_s30  ;;  %v4326_v41 = vadd.f32 %v6571_v18, %v4324_v45 }
 0xf1a   :  { %v5360_v59 = vmul.f32 -1.442695, %v4366_v58  ;;  %v5358_v22 = vmul.f32 -1.442695, %v4326_v41 }
 0xf1c   :  { %5466 = vpow2.f32 %v5360_v59 }
 0xf22   :  { %v5467_v19 = vpop.eup %5466 }
 0xf23   :  { %v4374_v34 = vadd.f32 1.0, %v5467_v19 }
 0xf25   :  { %5468 = vrcp.f32 %v4374_v34  ;;  %v4401_v63 = vand.u32 2147483648, %v4374_v34  ;;  %v4399_v8 = vand.u32 2147483647, %v4374_v34  ;;  %vm4395_vm7 = vweird.f32 %v4374_v34 }
 0xf27   :  { %v4402_v14 = vor.u32 1.1754944e-38, %v4401_v63  ;;  %vm4400_vm10 = vcmp.eq.f32.partialorder %v4399_v8, 8.507059e+37 }
 0xf2a   :  { %v4288_v35 = vpop.f32.mrf.mxu1 }
 0xf2b   :  { %v4319_v26 = vrot.slane %v4288_v35, 6  ;;  %v4405_v27 = vadd.f32 %v4288_v35, %v6505_v42  ;;  %v5469_v49 = vpop.eup %5468 }
 0xf2c   :  { %v4391_v62 = vmul.f32 %v5469_v49, %v4374_v34  ;;  %vm4396_vm6 = vweird.f32 %v5469_v49 }
 0xf2d   :  { %v4323_v48 = vadd.f32 %v4319_v26, %v6511_v32  ;;  %v4409_v47 = vrot.slane %v4405_v27, 6  ;;  %vm4397_vm9 = vmor %vm4395_vm7, %vm4396_vm6 }
 0xf2e   :  { %v4392_v61 = vsub.f32 1.0, %v4391_v62 }
 0xf2f   :  { %v4365_v60 = vadd.f32 %v4323_v48, %v6538_v31  ;;  %4411 = vrot.lane.b32.xlu0 %v4409_v47, %s5603_s30  ;;  %v4325_v37 = vadd.f32 %v6571_v18, %v4323_v48 }
 0xf30   :  { %v4393_v52 = vmul.f32 %v5469_v49, %v4392_v61 }
 0xf31   :  { %v5359_v57 = vmul.f32 -1.442695, %v4365_v60  ;;  %v5357_v55 = vmul.f32 -1.442695, %v4325_v37 }
 0xf32   :  { %v4394_v9 = vadd.f32 %v5469_v49, %v4393_v52 }
 0xf33   :  { %5470 = vpow2.f32 %v5359_v57 }
 0xf34   :  { %v4398_v2 = vsel %vm4397_vm9, %v5469_v49, %v4394_v9 }
 0xf35   :  { %v6600_v33 = vsel %vm4400_vm10, %v4402_v14, %v4398_v2 }
 0xf36   :  { %v6603_v3 = vmul.f32 %v4444_v15, %v6600_v33  ;;  %v4432_v14 = vsub.f32 1.0, %v6600_v33 }
 0xf39   :  { %v5471_v24 = vpop.eup %5470 }
 0xf3a   :  { %v4373_v25 = vadd.f32 1.0, %v5471_v24 }
 0xf3c   :  { %5472 = vrcp.f32 %v4373_v25  ;;  %v4386_v0 = vand.u32 2147483648, %v4373_v25  ;;  %v4384_v20 = vand.u32 2147483647, %v4373_v25  ;;  %vm4380_vm12 = vweird.f32 %v4373_v25 }
 0xf3d   :  { %5474 = vpow2.f32 %v5358_v22 }
 0xf3e   :  { %v4387_v7 = vor.u32 1.1754944e-38, %v4386_v0  ;;  %vm4385_vm14 = vcmp.eq.f32.partialorder %v4384_v20, 8.507059e+37 }
 0xf42   :  { %v5473_v51 = vpop.eup %5472 }
 0xf43   :  { %v4376_v53 = vmul.f32 %v5473_v51, %v4373_v25  ;;  %vm4381_vm11 = vweird.f32 %v5473_v51  ;;  %v5475_v54 = vpop.eup %5474 }
 0xf44   :  { %vm4382_vm13 = vmor %vm4380_vm12, %vm4381_vm11  ;;  %v4334_v56 = vadd.f32 1.0, %v5475_v54 }
 0xf45   :  { %v4377_v12 = vsub.f32 1.0, %v4376_v53 }
 0xf46   :  { %5476 = vrcp.f32 %v4334_v56  ;;  %v4361_v46 = vand.u32 2147483648, %v4334_v56  ;;  %vm4355_vm0 = vweird.f32 %v4334_v56  ;;  %v4359_v10 = vand.u32 2147483647, %v4334_v56 }
 0xf47   :  { %v4378_v1 = vmul.f32 %v5473_v51, %v4377_v12  ;;  %5478 = vpow2.f32 %v5357_v55 }
 0xf48   :  { %v4362_v38 = vor.u32 1.1754944e-38, %v4361_v46  ;;  %vm4360_vm2 = vcmp.eq.f32.partialorder %v4359_v10, 8.507059e+37 }
 0xf49   :  { %v4379_v36 = vadd.f32 %v5473_v51, %v4378_v1 }
 0xf4b   :  { %v4383_v30 = vsel %vm4382_vm13, %v5473_v51, %v4379_v36 }
 0xf4c   :  { %v6606_v40 = vsel %vm4385_vm14, %v4387_v7, %v4383_v30  ;;  %v5477_v16 = vpop.eup %5476 }
 0xf4d   :  { %v6609_v50 = vmul.f32 %v4443_v21, %v6606_v40  ;;  %v4351_v17 = vmul.f32 %v5477_v16, %v4334_v56  ;;  %v5479_v5 = vpop.eup %5478  ;;  %vm4356_vm15 = vweird.f32 %v5477_v16  ;;  %v4431_v51 = vsub.f32 1.0, %v6606_v40 }
 0xf4e   :  { %v4333_v28 = vadd.f32 1.0, %v5479_v5  ;;  %vm4357_vm1 = vmor %vm4355_vm0, %vm4356_vm15 }
 0xf4f   :  { %v4352_v4 = vsub.f32 1.0, %v4351_v17 }
 0xf50   :  { %5480 = vrcp.f32 %v4333_v28  ;;  %v4346_v26 = vand.u32 2147483648, %v4333_v28  ;;  %vm4340_vm4 = vweird.f32 %v4333_v28  ;;  %v4344_v27 = vand.u32 2147483647, %v4333_v28 }
 0xf51   :  { %v4353_v44 = vmul.f32 %v5477_v16, %v4352_v4 }
 0xf52   :  { %v4347_v48 = vor.u32 1.1754944e-38, %v4346_v26  ;;  %vm4345_vm6 = vcmp.eq.f32.partialorder %v4344_v27, 8.507059e+37 }
 0xf53   :  { %v4354_v29 = vadd.f32 %v5477_v16, %v4353_v44 }
 0xf55   :  { %v4358_v39 = vsel %vm4357_vm1, %v5477_v16, %v4354_v29 }
 0xf56   :  { %v4363_v43 = vsel %vm4360_vm2, %v4362_v38, %v4358_v39  ;;  %v5481_v23 = vpop.eup %5480 }
 0xf57   :  { %v4336_v59 = vmul.f32 %v5481_v23, %v4333_v28  ;;  %vm4341_vm3 = vweird.f32 %v5481_v23 }
 0xf58   :  { %vm4342_vm5 = vmor %vm4340_vm4, %vm4341_vm3 }
 0xf59   :  { %v4337_v19 = vsub.f32 1.0, %v4336_v59 }
 0xf5b   :  { %v4338_v34 = vmul.f32 %v5481_v23, %v4337_v19 }
 0xf5d   :  { %v4339_v35 = vadd.f32 %v5481_v23, %v4338_v34 }
 0xf5f   :  { %v4343_v49 = vsel %vm4342_vm5, %v5481_v23, %v4339_v35 }
 0xf60   :  { %v4348_v62 = vsel %vm4345_vm6, %v4347_v48, %v4343_v49 }
 0xf8a   :  { %v4414_v45 = vpop.permute.xlu1 %4413 }
 0xf8b   :  { %v4418_v58 = vmul.f32 %v4414_v45, %v4363_v43 }
 0xf8d   :  { %4423 = vrot.lane.b32.xlu0 %v4418_v58, %s5601_s19 }
 0xfa1   :  { %v4412_v47 = vpop.permute.xlu0 %4411 }
 0xfa2   :  { %v4417_v60 = vmul.f32 %v4412_v47, %v4348_v62 }
 0xfa4   :  { %4421 = vrot.lane.b32.xlu2 %v4417_v60, %s5601_s19 }
 0xffe   :  { %v4422_v61 = vpop.permute.xlu2 %4421 }
 0xfff   :  { %v4427_v63 = vadd.f32 %v4422_v61, %v6534_v6  ;;  %v4424_v57 = vpop.permute.xlu0 %4423 }
0x1000   :  { %v4428_v52 = vadd.f32 %v4424_v57, %v6529_v13 }
0x1001   :  { %5482 = vtanh.f32 %v4427_v63 }
0x1002   :  { %5484 = vtanh.f32 %v4428_v52 }
0x1007   :  { %v5483_v8 = vpop.eup %5482 }
0x1008   :  { %v5485_v9 = vpop.eup %5484  ;;  %4435 = vrot.lane.b32.xlu1 %v5483_v8, %s5605_s12 }
0x1009   :  { %4437 = vrot.lane.b32.xlu2 %v5485_v9, %s5605_s12 }
0x1063   :  { %v4438_v15 = vpop.permute.xlu2 %4437 }
0x1064   :  { %v4442_v2 = vmul.f32 %v4438_v15, %v4432_v14 }
0x1066   :  { %v4450_v24 = vadd.f32 %v6603_v3, %v4442_v2 }
0x1068   :  { %v4478_v25 = vrot.slane %v4450_v24, 2  ;;  %v4630_v10 = vrot.slane %v4450_v24, 7 }
0x106a   :  { %4479 = vrot.lane.b32.xlu1 %v4478_v25, %s5605_s12 }
0x107a   :  { %v4436_v53 = vpop.permute.xlu1 %4435 }
0x107b   :  { %v4441_v12 = vmul.f32 %v4436_v53, %v4431_v51 }
0x107d   :  { %v6624_v0 = vadd.f32 %v6609_v50, %v4441_v12 }
0x107f   :  { %v4452_v1 = vrot.slane %v6624_v0, 2  ;;  %v4629_v49 = vrot.slane %v6624_v0, 7 }
0x1081   :  { %4453 = vrot.lane.b32.xlu0 %v4452_v1, %s5605_s12 }
0x10dc   :  { %v4480_v20 = vpop.permute.xlu1 %4479 }
0x10dd   :  { %5362 = vmatmul.msk.f32.vlgmr.msra.gmra.mxu0 %vm2106_vm8, %v4480_v20 }
0x10f3   :  { %v4454_v33 = vpop.permute.xlu0 %4453 }
0x10f4   :  { %5361 = vmatmul.msk.f32.vlgmr.msrb.gmra.mxu3 %vm2106_vm8, %v4454_v33 }
0x115a   :  { %v4500_v3 = vpop.f32.mrf.mxu0 }
0x115b   :  { %v4506_v36 = vrot.slane %v4500_v3, 5  ;;  %v4592_v7 = vadd.f32 %v4500_v3, %v6505_v42 }
0x115d   :  { %v4510_v21 = vadd.f32 %v4506_v36, %v6514_v11  ;;  %v4596_v30 = vrot.slane %v4592_v7, 5 }
0x115f   :  { %v4552_v40 = vadd.f32 %v4510_v21, %v6538_v31  ;;  %4599 = vrot.lane.b32.xlu0 %v4596_v30, %s5603_s30  ;;  %v4512_v60 = vadd.f32 %v6571_v18, %v4510_v21 }
0x1161   :  { %v5366_v50 = vmul.f32 -1.442695, %v4552_v40  ;;  %v5364_v61 = vmul.f32 -1.442695, %v4512_v60 }
0x1163   :  { %5486 = vpow2.f32 %v5366_v50 }
0x1169   :  { %v5487_v41 = vpop.eup %5486 }
0x116a   :  { %v4560_v22 = vadd.f32 1.0, %v5487_v41 }
0x116c   :  { %5488 = vrcp.f32 %v4560_v22  ;;  %v4585_v55 = vand.u32 2147483647, %v4560_v22  ;;  %v4587_v17 = vand.u32 2147483648, %v4560_v22  ;;  %vm4581_vm9 = vweird.f32 %v4560_v22 }
0x116e   :  { %v4588_v46 = vor.u32 1.1754944e-38, %v4587_v17  ;;  %vm4586_vm11 = vcmp.eq.f32.partialorder %v4585_v55, 8.507059e+37 }
0x1172   :  { %v5489_v54 = vpop.eup %5488 }
0x1173   :  { %v4577_v56 = vmul.f32 %v5489_v54, %v4560_v22  ;;  %vm4582_vm7 = vweird.f32 %v5489_v54 }
0x1174   :  { %vm4583_vm10 = vmor %vm4581_vm9, %vm4582_vm7  ;;  %vm4645_vm9 = vcmask 125955  }
0x1175   :  { %v4578_v37 = vsub.f32 1.0, %v4577_v56 }
0x1177   :  { %v4474_v16 = vpop.f32.mrf.mxu3  ;;  %v4579_v11 = vmul.f32 %v5489_v54, %v4578_v37 }
0x1178   :  { %v4505_v4 = vrot.slane %v4474_v16, 5  ;;  %v4591_v5 = vadd.f32 %v4474_v16, %v6505_v42 }
0x1179   :  { %v4580_v29 = vadd.f32 %v5489_v54, %v4579_v11 }
0x117a   :  { %v4509_v44 = vadd.f32 %v4505_v4, %v6511_v32  ;;  %v4595_v28 = vrot.slane %v4591_v5, 5 }
0x117b   :  { %v4584_v38 = vsel %vm4583_vm10, %v5489_v54, %v4580_v29 }
0x117c   :  { %v4551_v39 = vadd.f32 %v4509_v44, %v6538_v31  ;;  %4597 = vrot.lane.b32.xlu2 %v4595_v28, %s5603_s30  ;;  %v6638_v43 = vsel %vm4586_vm11, %v4588_v46, %v4584_v38  ;;  %v4511_v63 = vadd.f32 %v6571_v18, %v4509_v44 }
0x117d   :  { %v6641_v42 = vmul.f32 %v4630_v10, %v6638_v43  ;;  %v4618_v44 = vsub.f32 1.0, %v6638_v43 }
0x117e   :  { %v5365_v45 = vmul.f32 -1.442695, %v4551_v39  ;;  %v5363_v57 = vmul.f32 -1.442695, %v4511_v63 }
0x1180   :  { %5490 = vpow2.f32 %v5365_v45 }
0x1186   :  { %v5491_v32 = vpop.eup %5490 }
0x1187   :  { %v4559_v23 = vadd.f32 1.0, %v5491_v32 }
0x1189   :  { %5492 = vrcp.f32 %v4559_v23  ;;  %v4572_v34 = vand.u32 2147483648, %v4559_v23  ;;  %v4570_v31 = vand.u32 2147483647, %v4559_v23  ;;  %vm4566_vm13 = vweird.f32 %v4559_v23 }
0x118a   :  { %5494 = vpow2.f32 %v5364_v61 }
0x118b   :  { %v4573_v27 = vor.u32 1.1754944e-38, %v4572_v34  ;;  %vm4571_vm15 = vcmp.eq.f32.partialorder %v4570_v31, 8.507059e+37  ;;  %5496 = vpow2.f32 %v5363_v57 }
0x118f   :  { %v5493_v58 = vpop.eup %5492 }
0x1190   :  { %v4562_v59 = vmul.f32 %v5493_v58, %v4559_v23  ;;  %vm4567_vm12 = vweird.f32 %v5493_v58  ;;  %v5495_v52 = vpop.eup %5494 }
0x1191   :  { %vm4568_vm14 = vmor %vm4566_vm13, %vm4567_vm12  ;;  %v4520_v8 = vadd.f32 1.0, %v5495_v52  ;;  %v5497_v9 = vpop.eup %5496 }
0x1192   :  { %v4563_v19 = vsub.f32 1.0, %v4562_v59  ;;  %v4519_v14 = vadd.f32 1.0, %v5497_v9 }
0x1193   :  { %5498 = vrcp.f32 %v4520_v8  ;;  %v4547_v1 = vand.u32 2147483648, %v4520_v8  ;;  %vm4541_vm1 = vweird.f32 %v4520_v8  ;;  %v4545_v20 = vand.u32 2147483647, %v4520_v8 }
0x1194   :  { %v4564_v35 = vmul.f32 %v5493_v58, %v4563_v19  ;;  %5500 = vrcp.f32 %v4519_v14  ;;  %v4532_v7 = vand.u32 2147483648, %v4519_v14  ;;  %vm4526_vm5 = vweird.f32 %v4519_v14 }
0x1195   :  { %v4548_v3 = vor.u32 1.1754944e-38, %v4547_v1  ;;  %vm4546_vm4 = vcmp.eq.f32.partialorder %v4545_v20, 8.507059e+37  ;;  %v4530_v40 = vand.u32 2147483647, %v4519_v14 }
0x1196   :  { %v4565_v26 = vadd.f32 %v5493_v58, %v4564_v35  ;;  %v4533_v22 = vor.u32 1.1754944e-38, %v4532_v7 }
0x1197   :  { %vm4531_vm7 = vcmp.eq.f32.partialorder %v4530_v40, 8.507059e+37 }
0x1198   :  { %v4569_v48 = vsel %vm4568_vm14, %v5493_v58, %v4565_v26 }
0x1199   :  { %v6644_v47 = vsel %vm4571_vm15, %v4573_v27, %v4569_v48  ;;  %v5499_v15 = vpop.eup %5498 }
0x119a   :  { %v6647_v62 = vmul.f32 %v4629_v49, %v6644_v47  ;;  %v4537_v2 = vmul.f32 %v5499_v15, %v4520_v8  ;;  %v5501_v24 = vpop.eup %5500  ;;  %vm4542_vm0 = vweird.f32 %v5499_v15  ;;  %v5607_v8 = vmov 15.0  }
0x119b   :  { %v4522_v51 = vmul.f32 %v5501_v24, %v4519_v14  ;;  %vm4543_vm2 = vmor %vm4541_vm1, %vm4542_vm0  ;;  %vm4527_vm3 = vweird.f32 %v5501_v24 }
0x119c   :  { %v4538_v25 = vsub.f32 1.0, %v4537_v2  ;;  %vm4528_vm6 = vmor %vm4526_vm5, %vm4527_vm3 }
0x119d   :  { %v4523_v12 = vsub.f32 1.0, %v4522_v51 }
0x119e   :  { %v4539_v53 = vmul.f32 %v5499_v15, %v4538_v25 }
0x119f   :  { %v4524_v18 = vmul.f32 %v5501_v24, %v4523_v12 }
0x11a0   :  { %v4540_v0 = vadd.f32 %v5499_v15, %v4539_v53 }
0x11a1   :  { %v4525_v36 = vadd.f32 %v5501_v24, %v4524_v18 }
0x11a2   :  { %v4544_v33 = vsel %vm4543_vm2, %v5499_v15, %v4540_v0 }
0x11a3   :  { %v4549_v30 = vsel %vm4546_vm4, %v4548_v3, %v4544_v33  ;;  %v4529_v41 = vsel %vm4528_vm6, %v5501_v24, %v4525_v36 }
0x11a4   :  { %v4534_v56 = vsel %vm4531_vm7, %v4533_v22, %v4529_v41 }
0x11d1   :  { %v4600_v21 = vpop.permute.xlu0 %4599 }
0x11d2   :  { %v4604_v50 = vmul.f32 %v4600_v21, %v4549_v30 }
0x11d4   :  { %4609 = vrot.lane.b32.xlu2 %v4604_v50, %s5601_s19 }
0x11d6   :  { %v4598_v54 = vpop.permute.xlu2 %4597 }
0x11d7   :  { %v4603_v37 = vmul.f32 %v4598_v54, %v4534_v56 }
0x11d9   :  { %4607 = vrot.lane.b32.xlu1 %v4603_v37, %s5601_s19 }
0x122e   :  { %v4610_v16 = vpop.permute.xlu2 %4609 }
0x122f   :  { %v4614_v55 = vadd.f32 %v4610_v16, %v6529_v13  ;;  %v4617_v13 = vsub.f32 1.0, %v6644_v47  ;;  %v4759_v16 = vld [vmem:[%s6751_s4 + $0x8] sm:$0xff] }
0x1230   :  { %4780 = vmatpush.msra.mxu1 %v4759_v16  ;;  %4805 = vmatpush.msra.mxu2 %v4759_v16 }
0x1231   :  { %5502 = vtanh.f32 %v4614_v55  ;;  %v4758_v55 = vld [vmem:[%s6751_s4] sm:$0xff] }
0x1232   :  { %4781 = vmatpush.msra.mxu1 %v4758_v55  ;;  %4806 = vmatpush.msra.mxu2 %v4758_v55 }
0x1237   :  { %v5503_v17 = vpop.eup %5502 }
0x1238   :  { %4623 = vrot.lane.b32.xlu1 %v5503_v17, %s5605_s12 }
0x124b   :  { %v4608_v4 = vpop.permute.xlu1 %4607 }
0x124c   :  { %v4613_v5 = vadd.f32 %v4608_v4, %v6534_v6 }
0x124e   :  { %5504 = vtanh.f32 %v4613_v5 }
0x1254   :  { %v5505_v11 = vpop.eup %5504 }
0x1255   :  { %4621 = vrot.lane.b32.xlu0 %v5505_v11, %s5605_s12 }
0x12aa   :  { %v4624_v28 = vpop.permute.xlu1 %4623 }
0x12ab   :  { %v4628_v29 = vmul.f32 %v4624_v28, %v4618_v44 }
0x12ad   :  { %v4636_v46 = vadd.f32 %v6641_v42, %v4628_v29  ;;  %v5606_v42 = vmov 16.0  }
0x12ae   :  { %5506 = vrcp.f32 %v5606_v42 }
0x12af   :  { %4639 = vrot.lane.b32.xlu0 %v4636_v46, %s5605_s12  ;;  %5508 = vrcp.f32 %v5607_v8 }
0x12b4   :  { %v5507_v23 = vpop.eup %5506 }
0x12b5   :  { %v4653_v58 = vmul.f32 16.0, %v5507_v23  ;;  %vm4657_vm10 = vweird.f32 %v5507_v23  ;;  %v5509_v9 = vpop.eup %5508 }
0x12b6   :  { %v4680_v14 = vmul.f32 15.0, %v5509_v9  ;;  %vm4684_vm11 = vweird.f32 %v5509_v9 }
0x12b7   :  { %v4654_v59 = vsub.f32 1.0, %v4653_v58 }
0x12b8   :  { %v4681_v15 = vsub.f32 1.0, %v4680_v14 }
0x12b9   :  { %v4655_v19 = vmul.f32 %v5507_v23, %v4654_v59 }
0x12ba   :  { %v4682_v2 = vmul.f32 %v5509_v9, %v4681_v15 }
0x12bb   :  { %v4656_v34 = vadd.f32 %v5507_v23, %v4655_v19 }
0x12bc   :  { %v4683_v24 = vadd.f32 %v5509_v9, %v4682_v2  ;;  %v4811_v2 = vld [vmem:[%s6752_s22] sm:$0xff] }
0x12bd   :  { %v4658_v35 = vsel %vm4657_vm10, %v5507_v23, %v4656_v34 }
0x12be   :  { %v4685_v25 = vsel %vm4684_vm11, %v5509_v9, %v4683_v24  ;;  %v4760_v24 = vld [vmem:[%s6753_s23] sm:$0x1] }
0x12c7   :  { %v4622_v10 = vpop.permute.xlu0 %4621 }
0x12c8   :  { %v4627_v39 = vmul.f32 %v4622_v10, %v4617_v13 }
0x12ca   :  { %v4635_v38 = vadd.f32 %v6647_v62, %v4627_v39 }
0x12cc   :  { %4641 = vrot.lane.b32.xlu2 %v4635_v38, %s5605_s12 }
0x1321   :  { %v4640_v6 = vpop.permute.xlu0 %4639 }
0x1322   :  { %v4646_v45 = vsel %vm4645_vm9, %v4640_v6, 0.0 }
0x1323   :  { %4647 = vadd.xlane.f32.xlu2 %v4646_v45 }
0x1326   :  { %v4642_v43 = vpop.permute.xlu2 %4641 }
0x1327   :  { %v4649_v32 = vsel %vm4645_vm9, %v4642_v43, 0.0 }
0x1328   :  { %4650 = vadd.xlane.f32.xlu1 %v4649_v32 }
0x1396   :  { %v4648_v27 = vpop.xlane.xlu2 %4647 }
0x1397   :  { %v6670_v48 = vmul.f32 %v4658_v35, %v4648_v27 }
0x1399   :  { %v6676_v62 = vsub.f32 %v4636_v46, %v6670_v48 }
0x139b   :  { %v4651_v31 = vpop.xlane.xlu1 %4650  ;;  %v4663_v60 = vmul.f32 %v6676_v62, %v6676_v62 }
0x139c   :  { %v6665_v26 = vmul.f32 %v4658_v35, %v4651_v31 }
0x139e   :  { %v6668_v49 = vsub.f32 %v4635_v38, %v6665_v26 }
0x13a0   :  { %v4664_v47 = vmul.f32 %v6668_v49, %v6668_v49 }
0x13a2   :  { %4669 = vrot.lane.b32.xlu0 %v4664_v47, %s5605_s12 }
0x13aa   :  { %4667 = vrot.lane.b32.xlu0 %v4663_v60, %s5605_s12 }
0x1414   :  { %v4670_v61 = vpop.permute.xlu0 %4669 }
0x1415   :  { %v4676_v63 = vsel %vm4645_vm9, %v4670_v61, 0.0 }
0x1416   :  { %4677 = vadd.xlane.f32.xlu0 %v4676_v63 }
0x141c   :  { %v4668_v57 = vpop.permute.xlu0 %4667 }
0x141d   :  { %v4673_v52 = vsel %vm4645_vm9, %v4668_v57, 0.0 }
0x141e   :  { %4674 = vadd.xlane.f32.xlu2 %v4673_v52 }
0x1489   :  { %v4678_v51 = vpop.xlane.xlu0 %4677 }
0x148a   :  { %v4687_v53 = vmul.f32 %v4685_v25, %v4678_v51 }
0x148c   :  { %5510 = vrsqrt.f32 %v4687_v53  ;;  %vm4707_vm12 = vcmp.eq.f32.partialorder %v4687_v53, inf  ;;  %v4710_v50 = vand.u32 2147483648, %v4687_v53  ;;  %vm4709_vm13 = vcmp.eq.f32.partialorder %v4687_v53, 0.0 }
0x1491   :  { %v4675_v12 = vpop.xlane.xlu2 %4674 }
0x1492   :  { %v5511_v0 = vpop.eup %5510  ;;  %v4686_v1 = vmul.f32 %v4685_v25, %v4675_v12 }
0x1493   :  { %v4701_v18 = vmul.f32 %v5511_v0, %v4687_v53 }
0x1494   :  { %5512 = vrsqrt.f32 %v4686_v1  ;;  %vm4695_vm14 = vcmp.eq.f32.partialorder %v4686_v1, inf  ;;  %v4698_v5 = vand.u32 2147483648, %v4686_v1  ;;  %vm4697_vm15 = vcmp.eq.f32.partialorder %v4686_v1, 0.0 }
0x1495   :  { %v4702_v20 = vmul.f32 %v5511_v0, %v4701_v18  ;;  %v4813_v18 = vld [vmem:[%s6754_s26] sm:$0x1] }
0x1497   :  { %v4703_v33 = vmul.f32 0.5, %v4702_v20 }
0x1499   :  { %v4704_v3 = vsub.f32 1.5, %v4703_v33 }
0x149a   :  { %v5513_v36 = vpop.eup %5512 }
0x149b   :  { %v4705_v7 = vmul.f32 %v5511_v0, %v4704_v3  ;;  %v4689_v21 = vmul.f32 %v5513_v36, %v4686_v1  ;;  %v4861_v0 = vld [vmem:[%s5759_s27 + $0x8] sm:$0xff] }
0x149c   :  { %4880 = vmatpush.msrb.mxu1 %v4861_v0  ;;  %4903 = vmatpush.msrb.mxu2 %v4861_v0 }
0x149d   :  { %v4706_v30 = vmul.f32 %v4705_v7, %v4687_v53  ;;  %v4690_v40 = vmul.f32 %v5513_v36, %v4689_v21 }
0x149f   :  { %v4708_v41 = vsel %vm4707_vm12, %v4687_v53, %v4706_v30  ;;  %v4691_v22 = vmul.f32 0.5, %v4690_v40 }
0x14a0   :  { %v4711_v54 = vsel %vm4709_vm13, %v4710_v50, %v4708_v41 }
0x14a1   :  { %v4713_v56 = vadd.f32 1e-06, %v4711_v54  ;;  %v4692_v37 = vsub.f32 1.5, %v4691_v22 }
0x14a3   :  { %5514 = vrcp.f32 %v4713_v56  ;;  %v4693_v17 = vmul.f32 %v5513_v36, %v4692_v37  ;;  %v4742_v10 = vand.u32 2147483648, %v4713_v56  ;;  %v4740_v38 = vand.u32 2147483647, %v4713_v56 }
0x14a4   :  { %vm4736_vm1 = vweird.f32 %v4713_v56 }
0x14a5   :  { %v4694_v4 = vmul.f32 %v4693_v17, %v4686_v1  ;;  %v4743_v43 = vor.u32 1.1754944e-38, %v4742_v10  ;;  %vm4741_vm3 = vcmp.eq.f32.partialorder %v4740_v38, 8.507059e+37 }
0x14a7   :  { %v4696_v11 = vsel %vm4695_vm14, %v4686_v1, %v4694_v4  ;;  %v4860_v1 = vld [vmem:[%s5759_s27] sm:$0xff]  ;;  %s5530_s27 = sshra.s32 %s4919_s28, 4  ;;  %s5531_s27 = int_to_ptr.hbm [resolvable:$true] %s5530_s27 }
0x14a8   :  { %v4699_v44 = vsel %vm4697_vm15, %v4698_v5, %v4696_v11  ;;  %4881 = vmatpush.msrb.mxu1 %v4860_v1  ;;  %4904 = vmatpush.msrb.mxu2 %v4860_v1  ;;  %s5532_s7 = scalar_lea.hbm %s5531_s27, 2  ;;  %p5535_p1 = scmp.lt.s32.totalorder %s5531_s27, %s5769_s20 }
0x14a9   :  { %v5515_v28 = vpop.eup %5514  ;;  %v4712_v29 = vadd.f32 1e-06, %v4699_v44  ;;  %p5533_p0 = scmp.ne.s32.totalorder %s5531_s27, %s5532_s7  ;;  %p5536_p2 = scmp.lt.s32.totalorder %s5534_s10, %s5532_s7 }
0x14aa   :  { %v4732_v46 = vmul.f32 %v5515_v28, %v4713_v56  ;;  %vm4737_vm0 = vweird.f32 %v5515_v28 }
0x14ab   :  { %5516 = vrcp.f32 %v4712_v29  ;;  %vm4738_vm2 = vmor %vm4736_vm1, %vm4737_vm0  ;;  %v4715_v32 = vmul.f32 %v4712_v29, %v6668_v49  ;;  %v4727_v34 = vand.u32 2147483648, %v4712_v29  ;;  %v4725_v27 = vand.u32 2147483647, %v4712_v29  ;;  %p5537_p3 = por %p5536_p2, %p5535_p1 }
0x14ac   :  { %v4733_v13 = vsub.f32 1.0, %v4732_v46  ;;  %vm4721_vm5 = vweird.f32 %v4712_v29  ;;  %v4714_v49 = vmul.f32 %v4713_v56, %v6676_v62 }
0x14ad   :  { %v4728_v61 = vor.u32 1.1754944e-38, %v4727_v34  ;;  %vm4726_vm7 = vcmp.eq.f32.partialorder %v4725_v27, 8.507059e+37  ;;  %p5538_p4 = pnand %p5537_p3, %p5533_p0 }
0x14ae   :  { %v4734_v39 = vmul.f32 %v5515_v28, %v4733_v13 }
0x14b0   :  { %v4735_v6 = vadd.f32 %v5515_v28, %v4734_v39 }
0x14b1   :  { %v5517_v45 = vpop.eup %5516 }
0x14b2   :  { %v4739_v42 = vsel %vm4738_vm2, %v5515_v28, %v4735_v6  ;;  %v4717_v23 = vmul.f32 %v5517_v45, %v4712_v29  ;;  %vm4722_vm4 = vweird.f32 %v5517_v45 }
0x14b3   :  { %v4744_v58 = vsel %vm4741_vm3, %v4743_v43, %v4739_v42  ;;  %vm4723_vm6 = vmor %vm4721_vm5, %vm4722_vm4 }
0x14b4   :  { %v4745_v59 = vmul.f32 %v4744_v58, %v4715_v32  ;;  %v4718_v19 = vsub.f32 1.0, %v4717_v23 }
0x14b6   :  { %v4747_v35 = vadd.f32 %v4745_v59, %v6670_v48  ;;  %v4719_v31 = vmul.f32 %v5517_v45, %v4718_v19 }
0x14b8   :  { %v4786_v47 = vrot.slane %v4747_v35, 3  ;;  %v4720_v60 = vadd.f32 %v5517_v45, %v4719_v31 }
0x14ba   :  { %4787 = vrot.lane.b32.xlu1 %v4786_v47, %s5605_s12  ;;  %v4724_v63 = vsel %vm4723_vm6, %v5517_v45, %v4720_v60 }
0x14bb   :  { %v4729_v57 = vsel %vm4726_vm7, %v4728_v61, %v4724_v63 }
0x14bc   :  { %v4730_v52 = vmul.f32 %v4729_v57, %v4714_v49 }
0x14be   :  { %v4746_v48 = vadd.f32 %v4730_v52, %v6665_v26  ;;  %v4812_v26 = vld [vmem:[%s6752_s22 + $0x8] sm:$0xff] }
0x14bf   :  { %4831 = vmatpush.msra.mxu3 %v4812_v26  ;;  %4854 = vmatpush.msrb.mxu0 %v4812_v26 }
0x14c0   :  { %4750 = vrot.lane.b32.xlu0 %v4746_v48, %s5605_s12  ;;  %v4761_v8 = vrot.slane %v4746_v48, 3 }
0x14c1   :  { %4832 = vmatpush.msra.mxu3 %v4811_v2  ;;  %4855 = vmatpush.msrb.mxu0 %v4811_v2 }
0x14c2   :  { %4752 = vrot.lane.b32.xlu1 %v4747_v35, %s5605_s12  ;;  %4762 = vrot.lane.b32.xlu2 %v4761_v8, %s5605_s12 }
0x151c   :  { %v4763_v9 = vpop.permute.xlu2 %4762 }
0x151d   :  { %5367 = vmatmul.msk.f32.vlgmr.msra.gmra.mxu1 %vm2106_vm8, %v4763_v9 }
0x152c   :  { %v4788_v62 = vpop.permute.xlu1 %4787 }
0x152d   :  { %5368 = vmatmul.msk.f32.vlgmr.msra.gmra.mxu2 %vm2106_vm8, %v4788_v62 }
0x1532   :  { %v4751_v14 = vpop.permute.xlu0 %4750 }
0x1533   :  { %4756 = vst.msk [vmem:[#allocation2 - $0x3] sm:$0x8] %vm4645_vm9, %v4751_v14 }
0x1534   :  { %v4753_v15 = vpop.permute.xlu1 %4752 }
0x1535   :  { %4757 = vst.msk [vmem:[#allocation2 - $0x2] sm:$0x8] %vm4645_vm9, %v4753_v15 }
0x159a   :  { %v4783_v25 = vpop.f32.mrf.mxu1 }
0x159b   :  { %v4784_v51 = vadd.f32 %v4783_v25, %v4760_v24 }
0x159d   :  { %5369 = vmatmul.msk.f32.vlgmr.msra.gmra.mxu3 %vm2106_vm8, %v4784_v51 }
0x15b0   :  { %v4808_v53 = vpop.f32.mrf.mxu2 }
0x15b1   :  { %v4809_v12 = vadd.f32 %v4808_v53, %v4760_v24 }
0x15b3   :  { %5370 = vmatmul.msk.f32.vlgmr.msrb.gmra.mxu0 %vm2106_vm8, %v4809_v12 }
0x1620   :  { %v4834_v20 = vpop.f32.mrf.mxu3 }
0x1621   :  { %v4835_v33 = vadd.f32 %v4834_v20, %v4813_v18 }
0x1623   :  { %5371 = vmatmul.msk.f32.vlgmr.msrb.gmra.mxu1 %vm2106_vm8, %v4835_v33 }
0x1630   :  { %v4857_v3 = vpop.f32.mrf.mxu0 }
0x1631   :  { %v4858_v36 = vadd.f32 %v4857_v3, %v4813_v18 }
0x1633   :  { %5372 = vmatmul.msk.f32.vlgmr.msrb.gmra.mxu2 %vm2106_vm8, %v4858_v36 }
0x1634   :  { %5541 = shalt.err (!%p5538_p4)
}
0x1635   :  { %s5609_s11 = smov 1   ;;  %v4862_v7 = vld [vmem:[%s5764_s21] sm:$0x1]  ;;  %vm4909_vm8 = vcmask 24576   ;;  %s5610_s15 = smov [#allocation4]  }
0x1636   :  { %4924 = dma.vmem_to_hbm [thread:$0]  %s4917_s2, 32, %s4919_s28, [#allocation3], %s5604_s6, %s5604_s6, %s5609_s11  }
0x1637   :  { %s4929_s16 = sshll.u32 %s5610_s15, 4  ;;  %s4931_s20 = sshll.u32 %s5774_s8, 4  ;;  %s4930_s16 = int_to_ptr.vmem [resolvable:$true] %s4929_s16  ;;  %s4932_s20 = int_to_ptr.hbm [resolvable:$true] %s4931_s20 }
0x1638   :  { %s5554_s18 = sshra.s32 %s4932_s20, 4  ;;  %s5558_s5 = scalar_lea.hbm %s5774_s8, 2  ;;  %s5555_s18 = int_to_ptr.hbm [resolvable:$true] %s5554_s18 }
0x1639   :  { %s5556_s0 = scalar_lea.hbm %s5555_s18, 2  ;;  %p5559_p6 = scmp.lt.s32.totalorder %s5555_s18, %s5774_s8 }
0x163a   :  { %p5557_p5 = scmp.ne.s32.totalorder %s5555_s18, %s5556_s0  ;;  %p5560_p7 = scmp.lt.s32.totalorder %s5558_s5, %s5556_s0 }
0x163c   :  { %p5561_p8 = por %p5560_p7, %p5559_p6 }
0x163e   :  { %p5562_p9 = pnand %p5561_p8, %p5557_p5 }
0x16a0   :  { %v4883_v21 = vpop.f32.mrf.mxu1 }
0x16a1   :  { %v4884_v30 = vadd.f32 %v4883_v21, %v4862_v7 }
0x16a3   :  { %4910 = vst.msk [vmem:[#allocation4] sm:$0x1] %vm4909_vm8, %v4884_v30 }
0x16b6   :  { %v4906_v40 = vpop.f32.mrf.mxu2 }
0x16b7   :  { %v4907_v50 = vadd.f32 %v4906_v40, %v4862_v7 }
0x16b9   :  { %4911 = vst.msk [vmem:[#allocation4 + $0x1] sm:$0x1] %vm4909_vm8, %v4907_v50 }
0x16ba   :  { %5565 = shalt.err (!%p5562_p9)
}
0x16bb   :  { %4937 = dma.vmem_to_hbm [thread:$0]  %s4930_s16, 32, %s4932_s20, [#allocation5], %s5604_s6, %s5604_s6, %s5609_s11  }
0x16bc   :  { %5566 = dma.done.wait [#allocation3], 32  }
0x16bd   :  { %5567 = vsyncadd [#allocation3], 4294967264 }
0x16be   :  { %5568 = dma.done.wait [#allocation5], 32  }
0x16bf   :  { %5569 = vsyncadd [#allocation5], 4294967264 }
0x16c0   :  { %4946 = vsyncpa [#allocation3], 1 }
0x16c1   :  { %4947 = vsyncpa [#allocation5], 1 }

</bundles_post_ra>
